<compile_context>
chip_gen: v7x
topology: tpu7x:2x2x1
jax: 0.10.0
libtpu: 0.0.40
codegen_flags: <defaults>
</compile_context>

<pallas_src>
import functools

import jax
import jax.numpy as jnp
from jax.experimental import pallas as pl
from jax.experimental.pallas import tpu as pltpu


def _round_up(x, m):
    return ((x + m - 1) // m) * m


def _critic_kernel(obs_ref, mask_ref, table_ref, w1_ref, b1_ref,
                   w2_ref, b2_ref, wo_ref, bo_ref, out_ref):
    # obs_ref/mask_ref: (TB, F) int32 ; table_ref: (V, D) bf16 ; w1/w2: bf16
    # b1/b2/wo/bo: f32 row vectors ; out_ref: (TB, 1) f32
    obs = obs_ref[...]
    msk = mask_ref[...]
    # fused preprocessing: masked / unobserved features map to padding index 0
    idx = (obs + 1) * (msk != 0).astype(jnp.int32)            # (TB, F)

    tb, f_dim = idx.shape
    v_dim = table_ref.shape[0]

    # one-hot counts over the vocabulary, built in f32 on the VPU (v5e has no bf16 VALU):
    #   counts[b, v] = #{f : idx[b, f] == v}
    iota_v = jax.lax.broadcasted_iota(jnp.int32, (tb, v_dim), 1)
    counts = jnp.zeros((tb, v_dim), jnp.float32)
    for f in range(f_dim):                                    # F is a small static constant
        counts += (idx[:, f:f + 1] == iota_v).astype(jnp.float32)

    # sum-pooled embedding = counts @ table  (padding row of table is zero)
    # bf16 operands, f32 accumulation: counts are exact small integers (0..F) in bf16.
    embed = jnp.dot(counts.astype(jnp.bfloat16), table_ref[...],
                    preferred_element_type=jnp.float32)       # (TB, D) f32

    # MLP critic: two ReLU hidden layers (bf16 operands, f32 accumulation + f32 bias/ReLU).
    h = jnp.dot(embed.astype(jnp.bfloat16), w1_ref[...],
                preferred_element_type=jnp.float32) + b1_ref[...]
    h = jnp.maximum(h, 0.0)
    h = jnp.dot(h.astype(jnp.bfloat16), w2_ref[...],
                preferred_element_type=jnp.float32) + b2_ref[...]
    h = jnp.maximum(h, 0.0)

    # 1-wide head as f32 VPU multiply + last-axis reduction (no N=1 MXU matmul).
    vals = jnp.sum(h * wo_ref[...], axis=-1, keepdims=True)   # (TB, 1)
    out_ref[...] = vals + bo_ref[...]


@functools.partial(jax.jit, static_argnames=("tile_b",))
def cat_pobs_critic(observed, mask, params, *, tile_b=256):
    """observed: (B, F) int, mask: (B, F) {0,1}/bool. Returns (B,) f32 values."""
    table, w1, b1, w2, b2, wo, bo = params
    B, F = observed.shape
    V, D = table.shape
    H1 = w1.shape[1]
    H2 = w2.shape[1]

    observed = observed.astype(jnp.int32)
    mask = mask.astype(jnp.int32)

    # padding_idx=0 semantics: the padding row must contribute nothing to the pool.
    # Table / weights carried in bf16 (MXU-native); kernel accumulates in f32.
    table_q = table.astype(jnp.float32).at[0].set(0.0).astype(jnp.bfloat16)
    w1b = jnp.asarray(w1, jnp.float32).astype(jnp.bfloat16)
    w2b = jnp.asarray(w2, jnp.float32).astype(jnp.bfloat16)
    b1r = jnp.asarray(b1, jnp.float32).reshape(1, H1)
    b2r = jnp.asarray(b2, jnp.float32).reshape(1, H2)
    wo_row = jnp.asarray(wo, jnp.float32).reshape(1, H2)      # (H2, 1) -> (1, H2)
    bo_r = jnp.asarray(bo, jnp.float32).reshape(1, 1)

    # MXU-friendly batch tile (multiple of 128), padded batch, >= 2 grid steps when possible.
    tile_b = max(128, min((tile_b // 128) * 128, _round_up(B, 128)))
    B_pad = _round_up(B, tile_b)
    if B_pad // tile_b == 1 and tile_b >= 256:
        tile_b //= 2                                          # keep both v7x TensorCores busy
    if B_pad != B:
        pad = B_pad - B
        observed = jnp.pad(observed, ((0, pad), (0, 0)))      # padded rows: mask=0 -> idx 0
        mask = jnp.pad(mask, ((0, pad), (0, 0)))

    grid = (B_pad // tile_b,)
    full = lambda i: (0, 0)

    cost = pl.CostEstimate(
        flops=2 * B_pad * (F * V + V * D + D * H1 + H1 * H2 + H2),
        transcendentals=0,
        bytes_accessed=(2 * B_pad * F * 4 + B_pad * 4
                        + V * D * 2 + 2 * (D * H1 + H1 * H2)
                        + 4 * (H1 + H2 + H2 + 1)),
    )

    out = pl.pallas_call(
        _critic_kernel,
        out_shape=jax.ShapeDtypeStruct((B_pad, 1), jnp.float32),
        grid_spec=pltpu.PrefetchScalarGridSpec(
            num_scalar_prefetch=0,
            grid=grid,
            in_specs=[
                pl.BlockSpec((tile_b, F), lambda i: (i, 0)),  # observed tile
                pl.BlockSpec((tile_b, F), lambda i: (i, 0)),  # mask tile
                pl.BlockSpec((V, D), full),                   # embedding table (bf16)
                pl.BlockSpec((D, H1), full),                  # W1 (bf16)
                pl.BlockSpec((1, H1), full),                  # b1
                pl.BlockSpec((H1, H2), full),                 # W2 (bf16)
                pl.BlockSpec((1, H2), full),                  # b2
                pl.BlockSpec((1, H2), full),                  # W_out^T (row vector, f32)
                pl.BlockSpec((1, 1), full),                   # b_out
            ],
            out_specs=pl.BlockSpec((tile_b, 1), lambda i: (i, 0)),
        ),
        compiler_params=pltpu.CompilerParams(
            dimension_semantics=("parallel",)),
        cost_estimate=cost,
    )(observed, mask, table_q, w1b, b1r, w2b, b2r, wo_row, bo_r)

    return out[:B, 0]  # .squeeze(dim=1)


def _reference(observed, mask, params):
    # Same mixed precision as the kernel (bf16 matmul operands, f32 accumulation) so the
    # comparison isolates the kernel logic rather than precision policy.
    table, w1, b1, w2, b2, wo, bo = params
    idx = (observed.astype(jnp.int32) + 1) * (mask != 0).astype(jnp.int32)
    table_q = (table.astype(jnp.float32).at[0].set(0.0)
               .astype(jnp.bfloat16).astype(jnp.float32))
    embed = jnp.take(table_q, idx, axis=0).sum(axis=1)        # (B, D) sum pool
    w1b = jnp.asarray(w1, jnp.float32).astype(jnp.bfloat16)
    w2b = jnp.asarray(w2, jnp.float32).astype(jnp.bfloat16)
    h = jnp.dot(embed.astype(jnp.bfloat16), w1b,
                preferred_element_type=jnp.float32) + b1.reshape(1, -1)
    h = jnp.maximum(h, 0.0)
    h = jnp.dot(h.astype(jnp.bfloat16), w2b,
                preferred_element_type=jnp.float32) + b2.reshape(1, -1)
    h = jnp.maximum(h, 0.0)
    return (h * wo.reshape(1, -1)).sum(axis=-1) + bo.reshape(())


if __name__ == "__main__":
    # small, deterministic shapes (B chosen to exercise batch padding AND 2 grid steps)
    B, F = 300, 8               # batch, number of categorical features
    NUM_EMBEDDINGS = 31         # vocab size per feature
    V = NUM_EMBEDDINGS + 1      # +1 for the padding/"unobserved" index 0
    D = 32                      # config.categorical_embed_dim
    H1, H2 = 32, 32             # config.critic_layers = [32, 32]

    key = jax.random.PRNGKey(0)
    ks = jax.random.split(key, 8)

    observed = jax.random.randint(ks[0], (B, F), -1, NUM_EMBEDDINGS)       # -1..30
    mask = jax.random.bernoulli(ks[1], 0.7, (B, F)).astype(jnp.int32)

    table = 0.1 * jax.random.normal(ks[2], (V, D), jnp.float32)
    table = table.at[0].set(0.0)                                           # padding_idx=0
    w1 = 0.1 * jax.random.normal(ks[3], (D, H1), jnp.float32)
    b1 = jnp.zeros((1, H1), jnp.float32)
    w2 = 0.1 * jax.random.normal(ks[4], (H1, H2), jnp.float32)
    b2 = jnp.zeros((1, H2), jnp.float32)
    wo = 0.1 * jax.random.normal(ks[5], (H2, 1), jnp.float32)
    bo = jnp.zeros((1, 1), jnp.float32)
    params = (table, w1, b1, w2, b2, wo, bo)

    values = cat_pobs_critic(observed, mask, params)
    values = jax.block_until_ready(values)

    ref = _reference(observed, mask, params)
    assert values.shape == (B,), values.shape
    assert jnp.allclose(values, ref, atol=1e-4, rtol=1e-4), \
        float(jnp.max(jnp.abs(values - ref)))

    print("KERNEL_OK")
</pallas_src>

<mosaic_0001>
module attributes {stable_mosaic.version = 11 : i64} {
  func.func @_critic_kernel(%arg0: i32, %arg1: memref<256x8xi32, #tpu.memory_space<vmem>>, %arg2: memref<256x8xi32, #tpu.memory_space<vmem>>, %arg3: memref<32x32xbf16, #tpu.memory_space<vmem>>, %arg4: memref<32x32xbf16, #tpu.memory_space<vmem>>, %arg5: memref<1x32xf32, #tpu.memory_space<vmem>>, %arg6: memref<32x32xbf16, #tpu.memory_space<vmem>>, %arg7: memref<1x32xf32, #tpu.memory_space<vmem>>, %arg8: memref<1x32xf32, #tpu.memory_space<vmem>>, %arg9: memref<1x1xf32, #tpu.memory_space<vmem>>, %arg10: memref<256x1xf32, #tpu.memory_space<vmem>>) attributes {dimension_semantics = [#tpu.dimension_semantics<parallel>], iteration_bounds = array<i64: 2>, scalar_prefetch = 0 : i64, scratch_operands = 0 : i64, tpu.core_type = #tpu.core_type<tc>, window_params = [{transform_indices = @transform_0, window_bounds = array<i64: 256, 8>}, {transform_indices = @transform_1, window_bounds = array<i64: 256, 8>}, {pipeline_mode = #tpu.pipeline_mode<synchronous>, transform_indices = @transform_2, window_bounds = array<i64: 32, 32>}, {pipeline_mode = #tpu.pipeline_mode<synchronous>, transform_indices = @transform_3, window_bounds = array<i64: 32, 32>}, {pipeline_mode = #tpu.pipeline_mode<synchronous>, transform_indices = @transform_4, window_bounds = array<i64: 1, 32>}, {pipeline_mode = #tpu.pipeline_mode<synchronous>, transform_indices = @transform_5, window_bounds = array<i64: 32, 32>}, {pipeline_mode = #tpu.pipeline_mode<synchronous>, transform_indices = @transform_6, window_bounds = array<i64: 1, 32>}, {pipeline_mode = #tpu.pipeline_mode<synchronous>, transform_indices = @transform_7, window_bounds = array<i64: 1, 32>}, {pipeline_mode = #tpu.pipeline_mode<synchronous>, transform_indices = @transform_8, window_bounds = array<i64: 1, 1>}, {transform_indices = @transform_9, window_bounds = array<i64: 256, 1>}]} {
    %c0 = arith.constant 0 : index
    %c0_0 = arith.constant 0 : index
    %0 = vector.load %arg1[%c0, %c0_0] : memref<256x8xi32, #tpu.memory_space<vmem>>, vector<256x8xi32>
    %c0_1 = arith.constant 0 : index
    %c0_2 = arith.constant 0 : index
    %1 = vector.load %arg2[%c0_1, %c0_2] : memref<256x8xi32, #tpu.memory_space<vmem>>, vector<256x8xi32>
    %c1_i32 = arith.constant 1 : i32
    %2 = vector.broadcast %c1_i32 : i32 to vector<256x8xi32>
    %3 = arith.addi %0, %2 : vector<256x8xi32>
    %c0_i32 = arith.constant 0 : i32
    %4 = vector.broadcast %c0_i32 : i32 to vector<256x8xi32>
    %5 = arith.cmpi ne, %1, %4 : vector<256x8xi32>
    %6 = arith.extui %5 : vector<256x8xi1> to vector<256x8xi32>
    %7 = arith.muli %3, %6 : vector<256x8xi32>
    %8 = tpu.iota {dimensions = array<i32: 1>} : vector<256x32xi32>
    %cst = arith.constant 0.000000e+00 : f32
    %9 = vector.broadcast %cst : f32 to vector<256x32xf32>
    %10 = vector.extract_strided_slice %7 {offsets = [0, 0], sizes = [256, 1], strides = [1, 1]} : vector<256x8xi32> to vector<256x1xi32>
    %11 = vector.broadcast %10 : vector<256x1xi32> to vector<256x32xi32>
    %12 = arith.cmpi eq, %11, %8 : vector<256x32xi32>
    %13 = arith.extui %12 : vector<256x32xi1> to vector<256x32xi32>
    %14 = arith.sitofp %13 : vector<256x32xi32> to vector<256x32xf32>
    %15 = arith.addf %9, %14 : vector<256x32xf32>
    %16 = vector.extract_strided_slice %7 {offsets = [0, 1], sizes = [256, 1], strides = [1, 1]} : vector<256x8xi32> to vector<256x1xi32>
    %17 = vector.broadcast %16 : vector<256x1xi32> to vector<256x32xi32>
    %18 = arith.cmpi eq, %17, %8 : vector<256x32xi32>
    %19 = arith.extui %18 : vector<256x32xi1> to vector<256x32xi32>
    %20 = arith.sitofp %19 : vector<256x32xi32> to vector<256x32xf32>
    %21 = arith.addf %15, %20 : vector<256x32xf32>
    %22 = vector.extract_strided_slice %7 {offsets = [0, 2], sizes = [256, 1], strides = [1, 1]} : vector<256x8xi32> to vector<256x1xi32>
    %23 = vector.broadcast %22 : vector<256x1xi32> to vector<256x32xi32>
    %24 = arith.cmpi eq, %23, %8 : vector<256x32xi32>
    %25 = arith.extui %24 : vector<256x32xi1> to vector<256x32xi32>
    %26 = arith.sitofp %25 : vector<256x32xi32> to vector<256x32xf32>
    %27 = arith.addf %21, %26 : vector<256x32xf32>
    %28 = vector.extract_strided_slice %7 {offsets = [0, 3], sizes = [256, 1], strides = [1, 1]} : vector<256x8xi32> to vector<256x1xi32>
    %29 = vector.broadcast %28 : vector<256x1xi32> to vector<256x32xi32>
    %30 = arith.cmpi eq, %29, %8 : vector<256x32xi32>
    %31 = arith.extui %30 : vector<256x32xi1> to vector<256x32xi32>
    %32 = arith.sitofp %31 : vector<256x32xi32> to vector<256x32xf32>
    %33 = arith.addf %27, %32 : vector<256x32xf32>
    %34 = vector.extract_strided_slice %7 {offsets = [0, 4], sizes = [256, 1], strides = [1, 1]} : vector<256x8xi32> to vector<256x1xi32>
    %35 = vector.broadcast %34 : vector<256x1xi32> to vector<256x32xi32>
    %36 = arith.cmpi eq, %35, %8 : vector<256x32xi32>
    %37 = arith.extui %36 : vector<256x32xi1> to vector<256x32xi32>
    %38 = arith.sitofp %37 : vector<256x32xi32> to vector<256x32xf32>
    %39 = arith.addf %33, %38 : vector<256x32xf32>
    %40 = vector.extract_strided_slice %7 {offsets = [0, 5], sizes = [256, 1], strides = [1, 1]} : vector<256x8xi32> to vector<256x1xi32>
    %41 = vector.broadcast %40 : vector<256x1xi32> to vector<256x32xi32>
    %42 = arith.cmpi eq, %41, %8 : vector<256x32xi32>
    %43 = arith.extui %42 : vector<256x32xi1> to vector<256x32xi32>
    %44 = arith.sitofp %43 : vector<256x32xi32> to vector<256x32xf32>
    %45 = arith.addf %39, %44 : vector<256x32xf32>
    %46 = vector.extract_strided_slice %7 {offsets = [0, 6], sizes = [256, 1], strides = [1, 1]} : vector<256x8xi32> to vector<256x1xi32>
    %47 = vector.broadcast %46 : vector<256x1xi32> to vector<256x32xi32>
    %48 = arith.cmpi eq, %47, %8 : vector<256x32xi32>
    %49 = arith.extui %48 : vector<256x32xi1> to vector<256x32xi32>
    %50 = arith.sitofp %49 : vector<256x32xi32> to vector<256x32xf32>
    %51 = arith.addf %45, %50 : vector<256x32xf32>
    %52 = vector.extract_strided_slice %7 {offsets = [0, 7], sizes = [256, 1], strides = [1, 1]} : vector<256x8xi32> to vector<256x1xi32>
    %53 = vector.broadcast %52 : vector<256x1xi32> to vector<256x32xi32>
    %54 = arith.cmpi eq, %53, %8 : vector<256x32xi32>
    %55 = arith.extui %54 : vector<256x32xi1> to vector<256x32xi32>
    %56 = arith.sitofp %55 : vector<256x32xi32> to vector<256x32xf32>
    %57 = arith.addf %51, %56 : vector<256x32xf32>
    %58 = arith.truncf %57 : vector<256x32xf32> to vector<256x32xbf16>
    %c0_3 = arith.constant 0 : index
    %c0_4 = arith.constant 0 : index
    %59 = vector.load %arg3[%c0_3, %c0_4] : memref<32x32xbf16, #tpu.memory_space<vmem>>, vector<32x32xbf16>
    %cst_5 = arith.constant dense<0.000000e+00> : vector<256x32xf32>
    %60 = tpu.matmul %58, %59, %cst_5 {dimension_numbers = #tpu.dot_dimension_numbers<[1], [0], [0], [1], [0, 0, 1, 1], [], []>} : vector<256x32xbf16>, vector<32x32xbf16>, vector<256x32xf32> -> vector<256x32xf32>
    %61 = arith.truncf %60 : vector<256x32xf32> to vector<256x32xbf16>
    %c0_6 = arith.constant 0 : index
    %c0_7 = arith.constant 0 : index
    %62 = vector.load %arg4[%c0_6, %c0_7] : memref<32x32xbf16, #tpu.memory_space<vmem>>, vector<32x32xbf16>
    %cst_8 = arith.constant dense<0.000000e+00> : vector<256x32xf32>
    %63 = tpu.matmul %61, %62, %cst_8 {dimension_numbers = #tpu.dot_dimension_numbers<[1], [0], [0], [1], [0, 0, 1, 1], [], []>} : vector<256x32xbf16>, vector<32x32xbf16>, vector<256x32xf32> -> vector<256x32xf32>
    %c0_9 = arith.constant 0 : index
    %c0_10 = arith.constant 0 : index
    %64 = vector.load %arg5[%c0_9, %c0_10] : memref<1x32xf32, #tpu.memory_space<vmem>>, vector<1x32xf32>
    %65 = vector.broadcast %64 : vector<1x32xf32> to vector<256x32xf32>
    %66 = arith.addf %63, %65 : vector<256x32xf32>
    %cst_11 = arith.constant 0.000000e+00 : f32
    %67 = vector.broadcast %cst_11 : f32 to vector<256x32xf32>
    %68 = arith.maximumf %66, %67 : vector<256x32xf32>
    %69 = arith.truncf %68 : vector<256x32xf32> to vector<256x32xbf16>
    %c0_12 = arith.constant 0 : index
    %c0_13 = arith.constant 0 : index
    %70 = vector.load %arg6[%c0_12, %c0_13] : memref<32x32xbf16, #tpu.memory_space<vmem>>, vector<32x32xbf16>
    %cst_14 = arith.constant dense<0.000000e+00> : vector<256x32xf32>
    %71 = tpu.matmul %69, %70, %cst_14 {dimension_numbers = #tpu.dot_dimension_numbers<[1], [0], [0], [1], [0, 0, 1, 1], [], []>} : vector<256x32xbf16>, vector<32x32xbf16>, vector<256x32xf32> -> vector<256x32xf32>
    %c0_15 = arith.constant 0 : index
    %c0_16 = arith.constant 0 : index
    %72 = vector.load %arg7[%c0_15, %c0_16] : memref<1x32xf32, #tpu.memory_space<vmem>>, vector<1x32xf32>
    %73 = vector.broadcast %72 : vector<1x32xf32> to vector<256x32xf32>
    %74 = arith.addf %71, %73 : vector<256x32xf32>
    %cst_17 = arith.constant 0.000000e+00 : f32
    %75 = vector.broadcast %cst_17 : f32 to vector<256x32xf32>
    %76 = arith.maximumf %74, %75 : vector<256x32xf32>
    %c0_18 = arith.constant 0 : index
    %c0_19 = arith.constant 0 : index
    %77 = vector.load %arg8[%c0_18, %c0_19] : memref<1x32xf32, #tpu.memory_space<vmem>>, vector<1x32xf32>
    %78 = vector.broadcast %77 : vector<1x32xf32> to vector<256x32xf32>
    %79 = arith.mulf %76, %78 : vector<256x32xf32>
    %cst_20 = arith.constant dense<0.000000e+00> : vector<256xf32>
    %80 = vector.multi_reduction <add>, %79, %cst_20 [1] : vector<256x32xf32> to vector<256xf32>
    %81 = vector.shape_cast %80 : vector<256xf32> to vector<256x1xf32>
    %c0_21 = arith.constant 0 : index
    %c0_22 = arith.constant 0 : index
    %82 = vector.load %arg9[%c0_21, %c0_22] : memref<1x1xf32, #tpu.memory_space<vmem>>, vector<1x1xf32>
    %83 = vector.broadcast %82 : vector<1x1xf32> to vector<256x1xf32>
    %84 = arith.addf %81, %83 : vector<256x1xf32>
    %c0_23 = arith.constant 0 : index
    %c0_24 = arith.constant 0 : index
    %85 = vector.load %arg10[%c0_23, %c0_24] : memref<256x1xf32, #tpu.memory_space<vmem>>, vector<256x1xf32>
    tpu.vector_store %arg10[%c0_23, %c0_24], %84 {strides = array<i32>} : memref<256x1xf32, #tpu.memory_space<vmem>>, vector<256x1xf32>,
    return
  }
  func.func @transform_0(%arg0: i32) -> (i32, i32) {
    %c0_i32 = arith.constant 0 : i32
    %c0_i32_0 = arith.constant 0 : i32
    return %arg0, %c0_i32 : i32, i32
  }
  func.func @transform_1(%arg0: i32) -> (i32, i32) {
    %c0_i32 = arith.constant 0 : i32
    %c0_i32_0 = arith.constant 0 : i32
    return %arg0, %c0_i32 : i32, i32
  }
  func.func @transform_2(%arg0: i32) -> (i32, i32) {
    %c0_i32 = arith.constant 0 : i32
    %c0_i32_0 = arith.constant 0 : i32
    %c0_i32_1 = arith.constant 0 : i32
    return %c0_i32, %c0_i32_0 : i32, i32
  }
  func.func @transform_3(%arg0: i32) -> (i32, i32) {
    %c0_i32 = arith.constant 0 : i32
    %c0_i32_0 = arith.constant 0 : i32
    %c0_i32_1 = arith.constant 0 : i32
    return %c0_i32, %c0_i32_0 : i32, i32
  }
  func.func @transform_4(%arg0: i32) -> (i32, i32) {
    %c0_i32 = arith.constant 0 : i32
    %c0_i32_0 = arith.constant 0 : i32
    %c0_i32_1 = arith.constant 0 : i32
    return %c0_i32, %c0_i32_0 : i32, i32
  }
  func.func @transform_5(%arg0: i32) -> (i32, i32) {
    %c0_i32 = arith.constant 0 : i32
    %c0_i32_0 = arith.constant 0 : i32
    %c0_i32_1 = arith.constant 0 : i32
    return %c0_i32, %c0_i32_0 : i32, i32
  }
  func.func @transform_6(%arg0: i32) -> (i32, i32) {
    %c0_i32 = arith.constant 0 : i32
    %c0_i32_0 = arith.constant 0 : i32
    %c0_i32_1 = arith.constant 0 : i32
    return %c0_i32, %c0_i32_0 : i32, i32
  }
  func.func @transform_7(%arg0: i32) -> (i32, i32) {
    %c0_i32 = arith.constant 0 : i32
    %c0_i32_0 = arith.constant 0 : i32
    %c0_i32_1 = arith.constant 0 : i32
    return %c0_i32, %c0_i32_0 : i32, i32
  }
  func.func @transform_8(%arg0: i32) -> (i32, i32) {
    %c0_i32 = arith.constant 0 : i32
    %c0_i32_0 = arith.constant 0 : i32
    %c0_i32_1 = arith.constant 0 : i32
    return %c0_i32, %c0_i32_0 : i32, i32
  }
  func.func @transform_9(%arg0: i32) -> (i32, i32) {
    %c0_i32 = arith.constant 0 : i32
    %c0_i32_0 = arith.constant 0 : i32
    return %arg0, %c0_i32 : i32, i32
  }
}

</mosaic_0001>

<bundles_post_ra>
// kernel: cat_pobs_critic.1
= control target key start
LH: loop header
LB: loop body
LE: loop exit
PB: predicated region body
PF: predicated region fallthrough
CT: control target
= control target key end

     0   :  { %s4103_s11 = smov 0   ;;  %s6334_s0 = inlined_call_operand.vmem [shape: s32[512,8], index: 0, kind: input, shape index: {}]   ;;  %s6335_s1 = inlined_call_operand.vmem [shape: s32[512,8], index: 1, kind: input, shape index: {}]   ;;  %s6336_s2 = inlined_call_operand.vmem [shape: bf16[32,32], index: 2, kind: input, shape index: {}]   ;;  %s6337_s3 = inlined_call_operand.vmem [shape: bf16[32,32], index: 3, kind: input, shape index: {}]   ;;  %s6338_s4 = inlined_call_operand.vmem [shape: f32[1,32], index: 4, kind: input, shape index: {}]   ;;  %s6339_s5 = inlined_call_operand.vmem [shape: bf16[32,32], index: 5, kind: input, shape index: {}]   ;;  %s6340_s6 = inlined_call_operand.vmem [shape: f32[1,32], index: 6, kind: input, shape index: {}]   ;;  %s6341_s7 = inlined_call_operand.vmem [shape: f32[1,32], index: 7, kind: input, shape index: {}]   ;;  %s6342_s8 = inlined_call_operand.<no memory space> [shape: f32[1,1], index: 8, kind: input, shape index: {}]   ;;  %s6343_s9 = inlined_call_operand.vmem [shape: f32[512,1], index: 9, kind: output, shape index: {}]  }
   0x1   :  { %v14_v0 = vstv %s6342_s8 }
   0x2   :  { %15 = vst [vmem:[#allocation2] sm:$0x1] %v14_v0 }
   0x3 LB: > { %s3424_s12 = sadd.s32 4294967295, %s4039_s11   ;;  %p3428_p0 = scmp.ge.s32.totalorder %s4039_s11, 1  ;;  %s4039_s11 = sphi %s4103_s11, %s21_s11  }
   0x4   : > { %p301_p1 = scmp.lt.s32.totalorder %s4039_s11, 3 }
   0x6   : > { %p302_p2 = pnand %p3428_p0, %p301_p1 }
   0x8   : > { %305 = sbr.rel (%p302_p2) target bundleno = 1663 (0x67f), region = 56 }
   0xf   : > { %s3429_s13 = sshll.u32 %s3424_s12, 5  ;;  %v4041_v1 = vmov 0  }
  0x10   : > { %3935 = vset.pattern.permute.xlu1 %v4041_v1  ;;  %3934 = vset.pattern.permute.xlu0 %v4041_v1  ;;  %p343_p3 = scmp.lt.s32.totalorder %s3429_s13, 63 }
  0x12   : > { %s6645_s13 = smov (!%p343_p3, %s3429_s13), 63 }
  0x13   : > { %s4113_s8 = sshll.u32 %s6645_s13, 3 }
  0x14   : > { %s4119_s16 = scalar_lea.vmem %s6334_s0, %s4113_s8  ;;  %s4125_s19 = scalar_lea.vmem %s6335_s1, %s4113_s8 }
  0x15   : > { %v363_v2 = vld [vmem:[%s4119_s16 + $0x10] sm:$0xff]  ;;  %v361_v4 = vld [vmem:[%s4119_s16] sm:$0xff]  ;;  %v364_v8 = vld [vmem:[%s4119_s16 + $0x18] sm:$0xff]  ;;  %s6209_s20 = scalar_lea.vmem %s6343_s9, %s4113_s8 }
  0x16   : > { %v395_v3 = vld [vmem:[%s4125_s19 + $0x10] sm:$0xff]  ;;  %v427_v5 = vadd.s32 1, %v363_v2  ;;  %v393_v6 = vld [vmem:[%s4125_s19] sm:$0xff]  ;;  %v425_v7 = vadd.s32 1, %v361_v4  ;;  %v396_v9 = vld [vmem:[%s4125_s19 + $0x18] sm:$0xff]  ;;  %v428_v11 = vadd.s32 1, %v364_v8 }
  0x17   : > { %vm459_vm0 = vcmp.ne.s32.totalorder %v395_v3, 0  ;;  %vm457_vm1 = vcmp.ne.s32.totalorder %v393_v6, 0  ;;  %vm460_vm2 = vcmp.ne.s32.totalorder %v396_v9, 0  ;;  %v362_v12 = vld [vmem:[%s4119_s16 + $0x8] sm:$0xff]  ;;  %v365_v20 = vld [vmem:[%s4119_s16 + $0x20] sm:$0xff]  ;;  %v400_v24 = vld [vmem:[%s4125_s19 + $0x38] sm:$0xff] }
  0x18   : > { %v491_v10 = vsel %vm459_vm0, 1, %v4041_v1  ;;  %v394_v13 = vld [vmem:[%s4125_s19 + $0x8] sm:$0xff]  ;;  %v489_v15 = vsel %vm457_vm1, 1, %v4041_v1  ;;  %v492_v16 = vsel %vm460_vm2, 1, %v4041_v1  ;;  %v426_v17 = vadd.s32 1, %v362_v12  ;;  %v397_v23 = vld [vmem:[%s4125_s19 + $0x20] sm:$0xff] }
  0x19   : > { %v4136_v14 = vmul.u32 %v491_v10, %v427_v5  ;;  %v366_v18 = vld [vmem:[%s4119_s16 + $0x28] sm:$0xff]  ;;  %v4143_v21 = vmul.u32 %v489_v15, %v425_v7  ;;  %vm458_vm3 = vcmp.ne.s32.totalorder %v394_v13, 0  ;;  %vm461_vm5 = vcmp.ne.s32.totalorder %v397_v23, 0  ;;  %v399_v27 = vld [vmem:[%s4125_s19 + $0x30] sm:$0xff]  ;;  %v368_v31 = vld [vmem:[%s4119_s16 + $0x38] sm:$0xff] }
  0x1a   : > { %v398_v19 = vld [vmem:[%s4125_s19 + $0x28] sm:$0xff]  ;;  %v4145_v22 = vmul.u32 %v492_v16, %v428_v11  ;;  %v490_v25 = vsel %vm458_vm3, 1, %v4041_v1  ;;  %v430_v26 = vadd.s32 1, %v366_v18  ;;  %v429_v30 = vadd.s32 1, %v365_v20  ;;  %v367_v33 = vld [vmem:[%s4119_s16 + $0x30] sm:$0xff]  ;;  %v401_v37 = vld [vmem:[%s4125_s19 + $0x40] sm:$0xff] }
  0x1b   : > { %562 = vperm.xlu1 %3935, %v4136_v14   ;;  %vm462_vm4 = vcmp.ne.s32.totalorder %v398_v19, 0  ;;  %556 = vperm.xlu0 %3934, %v4143_v21   ;;  %v4153_v28 = vmul.u32 %v490_v25, %v426_v17  ;;  %v493_v32 = vsel %vm461_vm5, 1, %v4041_v1  ;;  %vm464_vm6 = vcmp.ne.s32.totalorder %v400_v24, 0  ;;  %v402_v34 = vld [vmem:[%s4125_s19 + $0x48] sm:$0xff]  ;;  %v369_v43 = vld [vmem:[%s4119_s16 + $0x40] sm:$0xff]  ;;  %v404_v44 = vld [vmem:[%s4125_s19 + $0x58] sm:$0xff] }
  0x1c   : > { %v494_v29 = vsel %vm462_vm4, 1, %v4041_v1  ;;  %vm463_vm7 = vcmp.ne.s32.totalorder %v399_v27, 0  ;;  %v432_v36 = vadd.s32 1, %v368_v31  ;;  %v4165_v38 = vmul.u32 %v493_v32, %v429_v30  ;;  %v370_v41 = vld [vmem:[%s4119_s16 + $0x48] sm:$0xff]  ;;  %v403_v47 = vld [vmem:[%s4125_s19 + $0x50] sm:$0xff]  ;;  %v372_v51 = vld [vmem:[%s4119_s16 + $0x58] sm:$0xff] }
  0x1d   : > { %v4161_v35 = vmul.u32 %v494_v29, %v430_v26  ;;  %v496_v39 = vsel %vm464_vm6, 1, %v4041_v1  ;;  %v431_v40 = vadd.s32 1, %v367_v33  ;;  %v495_v42 = vsel %vm463_vm7, 1, %v4041_v1  ;;  %v371_v53 = vld [vmem:[%s4119_s16 + $0x50] sm:$0xff]  ;;  %v406_v54 = vld [vmem:[%s4125_s19 + $0x68] sm:$0xff]  ;;  %v405_v57 = vld [vmem:[%s4125_s19 + $0x60] sm:$0xff] }
  0x1e   : > { %vm466_vm8 = vcmp.ne.s32.totalorder %v402_v34, 0  ;;  %vm465_vm9 = vcmp.ne.s32.totalorder %v401_v37, 0  ;;  %v4173_v45 = vmul.u32 %v496_v39, %v432_v36  ;;  %v434_v46 = vadd.s32 1, %v370_v41  ;;  %v374_v61 = vld [vmem:[%s4119_s16 + $0x68] sm:$0xff]  ;;  %v373_v63 = vld [vmem:[%s4119_s16 + $0x60] sm:$0xff]  ;;  %v408_v0 = vld [vmem:[%s4125_s19 + $0x78] sm:$0xff] }
  0x1f   : > { %565 = vperm.xlu1 %3935, %v4145_v22   ;;  %559 = vperm.xlu0 %3934, %v4153_v28   ;;  %v4177_v48 = vmul.u32 %v495_v42, %v431_v40  ;;  %v498_v49 = vsel %vm466_vm8, 1, %v4041_v1  ;;  %v433_v50 = vadd.s32 1, %v369_v43  ;;  %v497_v52 = vsel %vm465_vm9, 1, %v4041_v1  ;;  %v407_v4 = vld [vmem:[%s4125_s19 + $0x70] sm:$0xff]  ;;  %v376_v8 = vld [vmem:[%s4119_s16 + $0x78] sm:$0xff]  ;;  %v410_v11 = vld [vmem:[%s4125_s19 + $0x88] sm:$0xff] }
  0x20   : > { %vm468_vm10 = vcmp.ne.s32.totalorder %v404_v44, 0  ;;  %vm467_vm11 = vcmp.ne.s32.totalorder %v403_v47, 0  ;;  %v4185_v55 = vmul.u32 %v498_v49, %v434_v46  ;;  %v436_v56 = vadd.s32 1, %v372_v51  ;;  %v375_v10 = vld [vmem:[%s4119_s16 + $0x70] sm:$0xff]  ;;  %v409_v15 = vld [vmem:[%s4125_s19 + $0x80] sm:$0xff]  ;;  %v378_v19 = vld [vmem:[%s4119_s16 + $0x88] sm:$0xff] }
  0x21   : > { %v4189_v58 = vmul.u32 %v497_v52, %v433_v50  ;;  %v500_v59 = vsel %vm468_vm10, 1, %v4041_v1  ;;  %v435_v60 = vadd.s32 1, %v371_v53  ;;  %v499_v62 = vsel %vm467_vm11, 1, %v4041_v1  ;;  %v377_v23 = vld [vmem:[%s4119_s16 + $0x80] sm:$0xff]  ;;  %v412_v24 = vld [vmem:[%s4125_s19 + $0x98] sm:$0xff]  ;;  %v411_v27 = vld [vmem:[%s4125_s19 + $0x90] sm:$0xff] }
  0x22   : > { %vm470_vm12 = vcmp.ne.s32.totalorder %v406_v54, 0  ;;  %vm469_vm13 = vcmp.ne.s32.totalorder %v405_v57, 0  ;;  %v4197_v2 = vmul.u32 %v500_v59, %v436_v56  ;;  %v438_v3 = vadd.s32 1, %v374_v61  ;;  %v380_v32 = vld [vmem:[%s4119_s16 + $0x98] sm:$0xff]  ;;  %v379_v34 = vld [vmem:[%s4119_s16 + $0x90] sm:$0xff]  ;;  %v414_v36 = vld [vmem:[%s4125_s19 + $0xa8] sm:$0xff] }
  0x23   : > { %571 = vperm.xlu1 %3935, %v4161_v35   ;;  %568 = vperm.xlu0 %3934, %v4165_v38   ;;  %v4201_v5 = vmul.u32 %v499_v62, %v435_v60  ;;  %v502_v6 = vsel %vm470_vm12, 1, %v4041_v1  ;;  %v437_v7 = vadd.s32 1, %v373_v63  ;;  %v501_v9 = vsel %vm469_vm13, 1, %v4041_v1  ;;  %v413_v40 = vld [vmem:[%s4125_s19 + $0xa0] sm:$0xff]  ;;  %v382_v44 = vld [vmem:[%s4119_s16 + $0xa8] sm:$0xff]  ;;  %v416_v49 = vld [vmem:[%s4125_s19 + $0xb8] sm:$0xff] }
  0x24   : > { %vm472_vm14 = vcmp.ne.s32.totalorder %v408_v0, 0  ;;  %vm471_vm15 = vcmp.ne.s32.totalorder %v407_v4, 0  ;;  %v4209_v12 = vmul.u32 %v502_v6, %v438_v3  ;;  %v440_v13 = vadd.s32 1, %v376_v8  ;;  %v381_v47 = vld [vmem:[%s4119_s16 + $0xa0] sm:$0xff]  ;;  %v415_v52 = vld [vmem:[%s4125_s19 + $0xb0] sm:$0xff]  ;;  %v384_v57 = vld [vmem:[%s4119_s16 + $0xb8] sm:$0xff] }
  0x25   : > { %v4213_v16 = vmul.u32 %v501_v9, %v437_v7  ;;  %v504_v17 = vsel %vm472_vm14, 1, %v4041_v1  ;;  %v439_v18 = vadd.s32 1, %v375_v10  ;;  %v503_v20 = vsel %vm471_vm15, 1, %v4041_v1  ;;  %v383_v60 = vld [vmem:[%s4119_s16 + $0xb0] sm:$0xff]  ;;  %v418_v61 = vld [vmem:[%s4125_s19 + $0xc8] sm:$0xff]  ;;  %v417_v0 = vld [vmem:[%s4125_s19 + $0xc0] sm:$0xff] }
  0x26   : > { %vm474_vm0 = vcmp.ne.s32.totalorder %v410_v11, 0  ;;  %vm473_vm1 = vcmp.ne.s32.totalorder %v409_v15, 0  ;;  %v4221_v25 = vmul.u32 %v504_v17, %v440_v13  ;;  %v442_v26 = vadd.s32 1, %v378_v19  ;;  %v386_v7 = vld [vmem:[%s4119_s16 + $0xc8] sm:$0xff]  ;;  %v385_v9 = vld [vmem:[%s4119_s16 + $0xc0] sm:$0xff]  ;;  %v420_v10 = vld [vmem:[%s4125_s19 + $0xd8] sm:$0xff] }
  0x27   : > { %577 = vperm.xlu1 %3935, %v4173_v45   ;;  %574 = vperm.xlu0 %3934, %v4177_v48   ;;  %v4225_v29 = vmul.u32 %v503_v20, %v439_v18  ;;  %v506_v30 = vsel %vm474_vm0, 1, %v4041_v1  ;;  %v441_v31 = vadd.s32 1, %v377_v23  ;;  %v505_v33 = vsel %vm473_vm1, 1, %v4041_v1  ;;  %v419_v15 = vld [vmem:[%s4125_s19 + $0xd0] sm:$0xff]  ;;  %v388_v20 = vld [vmem:[%s4119_s16 + $0xd8] sm:$0xff] }
  0x28   : > { %vm476_vm2 = vcmp.ne.s32.totalorder %v412_v24, 0  ;;  %vm475_vm3 = vcmp.ne.s32.totalorder %v411_v27, 0  ;;  %v4233_v37 = vmul.u32 %v506_v30, %v442_v26  ;;  %v444_v39 = vadd.s32 1, %v380_v32  ;;  %v387_v24 = vld [vmem:[%s4119_s16 + $0xd0] sm:$0xff]  ;;  %v422_v26 = vld [vmem:[%s4125_s19 + $0xe8] sm:$0xff] }
  0x29   : > { %v4237_v41 = vmul.u32 %v505_v33, %v441_v31  ;;  %v508_v42 = vsel %vm476_vm2, 1, %v4041_v1  ;;  %v443_v43 = vadd.s32 1, %v379_v34  ;;  %v507_v46 = vsel %vm475_vm3, 1, %v4041_v1  ;;  %v421_v31 = vld [vmem:[%s4125_s19 + $0xe0] sm:$0xff] }
  0x2a   : > { %vm478_vm4 = vcmp.ne.s32.totalorder %v414_v36, 0  ;;  %vm477_vm5 = vcmp.ne.s32.totalorder %v413_v40, 0  ;;  %v4245_v50 = vmul.u32 %v508_v42, %v444_v39  ;;  %v446_v51 = vadd.s32 1, %v382_v44  ;;  %v390_v36 = vld [vmem:[%s4119_s16 + $0xe8] sm:$0xff]  ;;  %v389_v40 = vld [vmem:[%s4119_s16 + $0xe0] sm:$0xff]  ;;  %v424_v42 = vld [vmem:[%s4125_s19 + $0xf8] sm:$0xff] }
  0x2b   : > { %583 = vperm.xlu1 %3935, %v4185_v55   ;;  %580 = vperm.xlu0 %3934, %v4189_v58   ;;  %v4249_v53 = vmul.u32 %v507_v46, %v443_v43  ;;  %v510_v54 = vsel %vm478_vm4, 1, %v4041_v1  ;;  %v445_v56 = vadd.s32 1, %v381_v47  ;;  %v509_v59 = vsel %vm477_vm5, 1, %v4041_v1  ;;  %v423_v46 = vld [vmem:[%s4125_s19 + $0xf0] sm:$0xff] }
  0x2c   : > { %vm480_vm6 = vcmp.ne.s32.totalorder %v416_v49, 0  ;;  %vm479_vm7 = vcmp.ne.s32.totalorder %v415_v52, 0  ;;  %v4257_v62 = vmul.u32 %v510_v54, %v446_v51  ;;  %v448_v63 = vadd.s32 1, %v384_v57  ;;  %v392_v52 = vld [vmem:[%s4119_s16 + $0xf8] sm:$0xff] }
  0x2d   : > { %v4261_v3 = vmul.u32 %v509_v59, %v445_v56  ;;  %v512_v4 = vsel %vm480_vm6, 1, %v4041_v1  ;;  %v447_v6 = vadd.s32 1, %v383_v60  ;;  %v511_v8 = vsel %vm479_vm7, 1, %v4041_v1  ;;  %v391_v56 = vld [vmem:[%s4119_s16 + $0xf0] sm:$0xff] }
  0x2e   : > { %vm482_vm8 = vcmp.ne.s32.totalorder %v418_v61, 0  ;;  %vm481_vm9 = vcmp.ne.s32.totalorder %v417_v0, 0  ;;  %v4269_v11 = vmul.u32 %v512_v4, %v448_v63  ;;  %v450_v13 = vadd.s32 1, %v386_v7 }
  0x2f   : > { %589 = vperm.xlu1 %3935, %v4197_v2   ;;  %586 = vperm.xlu0 %3934, %v4201_v5   ;;  %6395 = vst [vmem:[#allocation3_spill] sm:$0xff] %v4261_v3  ;;  %v4273_v17 = vmul.u32 %v511_v8, %v447_v6  ;;  %v514_v18 = vsel %vm482_vm8, 1, %v4041_v1  ;;  %v449_v19 = vadd.s32 1, %v385_v9  ;;  %v513_v23 = vsel %vm481_vm9, 1, %v4041_v1 }
  0x30   : > { %6396 = vst [vmem:[#allocation4_spill] sm:$0xff] %v4269_v11  ;;  %vm484_vm10 = vcmp.ne.s32.totalorder %v420_v10, 0  ;;  %vm483_vm11 = vcmp.ne.s32.totalorder %v419_v15, 0  ;;  %v4281_v27 = vmul.u32 %v514_v18, %v450_v13  ;;  %v452_v30 = vadd.s32 1, %v388_v20 }
  0x31   : > { %v4285_v32 = vmul.u32 %v513_v23, %v449_v19  ;;  %v516_v33 = vsel %vm484_vm10, 1, %v4041_v1  ;;  %v451_v34 = vadd.s32 1, %v387_v24  ;;  %v515_v39 = vsel %vm483_vm11, 1, %v4041_v1 }
  0x32   : > { %6397 = vst [vmem:[#allocation5_spill] sm:$0xff] %v4281_v27  ;;  %vm486_vm12 = vcmp.ne.s32.totalorder %v422_v26, 0  ;;  %vm485_vm13 = vcmp.ne.s32.totalorder %v421_v31, 0  ;;  %v4293_v43 = vmul.u32 %v516_v33, %v452_v30  ;;  %v454_v44 = vadd.s32 1, %v390_v36 }
  0x33   : > { %595 = vperm.xlu1 %3935, %v4209_v12   ;;  %592 = vperm.xlu0 %3934, %v4213_v16   ;;  %6398 = vst [vmem:[#allocation6_spill] sm:$0xff] %v4285_v32  ;;  %v4297_v47 = vmul.u32 %v515_v39, %v451_v34  ;;  %v518_v49 = vsel %vm486_vm12, 1, %v4041_v1  ;;  %v453_v51 = vadd.s32 1, %v389_v40  ;;  %v517_v54 = vsel %vm485_vm13, 1, %v4041_v1 }
  0x34   : > { %6399 = vst [vmem:[#allocation7_spill] sm:$0xff] %v4293_v43  ;;  %vm488_vm14 = vcmp.ne.s32.totalorder %v424_v42, 0  ;;  %vm487_vm15 = vcmp.ne.s32.totalorder %v423_v46, 0  ;;  %v4304_v57 = vmul.u32 %v518_v49, %v454_v44  ;;  %v456_v59 = vadd.s32 1, %v392_v52 }
  0x35   : > { %6400 = vst [vmem:[#allocation8_spill] sm:$0xff] %v4297_v47  ;;  %v4307_v60 = vmul.u32 %v517_v54, %v453_v51  ;;  %v520_v61 = vsel %vm488_vm14, 1, %v4041_v1  ;;  %v455_v63 = vadd.s32 1, %v391_v56  ;;  %v519_v0 = vsel %vm487_vm15, 1, %v4041_v1 }
  0x36   : > { %6401 = vst [vmem:[#allocation9_spill] sm:$0xff] %v4304_v57  ;;  %v4312_v4 = vmul.u32 %v520_v61, %v456_v59  ;;  %v6344_v7 = vmov 1   ;;  %v6350_v8 = vmov 7   ;;  %v6352_v1 = vmov 2  }
  0x37   : > { %601 = vperm.xlu1 %3935, %v4221_v25   ;;  %598 = vperm.xlu0 %3934, %v4225_v29   ;;  %6402 = vst [vmem:[#allocation10_spill] sm:$0xff] %v4307_v60  ;;  %v4315_v6 = vmul.u32 %v519_v0, %v455_v63  ;;  %v6357_v9 = vmov 3   ;;  %v6348_v24 = vmov 4   ;;  %v6346_v34 = vmov 5  }
  0x38   : > { %6403 = vst [vmem:[#allocation11_spill] sm:$0xff] %v4312_v4  ;;  %v6354_v54 = vmov 6  }
  0x39   : > { %6404 = vst [vmem:[#allocation12_spill] sm:$0xff] %v4315_v6 }
  0x3b   : > { %607 = vperm.xlu1 %3935, %v4233_v37   ;;  %604 = vperm.xlu0 %3934, %v4237_v41  }
  0x3f   : > { %613 = vperm.xlu1 %3935, %v4245_v50   ;;  %610 = vperm.xlu0 %3934, %v4249_v53  }
  0x43   : > { %619 = vperm.xlu1 %3935, %v4257_v62   ;;  %616 = vperm.xlu0 %3934, %v4261_v3  }
  0x47   : > { %625 = vperm.xlu1 %3935, %v4269_v11   ;;  %622 = vperm.xlu0 %3934, %v4273_v17  }
  0x4b   : > { %631 = vperm.xlu1 %3935, %v4281_v27   ;;  %628 = vperm.xlu0 %3934, %v4285_v32  }
  0x4f   : > { %637 = vperm.xlu1 %3935, %v4293_v43   ;;  %634 = vperm.xlu0 %3934, %v4297_v47  }
  0x53   : > { %643 = vperm.xlu1 %3935, %v4304_v57   ;;  %640 = vperm.xlu0 %3934, %v4307_v60  }
  0x57   : > { %649 = vperm.xlu1 %3935, %v4312_v4   ;;  %646 = vperm.xlu0 %3934, %v4315_v6  }
  0x5b   : > { %3936 = vset.pattern.permute.xlu1 %v6344_v7  ;;  %3947 = vset.pattern.permute.xlu0 %v6350_v8 }
  0x5c   : > { %783 = vperm.xlu1 %3936, %v4153_v28   ;;  %2127 = vperm.xlu0 %3947, %v4153_v28  }
  0x60   : > { %786 = vperm.xlu1 %3936, %v4136_v14   ;;  %2130 = vperm.xlu0 %3947, %v4136_v14  }
  0x64   : > { %792 = vperm.xlu1 %3936, %v4165_v38   ;;  %2139 = vperm.xlu0 %3947, %v4161_v35  }
  0x68   : > { %798 = vperm.xlu1 %3936, %v4177_v48   ;;  %2142 = vperm.xlu0 %3947, %v4177_v48  }
  0x6c   : > { %804 = vperm.xlu1 %3936, %v4189_v58   ;;  %2151 = vperm.xlu0 %3947, %v4185_v55  }
  0x70   : > { %810 = vperm.xlu1 %3936, %v4201_v5   ;;  %2154 = vperm.xlu0 %3947, %v4201_v5  }
  0x74   : > { %816 = vperm.xlu1 %3936, %v4213_v16   ;;  %2163 = vperm.xlu0 %3947, %v4209_v12  }
  0x78   : > { %822 = vperm.xlu1 %3936, %v4225_v29   ;;  %2166 = vperm.xlu0 %3947, %v4225_v29  }
  0x7c   : > { %828 = vperm.xlu1 %3936, %v4237_v41   ;;  %2175 = vperm.xlu0 %3947, %v4233_v37  }
  0x80   : > { %834 = vperm.xlu1 %3936, %v4249_v53   ;;  %2178 = vperm.xlu0 %3947, %v4249_v53  }
  0x84   : > { %840 = vperm.xlu1 %3936, %v4261_v3   ;;  %2187 = vperm.xlu0 %3947, %v4257_v62  }
  0x88   : > { %846 = vperm.xlu1 %3936, %v4273_v17   ;;  %2190 = vperm.xlu0 %3947, %v4273_v17  }
  0x8c   : > { %852 = vperm.xlu1 %3936, %v4285_v32   ;;  %4002 = vset.pattern.permute.xlu0 %v6344_v7 }
  0x8d   : > { %780 = vperm.xlu0 %4002, %v4143_v21  }
  0x90   : > { %3937 = vset.pattern.permute.xlu1 %v6352_v1 }
  0x91   : > { %1007 = vperm.xlu1 %3937, %v4153_v28   ;;  %789 = vperm.xlu0 %4002, %v4145_v22  }
  0x95   : > { %1010 = vperm.xlu1 %3937, %v4136_v14   ;;  %795 = vperm.xlu0 %4002, %v4161_v35  }
  0x99   : > { %3938 = vset.pattern.permute.xlu1 %v6357_v9  ;;  %801 = vperm.xlu0 %4002, %v4173_v45  }
  0x9a   : > { %v4355_v10 = vpop.permute.xlu1 %562  ;;  %1228 = vperm.xlu1 %3938, %v4143_v21   ;;  %v4358_v13 = vpop.permute.xlu0 %556 }
  0x9d   : > { %807 = vperm.xlu0 %4002, %v4185_v55  }
  0x9e   : > { %v4361_v15 = vpop.permute.xlu1 %565  ;;  %1234 = vperm.xlu1 %3938, %v4136_v14   ;;  %v4364_v18 = vpop.permute.xlu0 %559 }
  0xa1   : > { %813 = vperm.xlu0 %4002, %v4197_v2  }
  0xa2   : > { %v4367_v19 = vpop.permute.xlu1 %571  ;;  %1237 = vperm.xlu1 %3938, %v4145_v22   ;;  %v4370_v20 = vpop.permute.xlu0 %568 }
  0xa5   : > { %819 = vperm.xlu0 %4002, %v4209_v12  }
  0xa6   : > { %v4373_v23 = vpop.permute.xlu1 %577  ;;  %3939 = vset.pattern.permute.xlu1 %v6348_v24  ;;  %v4377_v26 = vpop.permute.xlu0 %574 }
  0xa7   : > { %1455 = vperm.xlu1 %3939, %v4153_v28  }
  0xa9   : > { %825 = vperm.xlu0 %4002, %v4221_v25  }
  0xaa   : > { %v4380_v30 = vpop.permute.xlu1 %583  ;;  %v4383_v31 = vpop.permute.xlu0 %580 }
  0xab   : > { %1458 = vperm.xlu1 %3939, %v4136_v14  }
  0xad   : > { %831 = vperm.xlu0 %4002, %v4233_v37  }
  0xae   : > { %v4386_v33 = vpop.permute.xlu1 %589  ;;  %v4389_v36 = vpop.permute.xlu0 %586 }
  0xaf   : > { %3940 = vset.pattern.permute.xlu1 %v6346_v34 }
  0xb0   : > { %1676 = vperm.xlu1 %3940, %v4143_v21  }
  0xb1   : > { %837 = vperm.xlu0 %4002, %v4245_v50  }
  0xb2   : > { %v4393_v39 = vpop.permute.xlu1 %595  ;;  %v4395_v40 = vpop.permute.xlu0 %592 }
  0xb3   : > { %6405 = vst [vmem:[#allocation13_spill] sm:$0xff] %v4393_v39  ;;  %6406 = vst [vmem:[#allocation14_spill] sm:$0xff] %v4395_v40  ;;  %v6432_v40 = vmov 5  }
  0xb4   : > { %1682 = vperm.xlu1 %3940, %v4136_v14  }
  0xb5   : > { %843 = vperm.xlu0 %4002, %v4257_v62  }
  0xb6   : > { %v4399_v42 = vpop.permute.xlu1 %601  ;;  %v4401_v44 = vpop.permute.xlu0 %598 }
  0xb7   : > { %6407 = vst [vmem:[#allocation15_spill] sm:$0xff] %v4399_v42  ;;  %6408 = vst [vmem:[#allocation16_spill] sm:$0xff] %v4401_v44 }
  0xb8   : > { %1685 = vperm.xlu1 %3940, %v4145_v22  }
  0xb9   : > { %849 = vperm.xlu0 %4002, %v4269_v11  }
  0xba   : > { %v4405_v46 = vpop.permute.xlu1 %607  ;;  %v4407_v49 = vpop.permute.xlu0 %604 }
  0xbb   : > { %6409 = vst [vmem:[#allocation17_spill] sm:$0xff] %v4405_v46  ;;  %6410 = vst [vmem:[#allocation18_spill] sm:$0xff] %v4407_v49  ;;  %v6429_v46 = vmov 3  }
  0xbc   : > { %3941 = vset.pattern.permute.xlu1 %v6352_v1 }
  0xbd   : > { %1019 = vperm.xlu1 %3941, %v4161_v35   ;;  %861 = vperm.xlu0 %4002, %v4293_v43  }
  0xbe   : > { %v4412_v51 = vpop.permute.xlu1 %613  ;;  %v4414_v52 = vpop.permute.xlu0 %610 }
  0xbf   : > { %6411 = vst [vmem:[#allocation19_spill] sm:$0xff] %v4412_v51  ;;  %6412 = vst [vmem:[#allocation20_spill] sm:$0xff] %v4414_v52 }
  0xc1   : > { %3942 = vset.pattern.permute.xlu1 %v6354_v54  ;;  %867 = vperm.xlu0 %4002, %v4304_v57  }
  0xc2   : > { %v4418_v56 = vpop.permute.xlu1 %619  ;;  %1900 = vperm.xlu1 %3942, %v4143_v21   ;;  %v4421_v59 = vpop.permute.xlu0 %616 }
  0xc3   : > { %6413 = vst [vmem:[#allocation21_spill] sm:$0xff] %v4418_v56  ;;  %v6426_v56 = vmov 4  }
  0xc5   : > { %870 = vperm.xlu0 %4002, %v4315_v6  }
  0xc6   : > { %v4424_v61 = vpop.permute.xlu1 %625  ;;  %3943 = vset.pattern.permute.xlu1 %v6352_v1  ;;  %v4428_v63 = vpop.permute.xlu0 %622 }
  0xc7   : > { %6414 = vst [vmem:[#allocation22_spill] sm:$0xff] %v4424_v61  ;;  %1022 = vperm.xlu1 %3943, %v4177_v48   ;;  %6415 = vst [vmem:[#allocation23_spill] sm:$0xff] %v4428_v63 }
  0xc9   : > { %4007 = vset.pattern.permute.xlu0 %v6352_v1 }
  0xca   : > { %v4431_v0 = vpop.permute.xlu1 %631  ;;  %1004 = vperm.xlu0 %4007, %v4143_v21   ;;  %v4435_v7 = vpop.permute.xlu0 %628 }
  0xcb   : > { %6416 = vst [vmem:[#allocation24_spill] sm:$0xff] %v4431_v0  ;;  %1025 = vperm.xlu1 %3943, %v4173_v45   ;;  %6417 = vst [vmem:[#allocation25_spill] sm:$0xff] %v4435_v7 }
  0xce   : > { %v4437_v34 = vpop.permute.xlu1 %637  ;;  %1013 = vperm.xlu0 %4007, %v4145_v22   ;;  %v4441_v24 = vpop.permute.xlu0 %634 }
  0xcf   : > { %6418 = vst [vmem:[#allocation26_spill] sm:$0xff] %v4437_v34  ;;  %3944 = vset.pattern.permute.xlu1 %v6354_v54  ;;  %6419 = vst [vmem:[#allocation27_spill] sm:$0xff] %v4441_v24  ;;  %v6424_v54 = vmov 7  }
  0xd0   : > { %1909 = vperm.xlu1 %3944, %v4145_v22  }
  0xd2   : > { %v4444_v8 = vpop.permute.xlu1 %643  ;;  %1016 = vperm.xlu0 %4007, %v4165_v38   ;;  %v4447_v1 = vpop.permute.xlu0 %640 }
  0xd3   : > { %6420 = vst [vmem:[#allocation28_spill] sm:$0xff] %v4444_v8  ;;  %6421 = vst [vmem:[#allocation29_spill] sm:$0xff] %v4447_v1 }
  0xd4   : > { %3945 = vset.pattern.permute.xlu1 %v6357_v9 }
  0xd5   : > { %1243 = vperm.xlu1 %3945, %v4161_v35  }
  0xd6   : > { %v4451_v0 = vpop.permute.xlu1 %649  ;;  %1028 = vperm.xlu0 %4007, %v4189_v58   ;;  %v4454_v7 = vpop.permute.xlu0 %646 }
  0xd7   : > { %6422 = vst [vmem:[#allocation30_spill] sm:$0xff] %v4451_v0  ;;  %6423 = vst [vmem:[#allocation31_spill] sm:$0xff] %v4454_v7 }
  0xd9   : > { %3946 = vset.pattern.permute.xlu1 %v6424_v54 }
  0xda   : > { %2124 = vperm.xlu1 %3946, %v4143_v21   ;;  %1040 = vperm.xlu0 %4007, %v4213_v16  }
  0xdb   : > { %v4459_v8 = vpop.permute.xlu1 %783  ;;  %v4461_v24 = vpop.permute.xlu0 %2127 }
  0xde   : > { %3948 = vset.pattern.permute.xlu1 %v6357_v9  ;;  %1052 = vperm.xlu0 %4007, %v4237_v41  }
  0xdf   : > { %v4465_v1 = vpop.permute.xlu1 %786  ;;  %1246 = vperm.xlu1 %3948, %v4177_v48   ;;  %v4468_v0 = vpop.permute.xlu0 %2130 }
  0xe2   : > { %1064 = vperm.xlu0 %4007, %v4261_v3  }
  0xe3   : > { %v4471_v7 = vpop.permute.xlu1 %792  ;;  %1249 = vperm.xlu1 %3948, %v4173_v45   ;;  %v4474_v34 = vpop.permute.xlu0 %2139 }
  0xe6   : > { %1076 = vperm.xlu0 %4007, %v4285_v32  }
  0xe7   : > { %v4477_v61 = vpop.permute.xlu1 %798  ;;  %3949 = vset.pattern.permute.xlu1 %v6424_v54  ;;  %v4481_v9 = vpop.permute.xlu0 %2142 }
  0xe8   : > { %2133 = vperm.xlu1 %3949, %v4145_v22   ;;  %6425 = vst [vmem:[#allocation32_spill] sm:$0xff] %v4481_v9 }
  0xea   : > { %1091 = vperm.xlu0 %4007, %v4304_v57  }
  0xeb   : > { %v4484_v63 = vpop.permute.xlu1 %804  ;;  %v4487_v51 = vpop.permute.xlu0 %2151 }
  0xec   : > { %3950 = vset.pattern.permute.xlu1 %v6426_v56  ;;  %6427 = vst [vmem:[#allocation33_spill] sm:$0xff] %v4487_v51 }
  0xed   : > { %1467 = vperm.xlu1 %3950, %v4161_v35  }
  0xee   : > { %1094 = vperm.xlu0 %4007, %v4315_v6  }
  0xef   : > { %v4491_v52 = vpop.permute.xlu1 %810  ;;  %v4493_v49 = vpop.permute.xlu0 %2154 }
  0xf0   : > { %6428 = vst [vmem:[#allocation34_spill] sm:$0xff] %v4493_v49 }
  0xf1   : > { %1470 = vperm.xlu1 %3950, %v4177_v48  }
  0xf2   : > { %4012 = vset.pattern.permute.xlu0 %v6429_v46 }
  0xf3   : > { %v4497_v42 = vpop.permute.xlu1 %816  ;;  %1231 = vperm.xlu0 %4012, %v4153_v28   ;;  %v4500_v44 = vpop.permute.xlu0 %2163 }
  0xf4   : > { %6430 = vst [vmem:[#allocation35_spill] sm:$0xff] %v4497_v42  ;;  %6431 = vst [vmem:[#allocation36_spill] sm:$0xff] %v4500_v44 }
  0xf5   : > { %3951 = vset.pattern.permute.xlu1 %v6432_v40 }
  0xf6   : > { %1688 = vperm.xlu1 %3951, %v4165_v38  }
  0xf7   : > { %v4504_v39 = vpop.permute.xlu1 %822  ;;  %1240 = vperm.xlu0 %4012, %v4165_v38   ;;  %v4507_v27 = vpop.permute.xlu0 %2166 }
  0xf8   : > { %6433 = vst [vmem:[#allocation37_spill] sm:$0xff] %v4504_v39  ;;  %6434 = vst [vmem:[#allocation38_spill] sm:$0xff] %v4507_v27  ;;  %v6439_v39 = vmov 2  }
  0xfa   : > { %1694 = vperm.xlu1 %3951, %v4177_v48  }
  0xfb   : > { %v4510_v49 = vpop.permute.xlu1 %828  ;;  %1252 = vperm.xlu0 %4012, %v4189_v58   ;;  %v4513_v42 = vpop.permute.xlu0 %2175 }
  0xfc   : > { %6435 = vst [vmem:[#allocation39_spill] sm:$0xff] %v4510_v49  ;;  %6436 = vst [vmem:[#allocation40_spill] sm:$0xff] %v4513_v42  ;;  %v6443_v42 = vmov 6  }
  0xfe   : > { %1697 = vperm.xlu1 %3951, %v4173_v45  }
  0xff   : > { %v4516_v44 = vpop.permute.xlu1 %834  ;;  %1264 = vperm.xlu0 %4012, %v4213_v16   ;;  %v4519_v51 = vpop.permute.xlu0 %2178 }
 0x100   : > { %6437 = vst [vmem:[#allocation41_spill] sm:$0xff] %v4516_v44  ;;  %6438 = vst [vmem:[#allocation42_spill] sm:$0xff] %v4519_v51 }
 0x102   : > { %3952 = vset.pattern.permute.xlu1 %v6439_v39 }
 0x103   : > { %v4522_v9 = vpop.permute.xlu1 %840  ;;  %1031 = vperm.xlu1 %3952, %v4185_v55   ;;  %1276 = vperm.xlu0 %4012, %v4237_v41   ;;  %v4526_v49 = vpop.permute.xlu0 %2187 }
 0x104   : > { %6440 = vst [vmem:[#allocation43_spill] sm:$0xff] %v4522_v9  ;;  %6441 = vst [vmem:[#allocation44_spill] sm:$0xff] %v4526_v49 }
 0x107   : > { %v4528_v27 = vpop.permute.xlu1 %846  ;;  %3953 = vset.pattern.permute.xlu1 %v6443_v42  ;;  %1288 = vperm.xlu0 %4012, %v4261_v3   ;;  %v4533_v44 = vpop.permute.xlu0 %2190 }
 0x108   : > { %6442 = vst [vmem:[#allocation45_spill] sm:$0xff] %v4528_v27  ;;  %1912 = vperm.xlu1 %3953, %v4165_v38   ;;  %6444 = vst [vmem:[#allocation46_spill] sm:$0xff] %v4533_v44 }
 0x10b   : > { %v4535_v51 = vpop.permute.xlu1 %852  ;;  %1300 = vperm.xlu0 %4012, %v4285_v32  }
 0x10c   : > { %6445 = vst [vmem:[#allocation47_spill] sm:$0xff] %v4535_v51  ;;  %3954 = vset.pattern.permute.xlu1 %v6439_v39  ;;  %v4539_v9 = vpop.permute.xlu0 %780 }
 0x10d   : > { %6446 = vst [vmem:[#allocation48_spill] sm:$0xff] %v4539_v9  ;;  %1034 = vperm.xlu1 %3954, %v4201_v5  }
 0x10f   : > { %1315 = vperm.xlu0 %4012, %v4304_v57  }
 0x110   : > { %v4543_v49 = vpop.permute.xlu1 %1007  ;;  %v4545_v27 = vpop.permute.xlu0 %789 }
 0x111   : > { %6447 = vst [vmem:[#allocation49_spill] sm:$0xff] %v4543_v49  ;;  %1037 = vperm.xlu1 %3954, %v4197_v2  }
 0x113   : > { %1318 = vperm.xlu0 %4012, %v4315_v6  }
 0x114   : > { %v4549_v44 = vpop.permute.xlu1 %1010  ;;  %v4551_v51 = vpop.permute.xlu0 %795 }
 0x115   : > { %6448 = vst [vmem:[#allocation50_spill] sm:$0xff] %v4551_v51  ;;  %3955 = vset.pattern.permute.xlu1 %v6443_v42 }
 0x116   : > { %1921 = vperm.xlu1 %3955, %v4173_v45  }
 0x117   : > { %4017 = vset.pattern.permute.xlu0 %v6426_v56 }
 0x118   : > { %1452 = vperm.xlu0 %4017, %v4143_v21   ;;  %v4557_v9 = vpop.permute.xlu0 %801 }
 0x119   : > { %6449 = vst [vmem:[#allocation51_spill] sm:$0xff] %v4557_v9  ;;  %v4559_v49 = vpop.permute.xlu1 %1228 }
 0x11a   : > { %6450 = vst [vmem:[#allocation52_spill] sm:$0xff] %v4559_v49  ;;  %3956 = vset.pattern.permute.xlu1 %v6429_v46 }
 0x11b   : > { %1255 = vperm.xlu1 %3956, %v4185_v55  }
 0x11c   : > { %1461 = vperm.xlu0 %4017, %v4145_v22   ;;  %v4564_v6 = vpop.permute.xlu0 %807 }
 0x11d   : > { %v4566_v51 = vpop.permute.xlu1 %1234 }
 0x11e   : > { %6451 = vst [vmem:[#allocation53_spill] sm:$0xff] %v4566_v51 }
 0x11f   : > { %3957 = vset.pattern.permute.xlu1 %v6424_v54 }
 0x120   : > { %2136 = vperm.xlu1 %3957, %v4165_v38   ;;  %1464 = vperm.xlu0 %4017, %v4165_v38   ;;  %v4571_v21 = vpop.permute.xlu0 %813 }
 0x121   : > { %v4573_v9 = vpop.permute.xlu1 %1237 }
 0x122   : > { %6452 = vst [vmem:[#allocation54_spill] sm:$0xff] %v4573_v9 }
 0x124   : > { %3958 = vset.pattern.permute.xlu1 %v6429_v46  ;;  %1473 = vperm.xlu0 %4017, %v4173_v45   ;;  %v4577_v49 = vpop.permute.xlu0 %819 }
 0x125   : > { %6453 = vst [vmem:[#allocation55_spill] sm:$0xff] %v4577_v49  ;;  %1258 = vperm.xlu1 %3958, %v4201_v5  }
 0x126   : > { %v4580_v22 = vpop.permute.xlu1 %1455 }
 0x127   : > { %6454 = vst [vmem:[#allocation56_spill] sm:$0xff] %v4580_v22 }
 0x128   : > { %1476 = vperm.xlu0 %4017, %v4189_v58   ;;  %v4583_v51 = vpop.permute.xlu0 %825 }
 0x129   : > { %6455 = vst [vmem:[#allocation57_spill] sm:$0xff] %v4583_v51  ;;  %1261 = vperm.xlu1 %3958, %v4197_v2  }
 0x12a   : > { %v4586_v38 = vpop.permute.xlu1 %1458 }
 0x12b   : > { %6456 = vst [vmem:[#allocation58_spill] sm:$0xff] %v4586_v38 }
 0x12c   : > { %1485 = vperm.xlu0 %4017, %v4197_v2   ;;  %v4589_v9 = vpop.permute.xlu0 %831 }
 0x12d   : > { %6457 = vst [vmem:[#allocation59_spill] sm:$0xff] %v4589_v9  ;;  %3959 = vset.pattern.permute.xlu1 %v6424_v54 }
 0x12e   : > { %2145 = vperm.xlu1 %3959, %v4173_v45  }
 0x12f   : > { %v4593_v49 = vpop.permute.xlu1 %1676 }
 0x130   : > { %6458 = vst [vmem:[#allocation60_spill] sm:$0xff] %v4593_v49  ;;  %1488 = vperm.xlu0 %4017, %v4213_v16   ;;  %v4596_v22 = vpop.permute.xlu0 %837 }
 0x131   : > { %6459 = vst [vmem:[#allocation61_spill] sm:$0xff] %v4596_v22 }
 0x132   : > { %3960 = vset.pattern.permute.xlu1 %v6426_v56 }
 0x133   : > { %1479 = vperm.xlu1 %3960, %v4185_v55   ;;  %v4600_v51 = vpop.permute.xlu1 %1682 }
 0x134   : > { %6460 = vst [vmem:[#allocation62_spill] sm:$0xff] %v4600_v51  ;;  %1497 = vperm.xlu0 %4017, %v4221_v25   ;;  %v4603_v38 = vpop.permute.xlu0 %843 }
 0x135   : > { %6461 = vst [vmem:[#allocation63_spill] sm:$0xff] %v4603_v38 }
 0x137   : > { %1482 = vperm.xlu1 %3960, %v4201_v5   ;;  %v4606_v9 = vpop.permute.xlu1 %1685 }
 0x138   : > { %6462 = vst [vmem:[#allocation64_spill] sm:$0xff] %v4606_v9  ;;  %1500 = vperm.xlu0 %4017, %v4237_v41   ;;  %v4609_v45 = vpop.permute.xlu0 %849 }
 0x139   : > { %6463 = vst [vmem:[#allocation65_spill] sm:$0xff] %v4609_v45 }
 0x13b   : > { %3961 = vset.pattern.permute.xlu1 %v6432_v40 }
 0x13c   : > { %1700 = vperm.xlu1 %3961, %v4189_v58   ;;  %v4613_v22 = vpop.permute.xlu1 %1019  ;;  %1509 = vperm.xlu0 %4017, %v4245_v50   ;;  %v4616_v49 = vpop.permute.xlu0 %861 }
 0x13d   : > { %6464 = vst [vmem:[#allocation66_spill] sm:$0xff] %v4613_v22  ;;  %6465 = vst [vmem:[#allocation67_spill] sm:$0xff] %v4616_v49 }
 0x140   : > { %1706 = vperm.xlu1 %3961, %v4201_v5   ;;  %1512 = vperm.xlu0 %4017, %v4261_v3   ;;  %v4620_v38 = vpop.permute.xlu0 %867 }
 0x141   : > { %6466 = vst [vmem:[#allocation68_spill] sm:$0xff] %v4620_v38  ;;  %v4622_v9 = vpop.permute.xlu1 %1900 }
 0x142   : > { %6467 = vst [vmem:[#allocation69_spill] sm:$0xff] %v4622_v9 }
 0x144   : > { %1709 = vperm.xlu1 %3961, %v4197_v2   ;;  %1521 = vperm.xlu0 %4017, %v4269_v11   ;;  %v4626_v45 = vpop.permute.xlu0 %870 }
 0x145   : > { %6468 = vst [vmem:[#allocation70_spill] sm:$0xff] %v4626_v45 }
 0x146   : > { %v4628_v51 = vpop.permute.xlu1 %1022 }
 0x148   : > { %3962 = vset.pattern.permute.xlu1 %v6439_v39  ;;  %1524 = vperm.xlu0 %4017, %v4285_v32  }
 0x149   : > { %1043 = vperm.xlu1 %3962, %v4209_v12   ;;  %v4633_v49 = vpop.permute.xlu0 %1004 }
 0x14a   : > { %v4635_v22 = vpop.permute.xlu1 %1025 }
 0x14b   : > { %6469 = vst [vmem:[#allocation71_spill] sm:$0xff] %v4635_v22 }
 0x14c   : > { %1533 = vperm.xlu0 %4017, %v4293_v43  }
 0x14d   : > { %3963 = vset.pattern.permute.xlu1 %v6443_v42  ;;  %v4639_v38 = vpop.permute.xlu0 %1013 }
 0x14e   : > { %1924 = vperm.xlu1 %3963, %v4189_v58  }
 0x14f   : > { %v4642_v45 = vpop.permute.xlu1 %1909 }
 0x150   : > { %6470 = vst [vmem:[#allocation72_spill] sm:$0xff] %v4642_v45  ;;  %1539 = vperm.xlu0 %4017, %v4304_v57  }
 0x151   : > { %v4645_v11 = vpop.permute.xlu0 %1016 }
 0x152   : > { %6471 = vst [vmem:[#allocation73_spill] sm:$0xff] %v4645_v11  ;;  %3964 = vset.pattern.permute.xlu1 %v6439_v39 }
 0x153   : > { %1046 = vperm.xlu1 %3964, %v4225_v29  }
 0x154   : > { %v4649_v32 = vpop.permute.xlu1 %1243  ;;  %4021 = vset.pattern.permute.xlu0 %v6432_v40 }
 0x155   : > { %6472 = vst [vmem:[#allocation74_spill] sm:$0xff] %v4649_v32  ;;  %1679 = vperm.xlu0 %4021, %v4153_v28   ;;  %v4653_v43 = vpop.permute.xlu0 %1028 }
 0x156   : > { %6473 = vst [vmem:[#allocation75_spill] sm:$0xff] %v4653_v43 }
 0x157   : > { %1049 = vperm.xlu1 %3964, %v4221_v25  }
 0x159   : > { %v4656_v9 = vpop.permute.xlu1 %2124  ;;  %1691 = vperm.xlu0 %4021, %v4161_v35   ;;  %v4659_v45 = vpop.permute.xlu0 %1040 }
 0x15a   : > { %6474 = vst [vmem:[#allocation76_spill] sm:$0xff] %v4656_v9  ;;  %6475 = vst [vmem:[#allocation77_spill] sm:$0xff] %v4659_v45 }
 0x15b   : > { %3965 = vset.pattern.permute.xlu1 %v6443_v42 }
 0x15c   : > { %1933 = vperm.xlu1 %3965, %v4197_v2  }
 0x15d   : > { %1703 = vperm.xlu0 %4021, %v4185_v55   ;;  %v4664_v32 = vpop.permute.xlu0 %1052 }
 0x15e   : > { %6476 = vst [vmem:[#allocation78_spill] sm:$0xff] %v4664_v32  ;;  %v4666_v11 = vpop.permute.xlu1 %1246 }
 0x15f   : > { %6477 = vst [vmem:[#allocation79_spill] sm:$0xff] %v4666_v11 }
 0x160   : > { %3966 = vset.pattern.permute.xlu1 %v6429_v46 }
 0x161   : > { %1267 = vperm.xlu1 %3966, %v4209_v12   ;;  %1715 = vperm.xlu0 %4021, %v4209_v12   ;;  %v4671_v9 = vpop.permute.xlu0 %1064 }
 0x162   : > { %v4673_v43 = vpop.permute.xlu1 %1249 }
 0x163   : > { %6478 = vst [vmem:[#allocation80_spill] sm:$0xff] %v4673_v43 }
 0x165   : > { %3967 = vset.pattern.permute.xlu1 %v6424_v54  ;;  %1727 = vperm.xlu0 %4021, %v4233_v37   ;;  %v4677_v45 = vpop.permute.xlu0 %1076 }
 0x166   : > { %6479 = vst [vmem:[#allocation81_spill] sm:$0xff] %v4677_v45  ;;  %2148 = vperm.xlu1 %3967, %v4189_v58  }
 0x167   : > { %v4680_v32 = vpop.permute.xlu1 %2133 }
 0x168   : > { %6480 = vst [vmem:[#allocation82_spill] sm:$0xff] %v4680_v32 }
 0x169   : > { %1736 = vperm.xlu0 %4021, %v4261_v3   ;;  %v4683_v11 = vpop.permute.xlu0 %1091 }
 0x16a   : > { %6481 = vst [vmem:[#allocation83_spill] sm:$0xff] %v4683_v11  ;;  %3968 = vset.pattern.permute.xlu1 %v6429_v46 }
 0x16b   : > { %1270 = vperm.xlu1 %3968, %v4225_v29  }
 0x16c   : > { %v4687_v22 = vpop.permute.xlu1 %1467 }
 0x16d   : > { %1754 = vperm.xlu0 %4021, %v4297_v47   ;;  %v4690_v43 = vpop.permute.xlu0 %1094 }
 0x16e   : > { %6482 = vst [vmem:[#allocation84_spill] sm:$0xff] %v4690_v43 }
 0x16f   : > { %1273 = vperm.xlu1 %3968, %v4221_v25  }
 0x170   : > { %v4693_v45 = vpop.permute.xlu1 %1470 }
 0x171   : > { %1760 = vperm.xlu0 %4021, %v4307_v60  }
 0x172   : > { %v4696_v58 = vpop.permute.xlu0 %1231 }
 0x173   : > { %3969 = vset.pattern.permute.xlu1 %v6424_v54 }
 0x174   : > { %2157 = vperm.xlu1 %3969, %v4197_v2  }
 0x175   : > { %v4700_v11 = vpop.permute.xlu1 %1688  ;;  %1769 = vperm.xlu0 %4021, %v4312_v4  }
 0x176   : > { %6483 = vst [vmem:[#allocation85_spill] sm:$0xff] %v4700_v11  ;;  %v4703_v3 = vpop.permute.xlu0 %1240  ;;  %v4027_v11 = vld [vmem:[%s6336_s2] sm:$0xff]  }
 0x177   : > { %6484 = vst [vmem:[#allocation86_spill] sm:$0xff] %v4703_v3  ;;  %3805 = vmatprep.subr.bf16.mxu0 %v4027_v11  ;;  %3913 = vmatprep.subr.bf16.mxu1 %v4027_v11 }
 0x178   : > { %3970 = vset.pattern.permute.xlu1 %v6426_v56  ;;  %3806 = vmatpush3.bf16.msra.mxu0 %v4027_v11 }
 0x179   : > { %1491 = vperm.xlu1 %3970, %v4209_v12   ;;  %v4707_v43 = vpop.permute.xlu1 %1694  ;;  %4023 = vset.pattern.permute.xlu0 %v6443_v42 }
 0x17a   : > { %1903 = vperm.xlu0 %4023, %v4153_v28   ;;  %v4711_v32 = vpop.permute.xlu0 %1252  ;;  %v4028_v28 = vld [vmem:[%s6336_s2 + $0x8] sm:$0xff]   ;;  %3915 = vmatpush3.bf16.msra.mxu1 %v4027_v11 }
 0x17b   : > { %6485 = vst [vmem:[#allocation87_spill] sm:$0xff] %v4711_v32  ;;  %3807 = vmatprep.subr.bf16.mxu0 %v4028_v28  ;;  %3914 = vmatprep.subr.bf16.mxu1 %v4028_v28 }
 0x17c   : > { %3808 = vmatpush3.bf16.msra.mxu0 %v4028_v28 }
 0x17d   : > { %1494 = vperm.xlu1 %3970, %v4225_v29   ;;  %v4714_v2 = vpop.permute.xlu1 %1697 }
 0x17e   : > { %6486 = vst [vmem:[#allocation88_spill] sm:$0xff] %v4714_v2  ;;  %1906 = vperm.xlu0 %4023, %v4136_v14   ;;  %v4720_v3 = vpop.permute.xlu0 %1264  ;;  %3916 = vmatpush3.bf16.msra.mxu1 %v4028_v28 }
 0x17f   : > { %6487 = vst [vmem:[#allocation89_spill] sm:$0xff] %v4720_v3 }
 0x181   : > { %3971 = vset.pattern.permute.xlu1 %v6432_v40 }
 0x182   : > { %1712 = vperm.xlu1 %3971, %v4213_v16   ;;  %v4727_v2 = vpop.permute.xlu1 %1031  ;;  %1915 = vperm.xlu0 %4023, %v4161_v35   ;;  %v4730_v32 = vpop.permute.xlu0 %1276 }
 0x183   : > { %6488 = vst [vmem:[#allocation90_spill] sm:$0xff] %v4730_v32 }
 0x186   : > { %1718 = vperm.xlu1 %3971, %v4225_v29   ;;  %1918 = vperm.xlu0 %4023, %v4177_v48   ;;  %v4734_v14 = vpop.permute.xlu0 %1288 }
 0x187   : > { %v4736_v3 = vpop.permute.xlu1 %1912 }
 0x188   : > { %6489 = vst [vmem:[#allocation91_spill] sm:$0xff] %v4736_v3 }
 0x18a   : > { %1721 = vperm.xlu1 %3971, %v4221_v25   ;;  %1927 = vperm.xlu0 %4023, %v4185_v55   ;;  %v4740_v11 = vpop.permute.xlu0 %1300 }
 0x18b   : > { %6490 = vst [vmem:[#allocation92_spill] sm:$0xff] %v4740_v11 }
 0x18c   : > { %v4742_v35 = vpop.permute.xlu1 %1034 }
 0x18e   : > { %3972 = vset.pattern.permute.xlu1 %v6439_v39  ;;  %1930 = vperm.xlu0 %4023, %v4201_v5   ;;  %v4746_v28 = vpop.permute.xlu0 %1315 }
 0x18f   : > { %6491 = vst [vmem:[#allocation93_spill] sm:$0xff] %v4746_v28  ;;  %1055 = vperm.xlu1 %3972, %v4233_v37  }
 0x190   : > { %v4749_v48 = vpop.permute.xlu1 %1037 }
 0x192   : > { %1939 = vperm.xlu0 %4023, %v4209_v12   ;;  %v4753_v32 = vpop.permute.xlu0 %1318 }
 0x193   : > { %3973 = vset.pattern.permute.xlu1 %v6443_v42  ;;  %6492 = vst [vmem:[#allocation94_spill] sm:$0xff] %v4753_v32 }
 0x194   : > { %1936 = vperm.xlu1 %3973, %v4213_v16  }
 0x195   : > { %v4756_v55 = vpop.permute.xlu1 %1921 }
 0x196   : > { %6493 = vst [vmem:[#allocation95_spill] sm:$0xff] %v4756_v55  ;;  %1942 = vperm.xlu0 %4023, %v4225_v29  }
 0x197   : > { %v4759_v11 = vpop.permute.xlu0 %1452 }
 0x198   : > { %3974 = vset.pattern.permute.xlu1 %v6439_v39 }
 0x199   : > { %1058 = vperm.xlu1 %3974, %v4249_v53  }
 0x19a   : > { %v4763_v5 = vpop.permute.xlu1 %1255  ;;  %1951 = vperm.xlu0 %4023, %v4233_v37  }
 0x19b   : > { %6494 = vst [vmem:[#allocation96_spill] sm:$0xff] %v4763_v5  ;;  %v4766_v12 = vpop.permute.xlu0 %1461 }
 0x19d   : > { %1061 = vperm.xlu1 %3974, %v4245_v50  }
 0x19e   : > { %1954 = vperm.xlu0 %4023, %v4249_v53  }
 0x19f   : > { %v4769_v32 = vpop.permute.xlu1 %2136  ;;  %v4772_v28 = vpop.permute.xlu0 %1464 }
 0x1a0   : > { %6495 = vst [vmem:[#allocation97_spill] sm:$0xff] %v4769_v32 }
 0x1a1   : > { %3975 = vset.pattern.permute.xlu1 %v6443_v42 }
 0x1a2   : > { %1945 = vperm.xlu1 %3975, %v4221_v25   ;;  %1963 = vperm.xlu0 %4023, %v4257_v62  }
 0x1a3   : > { %v4777_v29 = vpop.permute.xlu0 %1473 }
 0x1a4   : > { %6496 = vst [vmem:[#allocation98_spill] sm:$0xff] %v4777_v29  ;;  %v4779_v55 = vpop.permute.xlu1 %1258 }
 0x1a5   : > { %6497 = vst [vmem:[#allocation99_spill] sm:$0xff] %v4779_v55 }
 0x1a6   : > { %3976 = vset.pattern.permute.xlu1 %v6429_v46  ;;  %1966 = vperm.xlu0 %4023, %v4273_v17  }
 0x1a7   : > { %1279 = vperm.xlu1 %3976, %v4233_v37   ;;  %v4784_v32 = vpop.permute.xlu0 %1476 }
 0x1a8   : > { %6498 = vst [vmem:[#allocation100_spill] sm:$0xff] %v4784_v32  ;;  %v4786_v5 = vpop.permute.xlu1 %1261 }
 0x1a9   : > { %6499 = vst [vmem:[#allocation101_spill] sm:$0xff] %v4786_v5 }
 0x1aa   : > { %1978 = vperm.xlu0 %4023, %v4297_v47  }
 0x1ab   : > { %3977 = vset.pattern.permute.xlu1 %v6424_v54  ;;  %v4790_v3 = vpop.permute.xlu0 %1485 }
 0x1ac   : > { %2160 = vperm.xlu1 %3977, %v4213_v16  }
 0x1ad   : > { %v4793_v29 = vpop.permute.xlu1 %2145 }
 0x1ae   : > { %6500 = vst [vmem:[#allocation102_spill] sm:$0xff] %v4793_v29  ;;  %1987 = vperm.xlu0 %4023, %v4304_v57  }
 0x1af   : > { %v4796_v55 = vpop.permute.xlu0 %1488 }
 0x1b0   : > { %6501 = vst [vmem:[#allocation103_spill] sm:$0xff] %v4796_v55  ;;  %3978 = vset.pattern.permute.xlu1 %v6429_v46 }
 0x1b1   : > { %1282 = vperm.xlu1 %3978, %v4249_v53  }
 0x1b2   : > { %v4800_v32 = vpop.permute.xlu1 %1479  ;;  %4025 = vset.pattern.permute.xlu0 %v6424_v54 }
 0x1b3   : > { %v4803_v5 = vpop.permute.xlu0 %1497  ;;  %2202 = vperm.xlu0 %4025, %v4297_v47  }
 0x1b4   : > { %6502 = vst [vmem:[#allocation104_spill] sm:$0xff] %v4803_v5  ;;  %v553_v5 = vlaneseq }
 0x1b5   : > { %1285 = vperm.xlu1 %3978, %v4245_v50  }
 0x1b6   : > { %v4807_v16 = vpop.permute.xlu1 %1482 }
 0x1b7   : > { %6503 = vst [vmem:[#allocation105_spill] sm:$0xff] %v4807_v16  ;;  %v4809_v29 = vpop.permute.xlu0 %1500  ;;  %2208 = vperm.xlu0 %4025, %v4307_v60   ;;  %v4825_v60 = vand.u32 127, %v553_v5 }
 0x1b8   : > { %6504 = vst [vmem:[#allocation106_spill] sm:$0xff] %v4809_v29 }
 0x1b9   : > { %3979 = vset.pattern.permute.xlu1 %v6424_v54  ;;  %vm653_vm0 = vcmp.eq.s32.totalorder %v4355_v10, %v4825_v60  ;;  %vm651_vm1 = vcmp.eq.s32.totalorder %v4358_v13, %v4825_v60  ;;  %vm654_vm2 = vcmp.eq.s32.totalorder %v4361_v15, %v4825_v60  ;;  %vm652_vm3 = vcmp.eq.s32.totalorder %v4364_v18, %v4825_v60 }
 0x1ba   : > { %2169 = vperm.xlu1 %3979, %v4221_v25   ;;  %vm656_vm4 = vcmp.eq.s32.totalorder %v4367_v19, %v4825_v60  ;;  %vm655_vm5 = vcmp.eq.s32.totalorder %v4370_v20, %v4825_v60  ;;  %v4049_v13 = vmov 0.0   ;;  %vm658_vm6 = vcmp.eq.s32.totalorder %v4373_v23, %v4825_v60 }
 0x1bb   : > { %v4814_v57 = vpop.permute.xlu1 %1700  ;;  %v4816_v55 = vpop.permute.xlu0 %1509  ;;  %2217 = vperm.xlu0 %4025, %v4312_v4   ;;  %v3437_v15 = vsel %vm653_vm0, 1.0, %v4049_v13  ;;  %v4852_v5 = vsel %vm651_vm1, 1.0, %v4049_v13  ;;  %v4857_v18 = vsel %vm654_vm2, 1.0, %v4049_v13  ;;  %v3436_v19 = vsel %vm652_vm3, 1.0, %v4049_v13 }
 0x1bc   : > { %6505 = vst [vmem:[#allocation107_spill] sm:$0xff] %v4816_v55  ;;  %vm657_vm7 = vcmp.eq.s32.totalorder %v4377_v26, %v4825_v60  ;;  %vm660_vm8 = vcmp.eq.s32.totalorder %v4380_v30, %v4825_v60  ;;  %v4865_v20 = vsel %vm656_vm4, 1.0, %v4049_v13  ;;  %vm659_vm9 = vcmp.eq.s32.totalorder %v4383_v31, %v4825_v60 }
 0x1bd   : > { %vm876_vm10 = vcmp.eq.s32.totalorder %v4459_v8, %v4825_v60  ;;  %v4873_v23 = vsel %vm658_vm6, 1.0, %v4049_v13  ;;  %vm662_vm11 = vcmp.eq.s32.totalorder %v4386_v33, %v4825_v60  ;;  %vm661_vm12 = vcmp.eq.s32.totalorder %v4389_v36, %v4825_v60 }
 0x1be   : > { %3980 = vset.pattern.permute.xlu1 %v6426_v56  ;;  %vm877_vm13 = vcmp.eq.s32.totalorder %v4465_v1, %v4825_v60  ;;  %v3441_v30 = vsel %vm657_vm7, 1.0, %v4049_v13  ;;  %v4886_v8 = vsel %vm660_vm8, 1.0, %v4049_v13  ;;  %vm671_vm14 = vcmp.eq.s32.totalorder %v4421_v59, %v4825_v60 }
 0x1bf   : > { %1503 = vperm.xlu1 %3980, %v4233_v37   ;;  %v4821_v47 = vpop.permute.xlu1 %1706  ;;  %v4823_v29 = vpop.permute.xlu0 %1512  ;;  %vm879_vm15 = vcmp.eq.s32.totalorder %v4471_v7, %v4825_v60  ;;  %v3443_v33 = vsel %vm659_vm9, 1.0, %v4049_v13  ;;  %v3468_v1 = vsel %vm876_vm10, 1.0, %v4049_v13  ;;  %vm2220_vm0 = vcmp.eq.s32.totalorder %v4461_v24, %v4825_v60 }
 0x1c0   : > { %6506 = vst [vmem:[#allocation108_spill] sm:$0xff] %v4821_v47  ;;  %vm881_vm1 = vcmp.eq.s32.totalorder %v4477_v61, %v4825_v60  ;;  %v3445_v36 = vsel %vm661_vm12, 1.0, %v4049_v13  ;;  %v3469_v59 = vsel %vm877_vm13, 1.0, %v4049_v13  ;;  %vm2221_vm2 = vcmp.eq.s32.totalorder %v4468_v0, %v4825_v60 }
 0x1c1   : > { %v3455_v7 = vsel %vm671_vm14, 1.0, %v4049_v13  ;;  %vm883_vm3 = vcmp.eq.s32.totalorder %v4484_v63, %v4825_v60  ;;  %vm885_vm4 = vcmp.eq.s32.totalorder %v4491_v52, %v4825_v60  ;;  %v972_v61 = vadd.f32 %v3468_v1, %v3436_v19  ;;  %v6514_v63 = vld [vmem:[#allocation43_spill] sm:$0xff]  ;;  %v6515_v52 = vld [vmem:[#allocation48_spill] sm:$0xff] }
 0x1c2   : > { %v3473_v0 = vsel %vm881_vm1, 1.0, %v4049_v13  ;;  %v973_v55 = vadd.f32 %v3469_v59, %v3437_v15  ;;  %v4923_v4 = vsel %vm2221_vm2, 1.0, %v4049_v13  ;;  %vm895_vm6 = vcmp.eq.s32.totalorder %v6514_v63, %v4825_v60  ;;  %v6517_v1 = vld [vmem:[#allocation32_spill] sm:$0xff]  ;;  %v6519_v63 = vld [vmem:[#allocation49_spill] sm:$0xff] }
 0x1c3   : > { %1506 = vperm.xlu1 %3980, %v4249_v53   ;;  %v4828_v25 = vpop.permute.xlu1 %1709  ;;  %v4830_v16 = vpop.permute.xlu0 %1521  ;;  %vm875_vm7 = vcmp.eq.s32.totalorder %v6515_v52, %v4825_v60  ;;  %vm2225_vm8 = vcmp.eq.s32.totalorder %v6517_v1, %v4825_v60  ;;  %v3477_v15 = vsel %vm885_vm4, 1.0, %v4049_v13  ;;  %vm1100_vm9 = vcmp.eq.s32.totalorder %v6519_v63, %v4825_v60  ;;  %v6520_v52 = vld [vmem:[#allocation50_spill] sm:$0xff]  ;;  %v6522_v63 = vld [vmem:[#allocation51_spill] sm:$0xff] }
 0x1c4   : > { %6507 = vst [vmem:[#allocation109_spill] sm:$0xff] %v4828_v25  ;;  %6508 = vst [vmem:[#allocation110_spill] sm:$0xff] %v4830_v16  ;;  %v4917_v16 = vsel %vm2220_vm0, 1.0, %v4049_v13  ;;  %vm878_vm10 = vcmp.eq.s32.totalorder %v4545_v27, %v4825_v60  ;;  %vm880_vm12 = vcmp.eq.s32.totalorder %v6520_v52, %v4825_v60  ;;  %v4961_v1 = vadd.f32 %v3477_v15, %v3445_v36 }
 0x1c5   : > { %vm882_vm13 = vcmp.eq.s32.totalorder %v6522_v63, %v4825_v60  ;;  %v3470_v52 = vsel %vm878_vm10, 1.0, %v4049_v13  ;;  %vm884_vm14 = vcmp.eq.s32.totalorder %v4564_v6, %v4825_v60  ;;  %v6525_v63 = vld [vmem:[#allocation52_spill] sm:$0xff]  ;;  %vm886_vm1 = vcmp.eq.s32.totalorder %v4571_v21, %v4825_v60  ;;  %v6526_v6 = vld [vmem:[#allocation58_spill] sm:$0xff] }
 0x1c6   : > { %v3474_v15 = vsel %vm882_vm13, 1.0, %v4049_v13  ;;  %vm1323_vm0 = vcmp.eq.s32.totalorder %v6525_v63, %v4825_v60  ;;  %vm1549_vm2 = vcmp.eq.s32.totalorder %v6526_v6, %v4825_v60  ;;  %vm1105_vm10 = vcmp.eq.s32.totalorder %v4628_v51, %v4825_v60  ;;  %v6534_v51 = vld [vmem:[#allocation71_spill] sm:$0xff] }
 0x1c7   : > { %3981 = vset.pattern.permute.xlu1 %v6432_v40  ;;  %v4845_v37 = vpop.permute.xlu0 %1524  ;;  %v6524_v40 = vld [vmem:[#allocation53_spill] sm:$0xff]  ;;  %vm1106_vm13 = vcmp.eq.s32.totalorder %v6534_v51, %v4825_v60  ;;  %v6539_v51 = vld [vmem:[#allocation72_spill] sm:$0xff] }
 0x1c8   : > { %6509 = vst [vmem:[#allocation111_spill] sm:$0xff] %v4845_v37  ;;  %1724 = vperm.xlu1 %3981, %v4237_v41   ;;  %v4848_v10 = vpop.permute.xlu1 %1043  ;;  %v3439_v37 = vsel %vm655_vm5, 1.0, %v4049_v13  ;;  %vm2224_vm5 = vcmp.eq.s32.totalorder %v4474_v34, %v4825_v60  ;;  %v3475_v34 = vsel %vm883_vm3, 1.0, %v4049_v13 }
 0x1c9   : > { %6510 = vst [vmem:[#allocation112_spill] sm:$0xff] %v4848_v10  ;;  %v4938_v59 = vsel %vm2224_vm5, 1.0, %v4049_v13  ;;  %v4940_v10 = vadd.f32 %v3473_v0, %v3441_v30  ;;  %v4957_v0 = vsel %vm2225_vm8, 1.0, %v4049_v13  ;;  %v4959_v27 = vadd.f32 %v3475_v34, %v3443_v33 }
 0x1ca   : > { %6518 = vst [vmem:[#allocation48_spill] sm:$0xff] %v4938_v59  ;;  %6521 = vst [vmem:[#allocation32_spill] sm:$0xff] %v4957_v0  ;;  %v3472_v34 = vsel %vm880_vm12, 1.0, %v4049_v13  ;;  %v6527_v59 = vld [vmem:[#allocation54_spill] sm:$0xff]  ;;  %vm1102_vm8 = vcmp.eq.s32.totalorder %v4639_v38, %v4825_v60  ;;  %vm1119_vm12 = vcmp.eq.s32.totalorder %v4671_v9, %v4825_v60  ;;  %v3505_v9 = vsel %vm1105_vm10, 1.0, %v4049_v13 }
 0x1cb   : > { %v4881_v26 = vpop.permute.xlu0 %1533  ;;  %v976_v25 = vadd.f32 %v3472_v34, %v4865_v20  ;;  %vm1326_vm3 = vcmp.eq.s32.totalorder %v6527_v59, %v4825_v60  ;;  %v3565_v20 = vsel %vm1549_vm2, 1.0, %v4049_v13  ;;  %vm1567_vm2 = vcmp.eq.s32.totalorder %v4823_v29, %v4825_v60 }
 0x1cc   : > { %6511 = vst [vmem:[#allocation113_spill] sm:$0xff] %v4881_v26  ;;  %1730 = vperm.xlu1 %3981, %v4249_v53   ;;  %v4901_v53 = vsel %vm662_vm11, 1.0, %v4049_v13  ;;  %v3471_v26 = vsel %vm879_vm15, 1.0, %v4049_v13  ;;  %vm1101_vm11 = vcmp.eq.s32.totalorder %v4549_v44, %v4825_v60  ;;  %v3500_v44 = vsel %vm1100_vm9, 1.0, %v4049_v13 }
 0x1cd   : > { %v4892_v31 = vpop.permute.xlu1 %1924  ;;  %v4931_v19 = vadd.f32 %v3471_v26, %v3439_v37  ;;  %v3487_v37 = vsel %vm895_vm6, 1.0, %v4049_v13  ;;  %v3467_v26 = vsel %vm875_vm7, 1.0, %v4049_v13  ;;  %vm1325_vm15 = vcmp.eq.s32.totalorder %v6524_v40, %v4825_v60 }
 0x1ce   : > { %6512 = vst [vmem:[#allocation114_spill] sm:$0xff] %v4892_v31  ;;  %v4973_v0 = vadd.f32 %v3487_v37, %v3455_v7  ;;  %v971_v33 = vadd.f32 %v3467_v26, %v4852_v5  ;;  %v3501_v36 = vsel %vm1101_vm11, 1.0, %v4049_v13  ;;  %v4988_v5 = vadd.f32 %v3500_v44, %v972_v61  ;;  %v6528_v31 = vld [vmem:[#allocation62_spill] sm:$0xff] }
 0x1cf   : > { %v4913_v24 = vpop.permute.xlu0 %1539  ;;  %v974_v7 = vadd.f32 %v3470_v52, %v4857_v18  ;;  %v3476_v37 = vsel %vm884_vm14, 1.0, %v4049_v13  ;;  %v3533_v26 = vsel %vm1325_vm15, 1.0, %v4049_v13  ;;  %vm1773_vm4 = vcmp.eq.s32.totalorder %v6528_v31, %v4825_v60  ;;  %v6530_v52 = vld [vmem:[#allocation60_spill] sm:$0xff] }
 0x1d0   : > { %6513 = vst [vmem:[#allocation115_spill] sm:$0xff] %v4913_v24  ;;  %1733 = vperm.xlu1 %3981, %v4245_v50   ;;  %v978_v61 = vadd.f32 %v3474_v15, %v4873_v23  ;;  %v3531_v18 = vsel %vm1323_vm0, 1.0, %v4049_v13  ;;  %v5015_v31 = vadd.f32 %v3476_v37, %v4886_v8  ;;  %v6529_v23 = vld [vmem:[#allocation56_spill] sm:$0xff]  ;;  %vm1099_vm6 = vcmp.eq.s32.totalorder %v4633_v49, %v4825_v60  ;;  %v6531_v49 = vld [vmem:[#allocation66_spill] sm:$0xff] }
 0x1d1   : > { %vm1548_vm5 = vcmp.eq.s32.totalorder %v6529_v23, %v4825_v60  ;;  %v3534_v21 = vsel %vm1326_vm3, 1.0, %v4049_v13  ;;  %vm1771_vm7 = vcmp.eq.s32.totalorder %v6530_v52, %v4825_v60  ;;  %vm1104_vm9 = vcmp.eq.s32.totalorder %v6531_v49, %v4825_v60  ;;  %v6532_v15 = vld [vmem:[#allocation64_spill] sm:$0xff]  ;;  %v6537_v52 = vld [vmem:[#allocation73_spill] sm:$0xff] }
 0x1d2   : > { %v4929_v24 = vpop.permute.xlu1 %1046  ;;  %v5039_v34 = vsel %vm1548_vm5, 1.0, %v4049_v13  ;;  %vm1774_vm11 = vcmp.eq.s32.totalorder %v6532_v15, %v4825_v60  ;;  %v3499_v38 = vsel %vm1099_vm6, 1.0, %v4049_v13  ;;  %v5049_v63 = vsel %vm1771_vm7, 1.0, %v4049_v13 }
 0x1d3   : > { %6516 = vst [vmem:[#allocation43_spill] sm:$0xff] %v4929_v24  ;;  %v3502_v37 = vsel %vm1102_vm8, 1.0, %v4049_v13  ;;  %vm1343_vm15 = vcmp.eq.s32.totalorder %v4734_v14, %v4825_v60  ;;  %v1195_v23 = vadd.f32 %v3499_v38, %v971_v33  ;;  %vm1103_vm0 = vcmp.eq.s32.totalorder %v6537_v52, %v4825_v60 }
 0x1d4   : > { %3982 = vset.pattern.permute.xlu1 %v6439_v39  ;;  %v4953_v30 = vpop.permute.xlu0 %1679  ;;  %v3506_v49 = vsel %vm1106_vm13, 1.0, %v4049_v13  ;;  %v1198_v15 = vadd.f32 %v3502_v37, %v974_v7  ;;  %v1201_v33 = vadd.f32 %v3505_v9, %v4940_v10  ;;  %v3551_v38 = vsel %vm1343_vm15, 1.0, %v4049_v13  ;;  %v6541_v37 = vld [vmem:[#allocation74_spill] sm:$0xff] }
 0x1d5   : > { %1067 = vperm.xlu1 %3982, %v4257_v62   ;;  %v3503_v7 = vsel %vm1103_vm0, 1.0, %v4049_v13  ;;  %vm1328_vm3 = vcmp.eq.s32.totalorder %v6541_v37, %v4825_v60  ;;  %v1419_v10 = vadd.f32 %v3531_v18, %v1195_v23  ;;  %v3583_v9 = vsel %vm1567_vm2, 1.0, %v4049_v13 }
 0x1d6   : > { %v4965_v24 = vpop.permute.xlu1 %1049  ;;  %vm1324_vm7 = vcmp.eq.s32.totalorder %v4696_v58, %v4825_v60  ;;  %vm1550_vm13 = vcmp.eq.s32.totalorder %v4766_v12, %v4825_v60 }
 0x1d7   : > { %6523 = vst [vmem:[#allocation49_spill] sm:$0xff] %v4965_v24  ;;  %v1197_v24 = vadd.f32 %v3501_v36, %v973_v55  ;;  %v3478_v55 = vsel %vm886_vm1, 1.0, %v4049_v13  ;;  %v3597_v36 = vsel %vm1773_vm4, 1.0, %v4049_v13  ;;  %vm1998_vm1 = vcmp.eq.s32.totalorder %v6539_v51, %v4825_v60  ;;  %v6542_v51 = vld [vmem:[#allocation75_spill] sm:$0xff] }
 0x1d8   : > { %v4985_v40 = vpop.permute.xlu0 %1691  ;;  %v5031_v8 = vadd.f32 %v3478_v55, %v4901_v53  ;;  %v3504_v55 = vsel %vm1104_vm9, 1.0, %v4049_v13  ;;  %vm1107_vm4 = vcmp.eq.s32.totalorder %v6542_v51, %v4825_v60  ;;  %vm1552_vm9 = vcmp.eq.s32.totalorder %v4687_v22, %v4825_v60  ;;  %v6547_v51 = vld [vmem:[#allocation86_spill] sm:$0xff] }
 0x1d9   : > { %3983 = vset.pattern.permute.xlu1 %v6443_v42  ;;  %v1421_v59 = vadd.f32 %v3533_v26, %v1197_v24  ;;  %v1200_v14 = vadd.f32 %v3504_v55, %v976_v25  ;;  %v1202_v25 = vadd.f32 %v3506_v49, %v978_v61  ;;  %v5092_v55 = vsel %vm1998_vm1, 1.0, %v4049_v13 }
 0x1da   : > { %1948 = vperm.xlu1 %3983, %v4237_v41   ;;  %v3536_v61 = vsel %vm1328_vm3, 1.0, %v4049_v13  ;;  %v3507_v18 = vsel %vm1107_vm4, 1.0, %v4049_v13  ;;  %vm1327_vm15 = vcmp.eq.s32.totalorder %v6547_v51, %v4825_v60  ;;  %vm1777_vm1 = vcmp.eq.s32.totalorder %v4707_v43, %v4825_v60 }
 0x1db   : > { %v4999_v47 = vpop.permute.xlu1 %1933  ;;  %v1645_v24 = vadd.f32 %v3565_v20, %v1421_v59  ;;  %v6536_v20 = vld [vmem:[#allocation69_spill] sm:$0xff]  ;;  %v5065_v59 = vsel %vm1774_vm11, 1.0, %v4049_v13  ;;  %vm1553_vm11 = vcmp.eq.s32.totalorder %v4693_v45, %v4825_v60  ;;  %vm1108_vm3 = vcmp.eq.s32.totalorder %v4727_v2, %v4825_v60 }
 0x1dc   : > { %v5021_v44 = vpop.permute.xlu0 %1703  ;;  %vm1995_vm14 = vcmp.eq.s32.totalorder %v6536_v20, %v4825_v60  ;;  %vm1109_vm4 = vcmp.eq.s32.totalorder %v4742_v35, %v4825_v60 }
 0x1dd   : > { %v5051_v6 = vadd.f32 %v3597_v36, %v1645_v24  ;;  %v3519_v36 = vsel %vm1119_vm12, 1.0, %v4049_v13  ;;  %v6538_v24 = vld [vmem:[#allocation4_spill] sm:$0xff]  ;;  %v5077_v20 = vsel %vm1995_vm14, 1.0, %v4049_v13  ;;  %vm1547_vm12 = vcmp.eq.s32.totalorder %v4759_v11, %v4825_v60  ;;  %v6549_v11 = vld [vmem:[#allocation87_spill] sm:$0xff] }
 0x1de   : > { %3984 = vset.pattern.permute.xlu1 %v6439_v39  ;;  %v1215_v29 = vadd.f32 %v3519_v36, %v4973_v0  ;;  %v1199_v0 = vadd.f32 %v3503_v7, %v4931_v19  ;;  %v6545_v36 = vld [vmem:[#allocation76_spill] sm:$0xff]  ;;  %v3568_v7 = vsel %vm1552_vm9, 1.0, %v4049_v13  ;;  %vm1331_vm2 = vcmp.eq.s32.totalorder %v6549_v11, %v4825_v60 }
 0x1df   : > { %1070 = vperm.xlu1 %3984, %v4273_v17   ;;  %vm2219_vm8 = vcmp.eq.s32.totalorder %v6545_v36, %v4825_v60  ;;  %v3539_v35 = vsel %vm1331_vm2, 1.0, %v4049_v13  ;;  %vm1772_vm9 = vcmp.eq.s32.totalorder %v4953_v30, %v4825_v60  ;;  %vm1776_vm2 = vcmp.eq.s32.totalorder %v4985_v40, %v4825_v60 }
 0x1e0   : > { %v5046_v53 = vpop.permute.xlu1 %1267  ;;  %v5056_v26 = vpop.permute.xlu0 %1715  ;;  %v1439_v37 = vadd.f32 %v3551_v38, %v1215_v29  ;;  %v1424_v38 = vadd.f32 %v3536_v61, %v1200_v14  ;;  %v3569_v61 = vsel %vm1553_vm11, 1.0, %v4049_v13 }
 0x1e1   : > { %6533 = vst [vmem:[#allocation50_spill] sm:$0xff] %v5046_v53  ;;  %6535 = vst [vmem:[#allocation51_spill] sm:$0xff] %v5056_v26  ;;  %v6544_v26 = vld [vmem:[#allocation80_spill] sm:$0xff]  ;;  %v1422_v53 = vadd.f32 %v3534_v21, %v1198_v15  ;;  %v3532_v15 = vsel %vm1324_vm7, 1.0, %v4049_v13 }
 0x1e2   : > { %vm1330_vm6 = vcmp.eq.s32.totalorder %v6544_v26, %v4825_v60  ;;  %v1663_v26 = vadd.f32 %v3583_v9, %v1439_v37  ;;  %v1203_v9 = vadd.f32 %v3507_v18, %v4959_v27  ;;  %v5139_v37 = vsel %vm2219_vm8, 1.0, %v4049_v13 }
 0x1e3   : > { %1073 = vperm.xlu1 %3984, %v6538_v24   ;;  %v3538_v49 = vsel %vm1330_vm6, 1.0, %v4049_v13  ;;  %v3563_v27 = vsel %vm1547_vm12, 1.0, %v4049_v13  ;;  %v5161_v45 = vadd.f32 %v3568_v7, %v1424_v38  ;;  %vm1110_vm6 = vcmp.eq.s32.totalorder %v4749_v48, %v4825_v60 }
 0x1e4   : > { %v5081_v52 = vpop.permute.xlu0 %1727  ;;  %v3601_v7 = vsel %vm1777_vm1, 1.0, %v4049_v13  ;;  %v3509_v48 = vsel %vm1109_vm4, 1.0, %v4049_v13  ;;  %vm1558_vm4 = vcmp.eq.s32.totalorder %v4790_v3, %v4825_v60 }
 0x1e5   : > { %6540 = vst [vmem:[#allocation53_spill] sm:$0xff] %v5081_v52  ;;  %v5083_v39 = vpop.permute.xlu1 %2148  ;;  %v6543_v52 = vld [vmem:[#allocation79_spill] sm:$0xff] }
 0x1e6   : > { %vm1329_vm5 = vcmp.eq.s32.totalorder %v6543_v52, %v4825_v60  ;;  %v6546_v52 = vld [vmem:[#allocation82_spill] sm:$0xff] }
 0x1e7   : > { %3985 = vset.pattern.permute.xlu1 %v6443_v42  ;;  %v3537_v19 = vsel %vm1329_vm5, 1.0, %v4049_v13  ;;  %vm2222_vm14 = vcmp.eq.s32.totalorder %v6546_v52, %v4825_v60  ;;  %vm1551_vm5 = vcmp.eq.s32.totalorder %v4772_v28, %v4825_v60  ;;  %v6551_v28 = vld [vmem:[#allocation91_spill] sm:$0xff] }
 0x1e8   : > { %1957 = vperm.xlu1 %3985, %v4245_v50   ;;  %v1737_v23 = vpop.permute.xlu0 %1736  ;;  %v1425_v14 = vadd.f32 %v3537_v19, %v1201_v33  ;;  %v3566_v33 = vsel %vm1550_vm13, 1.0, %v4049_v13  ;;  %v5159_v18 = vsel %vm2222_vm14, 1.0, %v4049_v13  ;;  %v1643_v19 = vadd.f32 %v3563_v27, %v1419_v10 }
 0x1e9   : > { %vm1791_vm10 = vcmp.eq.s32.totalorder %v1737_v23, %v4825_v60  ;;  %vm1999_vm8 = vcmp.eq.s32.totalorder %v6551_v28, %v4825_v60  ;;  %vm2379_vm13 = vcmask 261120   ;;  %v6557_v28 = vld [vmem:[#allocation101_spill] sm:$0xff] }
 0x1ea   : > { %v5111_v21 = vpop.permute.xlu1 %1270  ;;  %v3615_v58 = vsel %vm1791_vm10, 1.0, %v4049_v13  ;;  %v1649_v36 = vadd.f32 %v3569_v61, %v1425_v14  ;;  %v1867_v51 = vadd.f32 %v5049_v63, %v1643_v19  ;;  %v6552_v14 = vld [vmem:[#allocation96_spill] sm:$0xff]  ;;  %vm1334_vm1 = vcmp.eq.s32.totalorder %v6557_v28, %v4825_v60 }
 0x1eb   : > { %v5123_v22 = vadd.f32 %v3615_v58, %v1663_v26  ;;  %v5147_v26 = vadd.f32 %v3538_v49, %v1202_v25  ;;  %v1420_v58 = vadd.f32 %v3532_v15, %v4988_v5  ;;  %v6548_v25 = vld [vmem:[#allocation85_spill] sm:$0xff]  ;;  %v3535_v5 = vsel %vm1327_vm15, 1.0, %v4049_v13 }
 0x1ec   : > { %3986 = vset.pattern.permute.xlu1 %v6429_v46  ;;  %v5132_v29 = vpop.permute.xlu0 %1754  ;;  %vm1775_vm0 = vcmp.eq.s32.totalorder %v6548_v25, %v4825_v60  ;;  %v1646_v49 = vadd.f32 %v3566_v33, %v1422_v53  ;;  %v1423_v15 = vadd.f32 %v3535_v5, %v1199_v0  ;;  %v6550_v53 = vld [vmem:[#allocation88_spill] sm:$0xff]  ;;  %v3510_v0 = vsel %vm1110_vm6, 1.0, %v4049_v13  ;;  %v6553_v33 = vld [vmem:[#allocation95_spill] sm:$0xff]  ;;  %v6554_v25 = vld [vmem:[#allocation98_spill] sm:$0xff] }
 0x1ed   : > { %1291 = vperm.xlu1 %3986, %v4257_v62   ;;  %v3599_v43 = vsel %vm1775_vm0, 1.0, %v4049_v13  ;;  %v1644_v38 = vadd.f32 %v5039_v34, %v1420_v58  ;;  %vm1778_vm7 = vcmp.eq.s32.totalorder %v6550_v53, %v4825_v60  ;;  %v3567_v34 = vsel %vm1551_vm5, 1.0, %v4049_v13 }
 0x1ee   : > { %v5145_v23 = vpop.permute.xlu1 %1273  ;;  %vm1332_vm10 = vcmp.eq.s32.totalorder %v6552_v14, %v4825_v60  ;;  %v1870_v2 = vadd.f32 %v5065_v59, %v1646_v49  ;;  %v5208_v61 = vadd.f32 %v3601_v7, %v1649_v36  ;;  %v5210_v58 = vadd.f32 %v3539_v35, %v1203_v9  ;;  %v6555_v49 = vld [vmem:[#allocation97_spill] sm:$0xff]  ;;  %v6558_v14 = vld [vmem:[#allocation100_spill] sm:$0xff] }
 0x1ef   : > { %v3602_v27 = vsel %vm1778_vm7, 1.0, %v4049_v13  ;;  %vm2002_vm11 = vcmp.eq.s32.totalorder %v6553_v33, %v4825_v60  ;;  %v1647_v63 = vadd.f32 %v3567_v34, %v1423_v15  ;;  %vm1554_vm12 = vcmp.eq.s32.totalorder %v6554_v25, %v4825_v60  ;;  %v6556_v15 = vld [vmem:[#allocation99_spill] sm:$0xff] }
 0x1f0   : > { %v5173_v12 = vpop.permute.xlu0 %1760  ;;  %v3596_v59 = vsel %vm1772_vm9, 1.0, %v4049_v13  ;;  %v3631_v9 = vsel %vm1999_vm8, 1.0, %v4049_v13  ;;  %v1206_v36 = vadd.f32 %v3510_v0, %v5031_v8  ;;  %v3540_v11 = vsel %vm1332_vm10, 1.0, %v4049_v13 }
 0x1f1   : > { %3987 = vset.pattern.permute.xlu1 %v6424_v54  ;;  %v2094_v19 = vadd.f32 %v5092_v55, %v1870_v2  ;;  %vm2223_vm14 = vcmp.eq.s32.totalorder %v6555_v49, %v4825_v60  ;;  %vm1333_vm15 = vcmp.eq.s32.totalorder %v6556_v15, %v4825_v60  ;;  %v2091_v35 = vadd.f32 %v5077_v20, %v1867_v51  ;;  %v6560_v15 = vld [vmem:[#allocation33_spill] sm:$0xff] }
 0x1f2   : > { %2172 = vperm.xlu1 %3987, %v4237_v41   ;;  %v3508_v41 = vsel %vm1108_vm3, 1.0, %v4049_v13  ;;  %v3570_v8 = vsel %vm1554_vm12, 1.0, %v4049_v13  ;;  %v1868_v53 = vadd.f32 %v3596_v59, %v1644_v38  ;;  %v1871_v55 = vadd.f32 %v3599_v43, %v1647_v63 }
 0x1f3   : > { %v5184_v52 = vpop.permute.xlu1 %2157  ;;  %v1204_v30 = vadd.f32 %v3508_v41, %v5015_v31  ;;  %v1205_v31 = vadd.f32 %v3509_v48, %v4961_v1  ;;  %v3634_v1 = vsel %vm2002_vm11, 1.0, %v4049_v13  ;;  %v3663_v20 = vsel %vm2223_vm14, 1.0, %v4049_v13 }
 0x1f4   : > { %v5200_v10 = vpop.permute.xlu0 %1769  ;;  %v3541_v0 = vsel %vm1333_vm15, 1.0, %v4049_v13  ;;  %v1650_v51 = vadd.f32 %v3570_v8, %v5147_v26  ;;  %vm1555_vm3 = vcmp.eq.s32.totalorder %v6558_v14, %v4825_v60  ;;  %v2318_v43 = vadd.f32 %v5159_v18, %v2094_v19 }
 0x1f5   : > { %v1428_v41 = vadd.f32 %v3540_v11, %v1204_v30  ;;  %v2315_v30 = vadd.f32 %v5139_v37, %v2091_v35  ;;  %v3542_v33 = vsel %vm1334_vm1, 1.0, %v4049_v13  ;;  %v2095_v26 = vadd.f32 %v3631_v9, %v1871_v55 }
 0x1f6   : > { %3988 = vset.pattern.permute.xlu1 %v6429_v46  ;;  %v1429_v63 = vadd.f32 %v3541_v0, %v1205_v31  ;;  %v3600_v25 = vsel %vm1776_vm2, 1.0, %v4049_v13  ;;  %v3571_v37 = vsel %vm1555_vm3, 1.0, %v4049_v13  ;;  %vm1556_vm6 = vcmp.eq.s32.totalorder %v4800_v32, %v4825_v60  ;;  %v6559_v31 = vld [vmem:[#allocation102_spill] sm:$0xff] }
 0x1f7   : > { %1294 = vperm.xlu1 %3988, %v4273_v17   ;;  %v1874_v49 = vadd.f32 %v3602_v27, %v1650_v51  ;;  %v3574_v9 = vsel %vm1558_vm4, 1.0, %v4049_v13  ;;  %vm2226_vm7 = vcmp.eq.s32.totalorder %v6559_v31, %v4825_v60  ;;  %vm2228_vm8 = vcmp.eq.s32.totalorder %v6560_v15, %v4825_v60  ;;  %v6563_v0 = vld [vmem:[#allocation114_spill] sm:$0xff] }
 0x1f8   : > { %v5220_v5 = vpop.permute.xlu1 %1491  ;;  %vm1779_vm9 = vcmp.eq.s32.totalorder %v4814_v57, %v4825_v60  ;;  %v1651_v3 = vadd.f32 %v3571_v37, %v5210_v58  ;;  %vm1780_vm12 = vcmp.eq.s32.totalorder %v5021_v44, %v4825_v60  ;;  %v3666_v55 = vsel %vm2226_vm7, 1.0, %v4049_v13  ;;  %v6566_v37 = vld [vmem:[#allocation32_spill] sm:$0xff] }
 0x1f9   : > { %v1904_v7 = vpop.permute.xlu0 %1903  ;;  %v2098_v32 = vadd.f32 %v3634_v1, %v1874_v49  ;;  %v3603_v28 = vsel %vm1779_vm9, 1.0, %v4049_v13  ;;  %vm2003_vm15 = vcmp.eq.s32.totalorder %v6563_v0, %v4825_v60  ;;  %v3604_v14 = vsel %vm1780_vm12, 1.0, %v4049_v13 }
 0x1fa   : > { %vm1996_vm0 = vcmp.eq.s32.totalorder %v1904_v7, %v4825_v60  ;;  %v2319_v7 = vadd.f32 %v3663_v20, %v2095_v26  ;;  %v6562_v20 = vld [vmem:[#allocation108_spill] sm:$0xff]  ;;  %vm2227_vm2 = vcmp.eq.s32.totalorder %v5083_v39, %v4825_v60  ;;  %v1875_v26 = vadd.f32 %v3603_v28, %v1651_v3  ;;  %v6568_v3 = vld [vmem:[#allocation34_spill] sm:$0xff] }
 0x1fb   : > { %1297 = vperm.xlu1 %3988, %v6538_v24   ;;  %v3628_v48 = vsel %vm1996_vm0, 1.0, %v4049_v13  ;;  %vm1781_vm14 = vcmp.eq.s32.totalorder %v6562_v20, %v4825_v60  ;;  %vm2006_vm3 = vcmp.eq.s32.totalorder %v4999_v47, %v4825_v60  ;;  %v6570_v20 = vmov 5  }
 0x1fc   : > { %v5245_v34 = vpop.permute.xlu1 %1494  ;;  %v2092_v38 = vadd.f32 %v3628_v48, %v1868_v53  ;;  %v3605_v44 = vsel %vm1781_vm14, 1.0, %v4049_v13 }
 0x1fd   : > { %v1907_v2 = vpop.permute.xlu0 %1906 }
 0x1fe   : > { %vm1997_vm5 = vcmp.eq.s32.totalorder %v1907_v2, %v4825_v60  ;;  %v2316_v40 = vadd.f32 %v4917_v16, %v2092_v38  ;;  %v1430_v16 = vadd.f32 %v3542_v33, %v1206_v36  ;;  %v3572_v36 = vsel %vm1556_vm6, 1.0, %v4049_v13  ;;  %v6564_v38 = vld [vmem:[#allocation48_spill] sm:$0xff]  ;;  %v6565_v2 = vld [vmem:[#allocation109_spill] sm:$0xff] }
 0x1ff   : > { %3989 = vset.pattern.permute.xlu1 %v6424_v54  ;;  %v3629_v18 = vsel %vm1997_vm5, 1.0, %v4049_v13  ;;  %v1652_v1 = vadd.f32 %v3572_v36, %v1428_v41  ;;  %vm1782_vm1 = vcmp.eq.s32.totalorder %v6565_v2, %v4825_v60  ;;  %vm2230_vm5 = vcmp.eq.s32.totalorder %v5184_v52, %v4825_v60  ;;  %v6574_v2 = vld [vmem:[#allocation112_spill] sm:$0xff] }
 0x200   : > { %2181 = vperm.xlu1 %3989, %v4245_v50   ;;  %v2093_v59 = vadd.f32 %v3629_v18, %v5051_v6  ;;  %v2347_v19 = vpack.c.bf16 %v2316_v40, %v2315_v30  ;;  %v1872_v6 = vadd.f32 %v3600_v25, %v5161_v45  ;;  %v6561_v45 = vld [vmem:[#allocation105_spill] sm:$0xff]  ;;  %v1654_v53 = vadd.f32 %v3574_v9, %v1430_v16 }
 0x201   : > { %v5269_v11 = vpop.permute.xlu1 %1712  ;;  %v1916_v50 = vpop.permute.xlu0 %1915  ;;  %vm1557_vm11 = vcmp.eq.s32.totalorder %v6561_v45, %v4825_v60  ;;  %v2322_v40 = vadd.f32 %v3666_v55, %v2098_v32  ;;  %v3635_v25 = vsel %vm2003_vm15, 1.0, %v4049_v13  ;;  %v3606_v49 = vsel %vm1782_vm1, 1.0, %v4049_v13 }
 0x202   : > { %v2317_v27 = vadd.f32 %v4923_v4, %v2093_v59  ;;  %vm2000_vm10 = vcmp.eq.s32.totalorder %v1916_v50, %v4825_v60  ;;  %3809 = vmatprep.mubr.msk.bf16.mxu0 %vm2379_vm13, %v2347_v19  ;;  %v3573_v57 = vsel %vm1557_vm11, 1.0, %v4049_v13  ;;  %v3667_v16 = vsel %vm2227_vm2, 1.0, %v4049_v13 }
 0x203   : > { %v3632_v35 = vsel %vm2000_vm10, 1.0, %v4049_v13  ;;  %v1653_v19 = vadd.f32 %v3573_v57, %v1429_v63  ;;  %v2099_v31 = vadd.f32 %v3635_v25, %v1875_v26  ;;  %v3668_v63 = vsel %vm2228_vm8, 1.0, %v4049_v13  ;;  %v6572_v57 = vld [vmem:[#allocation8_spill] sm:$0xff] }
 0x204   : > { %3990 = vset.pattern.permute.xlu1 %v6426_v56  ;;  %v2348_v4 = vpack.c.bf16 %v2318_v43, %v2317_v27  ;;  %v2096_v8 = vadd.f32 %v3632_v35, %v1872_v6  ;;  %v6567_v27 = vmov 1   ;;  %vm2229_vm6 = vcmp.eq.s32.totalorder %v6568_v3, %v4825_v60  ;;  %v6569_v35 = vld [vmem:[#allocation5_spill] sm:$0xff]  ;;  %v6581_v3 = vld [vmem:[#allocation51_spill] sm:$0xff] }
 0x205   : > { %1515 = vperm.xlu1 %3990, %v4257_v62   ;;  %v5297_v58 = vpop.permute.xlu1 %1718  ;;  %v1919_v48 = vpop.permute.xlu0 %1918  ;;  %v1877_v39 = vadd.f32 %v3605_v44, %v1653_v19  ;;  %v3638_v36 = vsel %vm2006_vm3, 1.0, %v4049_v13  ;;  %v3670_v15 = vsel %vm2230_vm5, 1.0, %v4049_v13  ;;  %vm1112_vm10 = vcmp.eq.s32.totalorder %v6574_v2, %v4825_v60 }
 0x206   : > { %v2320_v51 = vadd.f32 %v6564_v38, %v2096_v8  ;;  %vm2001_vm0 = vcmp.eq.s32.totalorder %v1919_v48, %v4825_v60  ;;  %3810 = vmatmul.mubr.msk.bf16.vlgmr.msra.gmra.mrb[0].mxu0 %vm2379_vm13, %v2348_v4  ;;  %v1878_v4 = vadd.f32 %v3606_v49, %v1654_v53  ;;  %v2323_v8 = vadd.f32 %v3667_v16, %v2099_v31  ;;  %v6579_v49 = vld [vmem:[#allocation89_spill] sm:$0xff] }
 0x207   : > { %v3633_v43 = vsel %vm2001_vm0, 1.0, %v4049_v13  ;;  %v3669_v53 = vsel %vm2229_vm6, 1.0, %v4049_v13  ;;  %v3512_v25 = vsel %vm1112_vm10, 1.0, %v4049_v13  ;;  %vm1560_vm0 = vcmp.eq.s32.totalorder %v5220_v5, %v4825_v60 }
 0x208   : > { %v2349_v30 = vpack.c.bf16 %v2320_v51, %v2319_v7  ;;  %v2097_v41 = vadd.f32 %v3633_v43, %v5208_v61  ;;  %v1876_v61 = vadd.f32 %v3604_v14, %v1652_v1  ;;  %v2102_v55 = vadd.f32 %v3638_v36, %v1878_v4  ;;  %v6571_v1 = vld [vmem:[#allocation55_spill] sm:$0xff]  ;;  %v6573_v43 = vld [vmem:[#allocation13_spill] sm:$0xff] }
 0x209   : > { %1518 = vperm.xlu1 %3990, %v4273_v17   ;;  %v5329_v33 = vpop.permute.xlu1 %1721  ;;  %v1928_v18 = vpop.permute.xlu0 %1927  ;;  %vm888_vm8 = vcmp.eq.s32.totalorder %v6571_v1, %v4825_v60  ;;  %vm664_vm9 = vcmp.eq.s32.totalorder %v6573_v43, %v4825_v60  ;;  %vm1335_vm1 = vcmp.eq.s32.totalorder %v6579_v49, %v4825_v60  ;;  %vm1784_vm3 = vcmp.eq.s32.totalorder %v6581_v3, %v4825_v60 }
 0x20a   : > { %v2321_v59 = vadd.f32 %v6566_v37, %v2097_v41  ;;  %vm2004_vm4 = vcmp.eq.s32.totalorder %v1928_v18, %v4825_v60  ;;  %3813 = vmatprep.mubr.msk.bf16.mxu0 %vm2379_vm13, %v2349_v30  ;;  %v2326_v0 = vadd.f32 %v3670_v15, %v2102_v55  ;;  %v6575_v30 = vld [vmem:[#allocation14_spill] sm:$0xff]  ;;  %v6576_v41 = vld [vmem:[#allocation35_spill] sm:$0xff]  ;;  %v3448_v44 = vsel %vm664_vm9, 1.0, %v4049_v13  ;;  %v6583_v15 = vld [vmem:[#allocation16_spill] sm:$0xff] }
 0x20b   : > { %v3636_v9 = vsel %vm2004_vm4, 1.0, %v4049_v13  ;;  %vm663_vm11 = vcmp.eq.s32.totalorder %v6575_v30, %v4825_v60  ;;  %vm887_vm12 = vcmp.eq.s32.totalorder %v6576_v41, %v4825_v60  ;;  %vm1783_vm4 = vcmp.eq.s32.totalorder %v5269_v11, %v4825_v60  ;;  %v6589_v30 = vld [vmem:[#allocation49_spill] sm:$0xff] }
 0x20c   : > { %v2350_v50 = vpack.c.bf16 %v2322_v40, %v2321_v59  ;;  %v2100_v6 = vadd.f32 %v3636_v9, %v1876_v61  ;;  %v6577_v40 = vld [vmem:[#allocation50_spill] sm:$0xff]  ;;  %v6578_v61 = vld [vmem:[#allocation77_spill] sm:$0xff]  ;;  %v3447_v37 = vsel %vm663_vm11, 1.0, %v4049_v13  ;;  %v3479_v59 = vsel %vm887_vm12, 1.0, %v4049_v13 }
 0x20d   : > { %3991 = vset.pattern.permute.xlu1 %v6567_v27  ;;  %v1931_v7 = vpop.permute.xlu0 %1930  ;;  %vm1336_vm14 = vcmp.eq.s32.totalorder %v6577_v40, %v4825_v60  ;;  %vm1111_vm15 = vcmp.eq.s32.totalorder %v6578_v61, %v4825_v60  ;;  %v983_v5 = vadd.f32 %v3479_v59, %v3447_v37  ;;  %vm665_vm6 = vcmp.eq.s32.totalorder %v6583_v15, %v4825_v60  ;;  %v6590_v61 = vld [vmem:[#allocation3_spill] sm:$0xff] }
 0x20e   : > { %855 = vperm.xlu1 %3991, %v6569_v35   ;;  %v5367_v45 = vpop.permute.xlu1 %1055  ;;  %v2324_v32 = vadd.f32 %v3668_v63, %v2100_v6  ;;  %vm2005_vm7 = vcmp.eq.s32.totalorder %v1931_v7, %v4825_v60  ;;  %3814 = vmatmul.mubr.msk.bf16.gmra.mrb[4].mxu0 %vm2379_vm13, %v2350_v50  ;;  %v3544_v19 = vsel %vm1336_vm14, 1.0, %v4049_v13  ;;  %v3511_v9 = vsel %vm1111_vm15, 1.0, %v4049_v13  ;;  %v6580_v6 = vld [vmem:[#allocation103_spill] sm:$0xff] }
 0x20f   : > { %v3637_v47 = vsel %vm2005_vm7, 1.0, %v4049_v13  ;;  %vm1559_vm2 = vcmp.eq.s32.totalorder %v6580_v6, %v4825_v60  ;;  %v1207_v36 = vadd.f32 %v3511_v9, %v983_v5  ;;  %vm1114_vm14 = vcmp.eq.s32.totalorder %v6589_v30, %v4825_v60 }
 0x210   : > { %v2351_v28 = vpack.c.bf16 %v2324_v32, %v2323_v8  ;;  %v2101_v48 = vadd.f32 %v3637_v47, %v1877_v39  ;;  %v3543_v39 = vsel %vm1335_vm1, 1.0, %v4049_v13  ;;  %v3575_v4 = vsel %vm1559_vm2, 1.0, %v4049_v13  ;;  %v6584_v47 = vld [vmem:[#allocation37_spill] sm:$0xff] }
 0x211   : > { %v1940_v31 = vpop.permute.xlu0 %1939  ;;  %v3608_v8 = vsel %vm1784_vm3, 1.0, %v4049_v13  ;;  %v6582_v32 = vmov 2   ;;  %vm889_vm7 = vcmp.eq.s32.totalorder %v6584_v47, %v4825_v60  ;;  %v1431_v55 = vadd.f32 %v3543_v39, %v1207_v36 }
 0x212   : > { %3992 = vset.pattern.permute.xlu1 %v6570_v20  ;;  %v2325_v38 = vadd.f32 %v3669_v53, %v2101_v48  ;;  %3817 = vmatprep.mubr.msk.bf16.mxu0 %vm2379_vm13, %v2351_v28  ;;  %vm2008_vm5 = vcmp.eq.s32.totalorder %v1940_v31, %v4825_v60  ;;  %v6585_v28 = vld [vmem:[#allocation15_spill] sm:$0xff]  ;;  %v3607_v48 = vsel %vm1783_vm4, 1.0, %v4049_v13  ;;  %v3481_v43 = vsel %vm889_vm7, 1.0, %v4049_v13 }
 0x213   : > { %1739 = vperm.xlu1 %3992, %v4257_v62   ;;  %v1937_v52 = vpop.permute.xlu1 %1936  ;;  %v3480_v62 = vsel %vm888_vm8, 1.0, %v4049_v13  ;;  %vm666_vm9 = vcmp.eq.s32.totalorder %v6585_v28, %v4825_v60  ;;  %v3640_v53 = vsel %vm2008_vm5, 1.0, %v4049_v13  ;;  %vm1337_vm15 = vcmp.eq.s32.totalorder %v5111_v21, %v4825_v60  ;;  %v6591_v21 = vld [vmem:[#allocation104_spill] sm:$0xff] }
 0x214   : > { %v2352_v51 = vpack.c.bf16 %v2326_v0, %v2325_v38  ;;  %v984_v18 = vadd.f32 %v3480_v62, %v3448_v44  ;;  %vm2007_vm8 = vcmp.eq.s32.totalorder %v1937_v52, %v4825_v60  ;;  %v6586_v0 = vld [vmem:[#allocation36_spill] sm:$0xff]  ;;  %v6587_v38 = vld [vmem:[#allocation57_spill] sm:$0xff]  ;;  %v3449_v52 = vsel %vm665_vm6, 1.0, %v4049_v13  ;;  %v6588_v62 = vld [vmem:[#allocation43_spill] sm:$0xff] }
 0x215   : > { %vm2232_vm10 = vcmp.eq.s32.totalorder %v6586_v0, %v4825_v60  ;;  %vm890_vm11 = vcmp.eq.s32.totalorder %v6587_v38, %v4825_v60  ;;  %v3639_v2 = vsel %vm2007_vm8, 1.0, %v4049_v13  ;;  %vm1113_vm12 = vcmp.eq.s32.totalorder %v6588_v62, %v4825_v60 }
 0x216   : > { %3818 = vmatmul.mubr.msk.bf16.gmra.mrb[8].mxu0 %vm2379_vm13, %v2352_v51  ;;  %v1208_v16 = vadd.f32 %v3512_v25, %v984_v18  ;;  %v1655_v51 = vadd.f32 %v3575_v4, %v1431_v55  ;;  %v3450_v44 = vsel %vm666_vm9, 1.0, %v4049_v13  ;;  %v3672_v25 = vsel %vm2232_vm10, 1.0, %v4049_v13  ;;  %v6592_v55 = vld [vmem:[#allocation7_spill] sm:$0xff] }
 0x217   : > { %3993 = vset.pattern.permute.xlu1 %v6567_v27  ;;  %v3482_v18 = vsel %vm890_vm11, 1.0, %v4049_v13  ;;  %v3513_v49 = vsel %vm1113_vm12, 1.0, %v4049_v13  ;;  %vm1561_vm2 = vcmp.eq.s32.totalorder %v5245_v34, %v4825_v60  ;;  %vm1562_vm3 = vcmp.eq.s32.totalorder %v6591_v21, %v4825_v60 }
 0x218   : > { %858 = vperm.xlu1 %3993, %v6572_v57   ;;  %v5388_v14 = vpop.permute.xlu1 %1058  ;;  %v1432_v63 = vadd.f32 %v3544_v19, %v1208_v16  ;;  %v1879_v41 = vadd.f32 %v3607_v48, %v1655_v51  ;;  %v985_v19 = vadd.f32 %v3481_v43, %v3449_v52  ;;  %v3514_v16 = vsel %vm1114_vm14, 1.0, %v4049_v13  ;;  %v6593_v51 = vld [vmem:[#allocation38_spill] sm:$0xff] }
 0x219   : > { %vm1785_vm4 = vcmp.eq.s32.totalorder %v5297_v58, %v4825_v60  ;;  %vm1786_vm5 = vcmp.eq.s32.totalorder %v5329_v33, %v4825_v60  ;;  %v3578_v58 = vsel %vm1562_vm3, 1.0, %v4049_v13  ;;  %vm2233_vm8 = vcmp.eq.s32.totalorder %v6593_v51, %v4825_v60 }
 0x21a   : > { %v2103_v59 = vadd.f32 %v3639_v2, %v1879_v41  ;;  %v1209_v3 = vadd.f32 %v3513_v49, %v985_v19  ;;  %v3609_v15 = vsel %vm1785_vm4, 1.0, %v4049_v13  ;;  %v3610_v33 = vsel %vm1786_vm5, 1.0, %v4049_v13  ;;  %v6594_v49 = vld [vmem:[#allocation59_spill] sm:$0xff] }
 0x21b   : > { %v3673_v2 = vsel %vm2233_vm8, 1.0, %v4049_v13  ;;  %vm892_vm10 = vcmp.eq.s32.totalorder %v6594_v49, %v4825_v60  ;;  %vm1116_vm12 = vcmp.eq.s32.totalorder %v5367_v45, %v4825_v60  ;;  %v6598_v45 = vld [vmem:[#allocation39_spill] sm:$0xff] }
 0x21c   : > { %3994 = vset.pattern.permute.xlu1 %v6570_v20  ;;  %v5402_v26 = vpop.permute.xlu1 %1061 }
 0x21d   : > { %1742 = vperm.xlu1 %3994, %v4273_v17   ;;  %v3576_v17 = vsel %vm1560_vm0, 1.0, %v4049_v13  ;;  %vm1338_vm0 = vcmp.eq.s32.totalorder %v5145_v23, %v4825_v60  ;;  %v3545_v23 = vsel %vm1337_vm15, 1.0, %v4049_v13 }
 0x21e   : > { %v1656_v7 = vadd.f32 %v3576_v17, %v1432_v63  ;;  %v986_v17 = vadd.f32 %v3482_v18, %v3450_v44  ;;  %v3546_v6 = vsel %vm1338_vm0, 1.0, %v4049_v13  ;;  %v1943_v63 = vpop.permute.xlu0 %1942  ;;  %v1433_v4 = vadd.f32 %v3545_v23, %v1209_v3  ;;  %v6600_v3 = vld [vmem:[#allocation6_spill] sm:$0xff] }
 0x21f   : > { %vm2009_vm6 = vcmp.eq.s32.totalorder %v1943_v63, %v4825_v60  ;;  %vm891_vm0 = vcmp.eq.s32.totalorder %v6598_v45, %v4825_v60 }
 0x220   : > { %v1880_v1 = vadd.f32 %v3608_v8, %v1656_v7  ;;  %v1210_v39 = vadd.f32 %v3514_v16, %v986_v17  ;;  %v3577_v7 = vsel %vm1561_vm2, 1.0, %v4049_v13  ;;  %v3641_v48 = vsel %vm2009_vm6, 1.0, %v4049_v13  ;;  %v6595_v16 = vld [vmem:[#allocation17_spill] sm:$0xff]  ;;  %v6596_v17 = vld [vmem:[#allocation10_spill] sm:$0xff] }
 0x221   : > { %1745 = vperm.xlu1 %3994, %v6538_v24   ;;  %v5419_v50 = vpop.permute.xlu1 %1945  ;;  %v1657_v47 = vadd.f32 %v3577_v7, %v1433_v4  ;;  %vm668_vm11 = vcmp.eq.s32.totalorder %v6595_v16, %v4825_v60  ;;  %v6601_v4 = vld [vmem:[#allocation90_spill] sm:$0xff]  ;;  %v6608_v16 = vld [vmem:[#allocation11_spill] sm:$0xff] }
 0x222   : > { %v2104_v40 = vadd.f32 %v3640_v53, %v1880_v1  ;;  %v1434_v8 = vadd.f32 %v3546_v6, %v1210_v39  ;;  %vm2010_vm7 = vcmp.eq.s32.totalorder %v5419_v50, %v4825_v60  ;;  %vm1339_vm3 = vcmp.eq.s32.totalorder %v6601_v4, %v4825_v60 }
 0x223   : > { %v1881_v53 = vadd.f32 %v3609_v15, %v1657_v47  ;;  %v3642_v38 = vsel %vm2010_vm7, 1.0, %v4049_v13  ;;  %v1952_v47 = vpop.permute.xlu0 %1951 }
 0x224   : > { %v2328_v31 = vadd.f32 %v3672_v25, %v2104_v40  ;;  %v1658_v0 = vadd.f32 %v3578_v58, %v1434_v8  ;;  %v6602_v8 = vld [vmem:[#allocation53_spill] sm:$0xff]  ;;  %vm2012_vm7 = vcmp.eq.s32.totalorder %v1952_v47, %v4825_v60 }
 0x225   : > { %3995 = vset.pattern.permute.xlu1 %v6582_v32  ;;  %v2105_v52 = vadd.f32 %v3641_v48, %v1881_v53  ;;  %vm1788_vm4 = vcmp.eq.s32.totalorder %v6602_v8, %v4825_v60  ;;  %v6603_v53 = vld [vmem:[#allocation106_spill] sm:$0xff] }
 0x226   : > { %1079 = vperm.xlu1 %3995, %v6569_v35   ;;  %v5438_v11 = vpop.permute.xlu1 %1279  ;;  %v1882_v1 = vadd.f32 %v3610_v33, %v1658_v0  ;;  %vm1563_vm5 = vcmp.eq.s32.totalorder %v6603_v53, %v4825_v60  ;;  %v3612_v51 = vsel %vm1788_vm4, 1.0, %v4049_v13 }
 0x227   : > { %v2329_v30 = vadd.f32 %v3673_v2, %v2105_v52  ;;  %vm1340_vm14 = vcmp.eq.s32.totalorder %v5438_v11, %v4825_v60  ;;  %v6599_v11 = vld [vmem:[#allocation78_spill] sm:$0xff]  ;;  %v6606_v2 = vld [vmem:[#allocation61_spill] sm:$0xff] }
 0x228   : > { %v2106_v43 = vadd.f32 %v3642_v38, %v1882_v1  ;;  %v3548_v6 = vsel %vm1340_vm14, 1.0, %v4049_v13  ;;  %vm1115_vm2 = vcmp.eq.s32.totalorder %v6599_v11, %v4825_v60  ;;  %v3547_v38 = vsel %vm1339_vm3, 1.0, %v4049_v13  ;;  %v6604_v1 = vld [vmem:[#allocation20_spill] sm:$0xff] }
 0x229   : > { %v3515_v15 = vsel %vm1115_vm2, 1.0, %v4049_v13  ;;  %vm669_vm6 = vcmp.eq.s32.totalorder %v6604_v1, %v4825_v60 }
 0x22a   : > { %3996 = vset.pattern.permute.xlu1 %v6443_v42 }
 0x22b   : > { %1960 = vperm.xlu1 %3996, %v6590_v61   ;;  %v2161_v37 = vpop.permute.xlu1 %2160 }
 0x22c   : > { %vm2231_vm1 = vcmp.eq.s32.totalorder %v2161_v37, %v4825_v60 }
 0x22d   : > { %v3671_v9 = vsel %vm2231_vm1, 1.0, %v4049_v13 }
 0x22e   : > { %v2327_v5 = vadd.f32 %v3671_v9, %v2103_v59  ;;  %v3484_v9 = vsel %vm892_vm10, 1.0, %v4049_v13  ;;  %vm894_vm10 = vcmp.eq.s32.totalorder %v6606_v2, %v4825_v60 }
 0x22f   : > { %3997 = vset.pattern.permute.xlu1 %v6582_v32 }
 0x230   : > { %v2353_v36 = vpack.c.bf16 %v2328_v31, %v2327_v5  ;;  %1082 = vperm.xlu1 %3997, %v6572_v57   ;;  %v5478_v34 = vpop.permute.xlu1 %1282  ;;  %v3516_v31 = vsel %vm1116_vm12, 1.0, %v4049_v13  ;;  %v6597_v5 = vld [vmem:[#allocation18_spill] sm:$0xff] }
 0x231   : > { %vm667_vm15 = vcmp.eq.s32.totalorder %v6597_v5, %v4825_v60 }
 0x232   : > { %3821 = vmatprep.mubr.msk.bf16.mxu0 %vm2379_vm13, %v2353_v36  ;;  %v3451_v39 = vsel %vm667_vm15, 1.0, %v4049_v13  ;;  %v3483_v36 = vsel %vm891_vm0, 1.0, %v4049_v13  ;;  %vm1117_vm15 = vcmp.eq.s32.totalorder %v5388_v14, %v4825_v60  ;;  %vm1118_vm0 = vcmp.eq.s32.totalorder %v5402_v26, %v4825_v60  ;;  %v6610_v26 = vld [vmem:[#allocation107_spill] sm:$0xff] }
 0x233   : > { %v987_v48 = vadd.f32 %v3483_v36, %v3451_v39 }
 0x234   : > { %1085 = vperm.xlu1 %3997, %v6592_v55   ;;  %v5493_v28 = vpop.permute.xlu1 %1285 }
 0x235   : > { %v1211_v52 = vadd.f32 %v3515_v15, %v987_v48  ;;  %vm1342_vm2 = vcmp.eq.s32.totalorder %v5493_v28, %v4825_v60  ;;  %v1955_v48 = vpop.permute.xlu0 %1954 }
 0x236   : > { %v3550_v15 = vsel %vm1342_vm2, 1.0, %v4049_v13 }
 0x238   : > { %3998 = vset.pattern.permute.xlu1 %v6443_v42 }
 0x239   : > { %1969 = vperm.xlu1 %3998, %v6538_v24   ;;  %v2170_v50 = vpop.permute.xlu1 %2169 }
 0x23a   : > { %vm2234_vm9 = vcmp.eq.s32.totalorder %v2170_v50, %v4825_v60  ;;  %v6605_v50 = vld [vmem:[#allocation41_spill] sm:$0xff] }
 0x23b   : > { %v3674_v62 = vsel %vm2234_vm9, 1.0, %v4049_v13  ;;  %vm893_vm9 = vcmp.eq.s32.totalorder %v6605_v50, %v4825_v60 }
 0x23c   : > { %v2330_v41 = vadd.f32 %v3674_v62, %v2106_v43  ;;  %v3579_v43 = vsel %vm1563_vm5, 1.0, %v4049_v13  ;;  %v1435_v62 = vadd.f32 %v3547_v38, %v1211_v52 }
 0x23d   : > { %3999 = vset.pattern.permute.xlu1 %v6429_v46 }
 0x23e   : > { %v2354_v40 = vpack.c.bf16 %v2330_v41, %v2329_v30  ;;  %1303 = vperm.xlu1 %3999, %v6569_v35   ;;  %v1504_v44 = vpop.permute.xlu1 %1503 }
 0x23f   : > { %vm1564_vm1 = vcmp.eq.s32.totalorder %v1504_v44, %v4825_v60  ;;  %v3453_v44 = vsel %vm669_vm6, 1.0, %v4049_v13  ;;  %vm1566_vm6 = vcmp.eq.s32.totalorder %v6610_v26, %v4825_v60  ;;  %v6616_v26 = vld [vmem:[#allocation23_spill] sm:$0xff] }
 0x240   : > { %3822 = vmatmul.mubr.msk.bf16.gmra.mrb[12].mxu0 %vm2379_vm13, %v2354_v40  ;;  %v3580_v7 = vsel %vm1564_vm1, 1.0, %v4049_v13  ;;  %v6607_v40 = vld [vmem:[#allocation19_spill] sm:$0xff]  ;;  %vm1341_vm1 = vcmp.eq.s32.totalorder %v5478_v34, %v4825_v60  ;;  %v3582_v52 = vsel %vm1566_vm6, 1.0, %v4049_v13 }
 0x241   : > { %vm670_vm12 = vcmp.eq.s32.totalorder %v6607_v40, %v4825_v60  ;;  %v3549_v4 = vsel %vm1341_vm1, 1.0, %v4049_v13  ;;  %v6611_v40 = vld [vmem:[#allocation42_spill] sm:$0xff] }
 0x242   : > { %4000 = vset.pattern.permute.xlu1 %v6424_v54  ;;  %v5509_v25 = vpop.permute.xlu1 %1506 }
 0x243   : > { %2184 = vperm.xlu1 %4000, %v6590_v61   ;;  %vm1565_vm3 = vcmp.eq.s32.totalorder %v5509_v25, %v4825_v60 }
 0x244   : > { %v3581_v47 = vsel %vm1565_vm3, 1.0, %v4049_v13 }
 0x247   : > { %4001 = vset.pattern.permute.xlu1 %v6429_v46  ;;  %v5513_v18 = vpop.permute.xlu1 %1724 }
 0x248   : > { %1306 = vperm.xlu1 %4001, %v6572_v57   ;;  %vm1787_vm8 = vcmp.eq.s32.totalorder %v5513_v18, %v4825_v60  ;;  %v3644_v18 = vsel %vm2012_vm7, 1.0, %v4049_v13  ;;  %vm2013_vm7 = vcmp.eq.s32.totalorder %v1955_v48, %v4825_v60 }
 0x249   : > { %v3611_v49 = vsel %vm1787_vm8, 1.0, %v4049_v13  ;;  %v3645_v2 = vsel %vm2013_vm7, 1.0, %v4049_v13 }
 0x24b   : > { %v5516_v37 = vpop.permute.xlu1 %1730 }
 0x24c   : > { %1309 = vperm.xlu1 %4001, %v6592_v55   ;;  %vm1789_vm5 = vcmp.eq.s32.totalorder %v5516_v37, %v4825_v60 }
 0x24f   : > { %v5519_v59 = vpop.permute.xlu1 %1733 }
 0x250   : > { %4003 = vset.pattern.permute.xlu1 %v6424_v54  ;;  %vm1790_vm8 = vcmp.eq.s32.totalorder %v5519_v59, %v4825_v60 }
 0x251   : > { %2193 = vperm.xlu1 %4003, %v6538_v24  }
 0x254   : > { %v5523_v19 = vpop.permute.xlu1 %1067 }
 0x255   : > { %4004 = vset.pattern.permute.xlu1 %v6426_v56 }
 0x256   : > { %1527 = vperm.xlu1 %4004, %v6569_v35  }
 0x259   : > { %v1949_v61 = vpop.permute.xlu1 %1948 }
 0x25a   : > { %1530 = vperm.xlu1 %4004, %v6572_v57   ;;  %v3452_v57 = vsel %vm668_vm11, 1.0, %v4049_v13  ;;  %vm2011_vm11 = vcmp.eq.s32.totalorder %v1949_v61, %v4825_v60  ;;  %v3485_v61 = vsel %vm893_vm9, 1.0, %v4049_v13 }
 0x25b   : > { %v988_v21 = vadd.f32 %v3484_v9, %v3452_v57  ;;  %v6609_v9 = vld [vmem:[#allocation40_spill] sm:$0xff]  ;;  %v1659_v57 = vadd.f32 %v3579_v43, %v1435_v62  ;;  %v989_v11 = vadd.f32 %v3485_v61, %v3453_v44  ;;  %v3614_v62 = vsel %vm1790_vm8, 1.0, %v4049_v13 }
 0x25c   : > { %vm2236_vm14 = vcmp.eq.s32.totalorder %v6609_v9, %v4825_v60 }
 0x25d   : > { %v1212_v63 = vadd.f32 %v3516_v31, %v988_v21  ;;  %v3643_v31 = vsel %vm2011_vm11, 1.0, %v4049_v13  ;;  %v1883_v45 = vadd.f32 %v3611_v49, %v1659_v57  ;;  %v3454_v21 = vsel %vm670_vm12, 1.0, %v4049_v13 }
 0x25e   : > { %4005 = vset.pattern.permute.xlu1 %v6567_v27  ;;  %v5535_v24 = vpop.permute.xlu1 %1070 }
 0x25f   : > { %864 = vperm.xlu1 %4005, %v6596_v17   ;;  %v1436_v58 = vadd.f32 %v3548_v6, %v1212_v63  ;;  %v3676_v6 = vsel %vm2236_vm14, 1.0, %v4049_v13  ;;  %v3517_v63 = vsel %vm1117_vm15, 1.0, %v4049_v13  ;;  %v2107_v39 = vadd.f32 %v3643_v31, %v1883_v45 }
 0x260   : > { %v1213_v8 = vadd.f32 %v3517_v63, %v989_v11  ;;  %vm1120_vm15 = vcmp.eq.s32.totalorder %v5523_v19, %v4825_v60 }
 0x261   : > { %v1660_v0 = vadd.f32 %v3580_v7, %v1436_v58  ;;  %v3518_v7 = vsel %vm1118_vm0, 1.0, %v4049_v13 }
 0x262   : > { %v5548_v23 = vpop.permute.xlu1 %1073 }
 0x263   : > { %4006 = vset.pattern.permute.xlu1 %v6570_v20  ;;  %v1884_v30 = vadd.f32 %v3612_v51, %v1660_v0  ;;  %v1437_v0 = vadd.f32 %v3549_v4, %v1213_v8  ;;  %v3613_v51 = vsel %vm1789_vm5, 1.0, %v4049_v13  ;;  %v3520_v4 = vsel %vm1120_vm15, 1.0, %v4049_v13 }
 0x264   : > { %1748 = vperm.xlu1 %4006, %v6600_v3  }
 0x265   : > { %v2108_v5 = vadd.f32 %v3644_v18, %v1884_v30  ;;  %v1661_v1 = vadd.f32 %v3581_v47, %v1437_v0  ;;  %v6618_v0 = vld [vmem:[#allocation22_spill] sm:$0xff] }
 0x266   : > { %vm674_vm6 = vcmp.eq.s32.totalorder %v6618_v0, %v4825_v60 }
 0x267   : > { %v5563_v33 = vpop.permute.xlu1 %1957  ;;  %v2332_v58 = vadd.f32 %v3676_v6, %v2108_v5  ;;  %v1885_v50 = vadd.f32 %v3613_v51, %v1661_v1 }
 0x268   : > { %1751 = vperm.xlu1 %4006, %v6569_v35   ;;  %vm2014_vm9 = vcmp.eq.s32.totalorder %v5563_v33, %v4825_v60 }
 0x269   : > { %v3646_v59 = vsel %vm2014_vm9, 1.0, %v4049_v13  ;;  %v2109_v44 = vadd.f32 %v3645_v2, %v1885_v50  ;;  %v6620_v50 = vld [vmem:[#allocation44_spill] sm:$0xff]  ;;  %v3458_v2 = vsel %vm674_vm6, 1.0, %v4049_v13 }
 0x26a   : > { %vm2240_vm9 = vcmp.eq.s32.totalorder %v6620_v50, %v4825_v60  ;;  %v6626_v50 = vld [vmem:[#allocation27_spill] sm:$0xff] }
 0x26c   : > { %4008 = vset.pattern.permute.xlu1 %v6567_v27  ;;  %v5582_v41 = vpop.permute.xlu1 %1291  ;;  %v3486_v27 = vsel %vm894_vm10, 1.0, %v4049_v13  ;;  %vm2237_vm10 = vcmp.eq.s32.totalorder %v6611_v40, %v4825_v60 }
 0x26d   : > { %873 = vperm.xlu1 %4008, %v6608_v16   ;;  %v990_v36 = vadd.f32 %v3486_v27, %v3454_v21  ;;  %v3677_v9 = vsel %vm2237_vm10, 1.0, %v4049_v13  ;;  %vm1344_vm0 = vcmp.eq.s32.totalorder %v5582_v41, %v4825_v60  ;;  %vm1121_vm10 = vcmp.eq.s32.totalorder %v5535_v24, %v4825_v60 }
 0x26e   : > { %v2333_v57 = vadd.f32 %v3677_v9, %v2109_v44  ;;  %v3552_v19 = vsel %vm1344_vm0, 1.0, %v4049_v13  ;;  %v3680_v24 = vsel %vm2240_vm9, 1.0, %v4049_v13  ;;  %v6622_v44 = vld [vmem:[#allocation67_spill] sm:$0xff] }
 0x26f   : > { %v1214_v53 = vadd.f32 %v3518_v7, %v990_v36  ;;  %v6614_v36 = vld [vmem:[#allocation21_spill] sm:$0xff]  ;;  %vm902_vm15 = vcmp.eq.s32.totalorder %v6622_v44, %v4825_v60 }
 0x270   : > { %vm672_vm14 = vcmp.eq.s32.totalorder %v6614_v36, %v4825_v60 }
 0x271   : > { %4009 = vset.pattern.permute.xlu1 %v6570_v20  ;;  %v2173_v14 = vpop.permute.xlu1 %2172  ;;  %v1438_v37 = vadd.f32 %v3550_v15, %v1214_v53  ;;  %v3456_v7 = vsel %vm672_vm14, 1.0, %v4049_v13  ;;  %v6617_v53 = vld [vmem:[#allocation45_spill] sm:$0xff] }
 0x272   : > { %vm2235_vm4 = vcmp.eq.s32.totalorder %v2173_v14, %v4825_v60  ;;  %1757 = vperm.xlu1 %4009, %v6592_v55   ;;  %vm897_vm5 = vcmp.eq.s32.totalorder %v6617_v53, %v4825_v60  ;;  %v6625_v53 = vld [vmem:[#allocation46_spill] sm:$0xff] }
 0x273   : > { %v3675_v28 = vsel %vm2235_vm4, 1.0, %v4049_v13  ;;  %v1662_v30 = vadd.f32 %v3582_v52, %v1438_v37  ;;  %vm673_vm4 = vcmp.eq.s32.totalorder %v6616_v26, %v4825_v60  ;;  %v6619_v37 = vld [vmem:[#allocation65_spill] sm:$0xff] }
 0x274   : > { %v2331_v25 = vadd.f32 %v3675_v28, %v2107_v39  ;;  %v6615_v28 = vld [vmem:[#allocation9_spill] sm:$0xff]  ;;  %vm898_vm8 = vcmp.eq.s32.totalorder %v6619_v37, %v4825_v60  ;;  %v3457_v52 = vsel %vm673_vm4, 1.0, %v4049_v13 }
 0x275   : > { %v1886_v18 = vadd.f32 %v3614_v62, %v1662_v30  ;;  %v3490_v30 = vsel %vm898_vm8, 1.0, %v4049_v13 }
 0x276   : > { %4010 = vset.pattern.permute.xlu1 %v6582_v32  ;;  %v5627_v34 = vpop.permute.xlu1 %1294  ;;  %v2355_v38 = vpack.c.bf16 %v2332_v58, %v2331_v25  ;;  %v1964_v58 = vpop.permute.xlu0 %1963 }
 0x277   : > { %1088 = vperm.xlu1 %4010, %v6596_v17   ;;  %v2110_v33 = vadd.f32 %v3646_v59, %v1886_v18  ;;  %vm2016_vm3 = vcmp.eq.s32.totalorder %v1964_v58, %v4825_v60  ;;  %vm1345_vm14 = vcmp.eq.s32.totalorder %v5627_v34, %v4825_v60  ;;  %v3521_v18 = vsel %vm1121_vm10, 1.0, %v4049_v13 }
 0x278   : > { %3825 = vmatprep.mubr.msk.bf16.mxu1 %vm2379_vm13, %v2355_v38  ;;  %v3648_v1 = vsel %vm2016_vm3, 1.0, %v4049_v13  ;;  %v994_v34 = vadd.f32 %v3490_v30, %v3458_v2  ;;  %v3553_v9 = vsel %vm1345_vm14, 1.0, %v4049_v13 }
 0x27a   : > { %v5638_v43 = vpop.permute.xlu1 %1297 }
 0x27b   : > { %4011 = vset.pattern.permute.xlu1 %v6443_v42  ;;  %vm1346_vm0 = vcmp.eq.s32.totalorder %v5638_v43, %v4825_v60  ;;  %v1967_v43 = vpop.permute.xlu0 %1966 }
 0x27c   : > { %1972 = vperm.xlu1 %4011, %v6600_v3   ;;  %vm2017_vm6 = vcmp.eq.s32.totalorder %v1967_v43, %v4825_v60 }
 0x27f   : > { %v2182_v49 = vpop.permute.xlu1 %2181 }
 0x280   : > { %vm2238_vm11 = vcmp.eq.s32.totalorder %v2182_v49, %v4825_v60  ;;  %1975 = vperm.xlu1 %4011, %v6569_v35  }
 0x281   : > { %v3678_v61 = vsel %vm2238_vm11, 1.0, %v4049_v13 }
 0x282   : > { %v2334_v27 = vadd.f32 %v3678_v61, %v2110_v33 }
 0x284   : > { %v2356_v31 = vpack.c.bf16 %v2334_v27, %v2333_v57  ;;  %4013 = vset.pattern.permute.xlu1 %v6582_v32  ;;  %v1516_v5 = vpop.permute.xlu1 %1515 }
 0x285   : > { %1097 = vperm.xlu1 %4013, %v6608_v16   ;;  %vm1568_vm1 = vcmp.eq.s32.totalorder %v1516_v5, %v4825_v60  ;;  %v3554_v5 = vsel %vm1346_vm0, 1.0, %v4049_v13 }
 0x286   : > { %3826 = vmatmul.mubr.msk.bf16.vlgmr.msra.gmra.mrb[0].mxu1 %vm2379_vm13, %v2356_v31  ;;  %v3584_v41 = vsel %vm1568_vm1, 1.0, %v4049_v13 }
 0x288   : > { %v5654_v45 = vpop.permute.xlu1 %1518 }
 0x289   : > { %4014 = vset.pattern.permute.xlu1 %v6443_v42  ;;  %vm1569_vm1 = vcmp.eq.s32.totalorder %v5654_v45, %v4825_v60 }
 0x28a   : > { %1981 = vperm.xlu1 %4014, %v6592_v55   ;;  %v3585_v45 = vsel %vm1569_vm1, 1.0, %v4049_v13 }
 0x28d   : > { %v5658_v21 = vpop.permute.xlu1 %855 }
 0x28e   : > { %4015 = vset.pattern.permute.xlu1 %v6429_v46 }
 0x28f   : > { %1312 = vperm.xlu1 %4015, %v6596_v17  }
 0x292   : > { %v1740_v6 = vpop.permute.xlu1 %1739 }
 0x293   : > { %4016 = vset.pattern.permute.xlu1 %v6424_v54  ;;  %vm1792_vm2 = vcmp.eq.s32.totalorder %v1740_v6, %v4825_v60  ;;  %v6623_v6 = vld [vmem:[#allocation110_spill] sm:$0xff] }
 0x294   : > { %2196 = vperm.xlu1 %4016, %v6600_v3   ;;  %v3616_v47 = vsel %vm1792_vm2, 1.0, %v4049_v13 }
 0x297   : > { %v5664_v32 = vpop.permute.xlu1 %858 }
 0x298   : > { %2199 = vperm.xlu1 %4016, %v6569_v35   ;;  %v6612_v35 = vld [vmem:[#allocation12_spill] sm:$0xff] }
 0x29c   : > { %4018 = vset.pattern.permute.xlu1 %v6429_v46  ;;  %v5668_v11 = vpop.permute.xlu1 %1742  ;;  %v6613_v46 = vld [vmem:[#allocation63_spill] sm:$0xff] }
 0x29d   : > { %1321 = vperm.xlu1 %4018, %v6608_v16   ;;  %vm896_vm12 = vcmp.eq.s32.totalorder %v6613_v46, %v4825_v60  ;;  %vm1793_vm3 = vcmp.eq.s32.totalorder %v5668_v11, %v4825_v60 }
 0x2a0   : > { %v5671_v63 = vpop.permute.xlu1 %1745 }
 0x2a1   : > { %4019 = vset.pattern.permute.xlu1 %v6424_v54 }
 0x2a2   : > { %2205 = vperm.xlu1 %4019, %v6592_v55  }
 0x2a5   : > { %v5675_v14 = vpop.permute.xlu1 %1079 }
 0x2a6   : > { %4020 = vset.pattern.permute.xlu1 %v6426_v56  ;;  %v3488_v56 = vsel %vm896_vm12, 1.0, %v4049_v13  ;;  %vm1122_vm12 = vcmp.eq.s32.totalorder %v5548_v23, %v4825_v60 }
 0x2a7   : > { %1536 = vperm.xlu1 %4020, %v6596_v17   ;;  %v992_v8 = vadd.f32 %v3488_v56, %v3456_v7  ;;  %v3522_v33 = vsel %vm1122_vm12, 1.0, %v4049_v13  ;;  %v3617_v56 = vsel %vm1793_vm3, 1.0, %v4049_v13  ;;  %vm901_vm12 = vcmp.eq.s32.totalorder %v5664_v32, %v4825_v60 }
 0x2a8   : > { %v1218_v11 = vadd.f32 %v3522_v33, %v994_v34  ;;  %v3493_v2 = vsel %vm901_vm12, 1.0, %v4049_v13  ;;  %vm1124_vm12 = vcmp.eq.s32.totalorder %v5675_v14, %v4825_v60  ;;  %v6633_v14 = vld [vmem:[#allocation111_spill] sm:$0xff] }
 0x2a9   : > { %v1216_v25 = vadd.f32 %v3520_v4, %v992_v8 }
 0x2aa   : > { %v1961_v3 = vpop.permute.xlu1 %1960  ;;  %v1442_v7 = vadd.f32 %v3554_v5, %v1218_v11 }
 0x2ab   : > { %1542 = vperm.xlu1 %4020, %v6612_v35   ;;  %v1440_v15 = vadd.f32 %v3552_v19, %v1216_v25  ;;  %vm2015_vm7 = vcmp.eq.s32.totalorder %v1961_v3, %v4825_v60  ;;  %v6624_v25 = vld [vmem:[#allocation113_spill] sm:$0xff] }
 0x2ac   : > { %v3647_v62 = vsel %vm2015_vm7, 1.0, %v4049_v13  ;;  %vm1794_vm7 = vcmp.eq.s32.totalorder %v5671_v63, %v4825_v60  ;;  %vm1574_vm8 = vcmp.eq.s32.totalorder %v6624_v25, %v4825_v60  ;;  %v3649_v63 = vsel %vm2017_vm6, 1.0, %v4049_v13 }
 0x2ad   : > { %v1664_v48 = vadd.f32 %v3584_v41, %v1440_v15  ;;  %v2111_v23 = vadd.f32 %v3647_v62, %v5123_v22  ;;  %v3494_v22 = vsel %vm902_vm15, 1.0, %v4049_v13  ;;  %v3618_v15 = vsel %vm1794_vm7, 1.0, %v4049_v13  ;;  %v4029_v62 = vld [vmem:[%s6337_s3] sm:$0xff]  }
 0x2ae   : > { %vm677_vm15 = vcmp.eq.s32.totalorder %v6626_v50, %v4825_v60  ;;  %3841 = vmatprep.subr.bf16.mxu1 %v4029_v62 }
 0x2af   : > { %1545 = vperm.xlu1 %4020, %v6608_v16   ;;  %v5683_v39 = vpop.permute.xlu1 %1082  ;;  %v1888_v38 = vadd.f32 %v3616_v47, %v1664_v48  ;;  %v3461_v30 = vsel %vm677_vm15, 1.0, %v4049_v13  ;;  %3842 = vmatpush3.bf16.msra.mxu1 %v4029_v62  ;;  %v6632_v62 = vld [vmem:[#allocation92_spill] sm:$0xff] }
 0x2b0   : > { %vm1125_vm0 = vcmp.eq.s32.totalorder %v5683_v39, %v4825_v60  ;;  %v4030_v39 = vld [vmem:[%s6337_s3 + $0x8] sm:$0xff]   ;;  %v997_v44 = vadd.f32 %v3493_v2, %v3461_v30 }
 0x2b1   : > { %v2112_v59 = vadd.f32 %v3648_v1, %v1888_v38  ;;  %3843 = vmatprep.subr.bf16.mxu1 %v4030_v39 }
 0x2b3   : > { %4022 = vset.pattern.permute.xlu1 %v6570_v20  ;;  %v5693_v55 = vpop.permute.xlu1 %1085  ;;  %v2336_v27 = vadd.f32 %v3680_v24, %v2112_v59  ;;  %v3525_v59 = vsel %vm1125_vm0, 1.0, %v4049_v13  ;;  %3844 = vmatpush3.bf16.msra.mxu1 %v4030_v39  ;;  %vm1571_vm0 = vcmp.eq.s32.totalorder %v6633_v14, %v4825_v60 }
 0x2b4   : > { %1763 = vperm.xlu1 %4022, %v6615_v28   ;;  %vm1126_vm4 = vcmp.eq.s32.totalorder %v5693_v55, %v4825_v60 }
 0x2b5   : > { %v3526_v55 = vsel %vm1126_vm4, 1.0, %v4049_v13 }
 0x2b8   : > { %1766 = vperm.xlu1 %4022, %v6612_v35   ;;  %v5703_v20 = vpop.permute.xlu1 %1969 }
 0x2b9   : > { %vm2018_vm9 = vcmp.eq.s32.totalorder %v5703_v20, %v4825_v60  ;;  %v3590_v20 = vsel %vm1574_vm8, 1.0, %v4049_v13 }
 0x2bc   : > { %4024 = vset.pattern.permute.xlu1 %v6443_v42  ;;  %v3489_v42 = vsel %vm897_vm5, 1.0, %v4049_v13  ;;  %vm1570_vm5 = vcmp.eq.s32.totalorder %v6623_v6, %v4825_v60 }
 0x2bd   : > { %1984 = vperm.xlu1 %4024, %v6596_v17   ;;  %v5716_v51 = vpop.permute.xlu1 %1303  ;;  %v6621_v17 = vld [vmem:[#allocation26_spill] sm:$0xff]  ;;  %v993_v40 = vadd.f32 %v3489_v42, %v3457_v52  ;;  %v3586_v19 = vsel %vm1570_vm5, 1.0, %v4049_v13 }
 0x2be   : > { %vm678_vm11 = vcmp.eq.s32.totalorder %v6621_v17, %v4825_v60  ;;  %v1666_v47 = vadd.f32 %v3586_v19, %v1442_v7  ;;  %vm1348_vm15 = vcmp.eq.s32.totalorder %v5716_v51, %v4825_v60  ;;  %v1979_v51 = vpop.permute.xlu0 %1978 }
 0x2bf   : > { %v1217_v57 = vadd.f32 %v3521_v18, %v993_v40 }
 0x2c0   : > { %v1890_v38 = vadd.f32 %v3618_v15, %v1666_v47  ;;  %v6627_v15 = vld [vmem:[#allocation29_spill] sm:$0xff] }
 0x2c1   : > { %1990 = vperm.xlu1 %4024, %v6612_v35   ;;  %v1441_v3 = vadd.f32 %v3553_v9, %v1217_v57  ;;  %vm679_vm5 = vcmp.eq.s32.totalorder %v6627_v15, %v4825_v60 }
 0x2c2   : > { %v2185_v49 = vpop.permute.xlu1 %2184  ;;  %v3463_v47 = vsel %vm679_vm5, 1.0, %v4049_v13 }
 0x2c3   : > { %vm2239_vm2 = vcmp.eq.s32.totalorder %v2185_v49, %v4825_v60  ;;  %v1665_v4 = vadd.f32 %v3585_v45, %v1441_v3  ;;  %v1221_v49 = vadd.f32 %v3525_v59, %v997_v44  ;;  %v3524_v59 = vsel %vm1124_vm12, 1.0, %v4049_v13 }
 0x2c4   : > { %v3679_v61 = vsel %vm2239_vm2, 1.0, %v4049_v13  ;;  %vm1797_vm2 = vcmp.eq.s32.totalorder %v5132_v29, %v4825_v60 }
 0x2c5   : > { %v2335_v31 = vadd.f32 %v3679_v61, %v2111_v23  ;;  %1993 = vperm.xlu1 %4024, %v6608_v16   ;;  %v3462_v16 = vsel %vm678_vm11, 1.0, %v4049_v13  ;;  %v1889_v41 = vadd.f32 %v3617_v56, %v1665_v4  ;;  %vm2241_vm11 = vcmp.eq.s32.totalorder %v6625_v53, %v4825_v60 }
 0x2c6   : > { %v998_v8 = vadd.f32 %v3494_v22, %v3462_v16  ;;  %v3621_v9 = vsel %vm1797_vm2, 1.0, %v4049_v13 }
 0x2c7   : > { %v2357_v46 = vpack.c.bf16 %v2336_v27, %v2335_v31  ;;  %v1307_v36 = vpop.permute.xlu1 %1306  ;;  %v2113_v0 = vadd.f32 %v3649_v63, %v1889_v41 }
 0x2c8   : > { %vm1349_vm1 = vcmp.eq.s32.totalorder %v1307_v36, %v4825_v60 }
 0x2c9   : > { %4026 = vset.pattern.permute.xlu1 %v6424_v54  ;;  %3829 = vmatprep.mubr.msk.bf16.mxu1 %vm2379_vm13, %v2357_v46  ;;  %v1222_v54 = vadd.f32 %v3526_v55, %v998_v8  ;;  %v3557_v18 = vsel %vm1349_vm1, 1.0, %v4049_v13 }
 0x2ca   : > { %2211 = vperm.xlu1 %4026, %v6615_v28   ;;  %v3650_v28 = vsel %vm2018_vm9, 1.0, %v4049_v13  ;;  %v1445_v34 = vadd.f32 %v3557_v18, %v1221_v49  ;;  %vm900_vm9 = vcmp.eq.s32.totalorder %v5658_v21, %v4825_v60  ;;  %v3556_v49 = vsel %vm1348_vm15, 1.0, %v4049_v13 }
 0x2cb   : > { %v1310_v58 = vpop.permute.xlu1 %1309  ;;  %v2114_v52 = vadd.f32 %v3650_v28, %v1890_v38 }
 0x2cc   : > { %vm1350_vm10 = vcmp.eq.s32.totalorder %v1310_v58, %v4825_v60 }
 0x2cd   : > { %v3558_v48 = vsel %vm1350_vm10, 1.0, %v4049_v13 }
 0x2ce   : > { %v1446_v26 = vadd.f32 %v3558_v48, %v1222_v54  ;;  %2214 = vperm.xlu1 %4026, %v6612_v35   ;;  %v3681_v35 = vsel %vm2241_vm11, 1.0, %v4049_v13 }
 0x2cf   : > { %v2337_v17 = vadd.f32 %v3681_v35, %v2113_v0  ;;  %v6630_v35 = vld [vmem:[#allocation24_spill] sm:$0xff] }
 0x2d0   : > { %v2194_v37 = vpop.permute.xlu1 %2193  ;;  %v5791_v1 = vadd.f32 %v3590_v20, %v1446_v26  ;;  %vm676_vm10 = vcmp.eq.s32.totalorder %v6630_v35, %v4825_v60 }
 0x2d1   : > { %vm2242_vm14 = vcmp.eq.s32.totalorder %v2194_v37, %v4825_v60  ;;  %v6628_v37 = vld [vmem:[#allocation25_spill] sm:$0xff]  ;;  %v3460_v21 = vsel %vm676_vm10, 1.0, %v4049_v13 }
 0x2d2   : > { %v3682_v42 = vsel %vm2242_vm14, 1.0, %v4049_v13  ;;  %vm675_vm7 = vcmp.eq.s32.totalorder %v6628_v37, %v4825_v60  ;;  %vm1347_vm14 = vcmp.eq.s32.totalorder %v6632_v62, %v4825_v60 }
 0x2d3   : > { %v2338_v32 = vadd.f32 %v3682_v42, %v2114_v52  ;;  %v6629_v52 = vld [vmem:[#allocation47_spill] sm:$0xff]  ;;  %v6631_v42 = vld [vmem:[#allocation81_spill] sm:$0xff]  ;;  %v3459_v2 = vsel %vm675_vm7, 1.0, %v4049_v13  ;;  %v3555_v18 = vsel %vm1347_vm14, 1.0, %v4049_v13 }
 0x2d4   : > { %vm899_vm8 = vcmp.eq.s32.totalorder %v6629_v52, %v4825_v60  ;;  %vm1123_vm11 = vcmp.eq.s32.totalorder %v6631_v42, %v4825_v60 }
 0x2d5   : > { %v2358_v24 = vpack.c.bf16 %v2338_v32, %v2337_v17  ;;  %v5807_v40 = vpop.permute.xlu1 %1527  ;;  %v3491_v17 = vsel %vm899_vm8, 1.0, %v4049_v13  ;;  %v3492_v32 = vsel %vm900_vm9, 1.0, %v4049_v13  ;;  %v3523_v30 = vsel %vm1123_vm11, 1.0, %v4049_v13 }
 0x2d6   : > { %v996_v39 = vadd.f32 %v3492_v32, %v3460_v21  ;;  %vm1572_vm1 = vcmp.eq.s32.totalorder %v5807_v40, %v4825_v60  ;;  %vm2021_vm8 = vcmp.eq.s32.totalorder %v1979_v51, %v4825_v60 }
 0x2d7   : > { %3830 = vmatmul.mubr.msk.bf16.gmra.mrb[4].mxu1 %vm2379_vm13, %v2358_v24  ;;  %v995_v24 = vadd.f32 %v3491_v17, %v3459_v2 }
 0x2d9   : > { %v1531_v23 = vpop.permute.xlu1 %1530  ;;  %v5817_v33 = vpop.f32.mrb[0].mxu0 }
 0x2da   : > { %vm1573_vm3 = vcmp.eq.s32.totalorder %v1531_v23, %v4825_v60  ;;  %v5821_v57 = vpop.f32.mrb[1].mxu0  ;;  %v1219_v23 = vadd.f32 %v3523_v30, %v995_v24 }
 0x2db   : > { %v3589_v61 = vsel %vm1573_vm3, 1.0, %v4049_v13  ;;  %v5823_v43 = vpop.f32.mrb[2].mxu0 }
 0x2dc   : > { %v1669_v27 = vadd.f32 %v3589_v61, %v1445_v34  ;;  %v2590_v29 = vpack.c.bf16 %v5823_v43, %v5817_v33  ;;  %v5827_v31 = vpop.f32.mrb[3].mxu0  ;;  %v1220_v34 = vadd.f32 %v3524_v59, %v996_v39  ;;  %v3588_v61 = vsel %vm1572_vm1, 1.0, %v4049_v13 }
 0x2dd   : > { %v2589_v5 = vpack.c.bf16 %v5827_v31, %v5821_v57  ;;  %vm1799_vm1 = vcmp.eq.s32.totalorder %v5173_v12, %v4825_v60 }
 0x2de   : > { %v5829_v22 = vadd.f32 %v3621_v9, %v1669_v27  ;;  %v865_v45 = vpop.permute.xlu1 %864  ;;  %v3587_v9 = vsel %vm1571_vm0, 1.0, %v4049_v13  ;;  %v1443_v27 = vadd.f32 %v3555_v18, %v1219_v23  ;;  %v3623_v12 = vsel %vm1799_vm1, 1.0, %v4049_v13 }
 0x2df   : > { %vm903_vm4 = vcmp.eq.s32.totalorder %v865_v45, %v4825_v60  ;;  %v1444_v45 = vadd.f32 %v3556_v49, %v1220_v34  ;;  %v3653_v49 = vsel %vm2021_vm8, 1.0, %v4049_v13 }
 0x2e0   : > { %v3495_v54 = vsel %vm903_vm4, 1.0, %v4049_v13 }
 0x2e1   : > { %v5833_v6 = vpop.f32.mrb[4].mxu0  ;;  %v999_v28 = vadd.f32 %v3495_v54, %v3463_v47 }
 0x2e2   : > { %v5835_v11 = vpop.f32.mrb[5].mxu0 }
 0x2e3   : > { %v1749_v3 = vpop.permute.xlu1 %1748  ;;  %v5837_v46 = vpop.f32.mrb[6].mxu0 }
 0x2e4   : > { %v2592_v36 = vpack.c.bf16 %v5837_v46, %v5833_v6  ;;  %v5841_v16 = vpop.f32.mrb[7].mxu0  ;;  %vm1795_vm2 = vcmp.eq.s32.totalorder %v1749_v3, %v4825_v60  ;;  %v1667_v3 = vadd.f32 %v3587_v9, %v1443_v27  ;;  %v4032_v6 = vld [vmem:[%s6339_s5 + $0x8] sm:$0xff]  }
 0x2e5   : > { %v2591_v56 = vpack.c.bf16 %v5841_v16, %v5835_v11  ;;  %v3619_v40 = vsel %vm1795_vm2, 1.0, %v4049_v13 }
 0x2e6   : > { %v1891_v37 = vadd.f32 %v3619_v40, %v1667_v3 }
 0x2e7   : > { %v1752_v7 = vpop.permute.xlu1 %1751 }
 0x2e8   : > { %vm1796_vm3 = vcmp.eq.s32.totalorder %v1752_v7, %v4825_v60 }
 0x2e9   : > { %v5845_v4 = vpop.f32.mrb[8].mxu0  ;;  %v3620_v15 = vsel %vm1796_vm3, 1.0, %v4049_v13 }
 0x2ea   : > { %v5847_v55 = vpop.f32.mrb[9].mxu0 }
 0x2eb   : > { %v5849_v8 = vpop.f32.mrb[10].mxu0 }
 0x2ec   : > { %v5851_v19 = vpop.permute.xlu1 %873  ;;  %v2594_v25 = vpack.c.bf16 %v5849_v8, %v5845_v4  ;;  %v5855_v41 = vpop.f32.mrb[11].mxu0 }
 0x2ed   : > { %v2593_v58 = vpack.c.bf16 %v5855_v41, %v5847_v55  ;;  %vm906_vm15 = vcmp.eq.s32.totalorder %v5851_v19, %v4825_v60 }
 0x2ee   : > { %v3498_v3 = vsel %vm906_vm15, 1.0, %v4049_v13 }
 0x2f1   : > { %v5860_v63 = vpop.permute.xlu1 %1757 }
 0x2f2   : > { %vm1798_vm9 = vcmp.eq.s32.totalorder %v5860_v63, %v4825_v60  ;;  %v2117_v63 = vadd.f32 %v3653_v49, %v5829_v22  ;;  %v6634_v22 = vld [vmem:[#allocation30_spill] sm:$0xff]  ;;  %v6636_v49 = vld [vmem:[#allocation28_spill] sm:$0xff] }
 0x2f3   : > { %v3622_v23 = vsel %vm1798_vm9, 1.0, %v4049_v13  ;;  %vm682_vm0 = vcmp.eq.s32.totalorder %v6634_v22, %v4825_v60  ;;  %vm680_vm8 = vcmp.eq.s32.totalorder %v6636_v49, %v4825_v60  ;;  %v6642_v22 = vld [vmem:[#allocation115_spill] sm:$0xff] }
 0x2f4   : > { %v1894_v34 = vadd.f32 %v3622_v23, %v5791_v1  ;;  %v6637_v23 = vld [vmem:[#allocation31_spill] sm:$0xff]  ;;  %vm1576_vm15 = vcmp.eq.s32.totalorder %v6642_v22, %v4825_v60 }
 0x2f5   : > { %vm681_vm9 = vcmp.eq.s32.totalorder %v6637_v23, %v4825_v60 }
 0x2f6   : > { %v1089_v48 = vpop.permute.xlu1 %1088 }
 0x2f7   : > { %vm1127_vm6 = vcmp.eq.s32.totalorder %v1089_v48, %v4825_v60  ;;  %v1668_v48 = vadd.f32 %v3588_v61, %v1444_v45 }
 0x2f8   : > { %v3527_v26 = vsel %vm1127_vm6, 1.0, %v4049_v13 }
 0x2f9   : > { %v5868_v53 = vadd.f32 %v3527_v26, %v999_v28  ;;  %v5915_v28 = vpop.permute.xlu0 %1987  ;;  %v1892_v52 = vadd.f32 %v3620_v15, %v1668_v48 }
 0x2fb   : > { %v1973_v20 = vpop.permute.xlu1 %1972 }
 0x2fc   : > { %vm2019_vm4 = vcmp.eq.s32.totalorder %v1973_v20, %v4825_v60 }
 0x2fd   : > { %v3651_v26 = vsel %vm2019_vm4, 1.0, %v4049_v13  ;;  %v2203_v14 = vpop.permute.xlu0 %2202 }
 0x2fe   : > { %v2115_v62 = vadd.f32 %v3651_v26, %v1891_v37  ;;  %vm2245_vm11 = vcmp.eq.s32.totalorder %v2203_v14, %v4825_v60  ;;  %v3466_v26 = vsel %vm682_vm0, 1.0, %v4049_v13 }
 0x2ff   : > { %v1976_v0 = vpop.permute.xlu1 %1975  ;;  %v3685_v9 = vsel %vm2245_vm11, 1.0, %v4049_v13  ;;  %v1002_v37 = vadd.f32 %v3498_v3, %v3466_v26 }
 0x300   : > { %vm2020_vm5 = vcmp.eq.s32.totalorder %v1976_v0, %v4825_v60  ;;  %v2341_v45 = vadd.f32 %v3685_v9, %v2117_v63 }
 0x301   : > { %v3652_v20 = vsel %vm2020_vm5, 1.0, %v4049_v13  ;;  %vm1802_vm5 = vcmp.eq.s32.totalorder %v5200_v10, %v4825_v60  ;;  %v6638_v10 = vld [vmem:[#allocation70_spill] sm:$0xff] }
 0x302   : > { %v2116_v21 = vadd.f32 %v3652_v20, %v1892_v52 }
 0x304   : > { %v5870_v38 = vpop.permute.xlu1 %1097 }
 0x305   : > { %vm1130_vm2 = vcmp.eq.s32.totalorder %v5870_v38, %v4825_v60 }
 0x306   : > { %v3530_v20 = vsel %vm1130_vm2, 1.0, %v4049_v13 }
 0x309   : > { %v5878_v50 = vpop.permute.xlu1 %1981 }
 0x30a   : > { %vm2022_vm10 = vcmp.eq.s32.totalorder %v5878_v50, %v4825_v60 }
 0x30b   : > { %v3654_v51 = vsel %vm2022_vm10, 1.0, %v4049_v13  ;;  %vm905_vm10 = vcmp.eq.s32.totalorder %v6638_v10, %v4825_v60 }
 0x30c   : > { %v2118_v61 = vadd.f32 %v3654_v51, %v1894_v34  ;;  %v6639_v51 = vld [vmem:[#allocation83_spill] sm:$0xff]  ;;  %v6640_v34 = vld [vmem:[#allocation93_spill] sm:$0xff] }
 0x30d   : > { %vm1128_vm11 = vcmp.eq.s32.totalorder %v6639_v51, %v4825_v60 }
 0x30e   : > { %v1313_v44 = vpop.permute.xlu1 %1312 }
 0x30f   : > { %vm1351_vm12 = vcmp.eq.s32.totalorder %v1313_v44, %v4825_v60 }
 0x310   : > { %v3559_v40 = vsel %vm1351_vm12, 1.0, %v4049_v13  ;;  %vm1352_vm12 = vcmp.eq.s32.totalorder %v6640_v34, %v4825_v60 }
 0x311   : > { %v1447_v44 = vadd.f32 %v3559_v40, %v5868_v53 }
 0x313   : > { %v2197_v54 = vpop.permute.xlu1 %2196  ;;  %v5910_v47 = vpop.f32.mrb[12].mxu0 }
 0x314   : > { %vm2243_vm6 = vcmp.eq.s32.totalorder %v2197_v54, %v4825_v60  ;;  %v5913_v7 = vpop.f32.mrb[13].mxu0 }
 0x315   : > { %v5919_v0 = vpop.f32.mrb[14].mxu0  ;;  %v3683_v2 = vsel %vm2243_vm6, 1.0, %v4049_v13 }
 0x316   : > { %v2596_v35 = vpack.c.bf16 %v5919_v0, %v5910_v47  ;;  %v5923_v42 = vpop.f32.mrb[15].mxu0  ;;  %v2339_v59 = vadd.f32 %v3683_v2, %v2115_v62  ;;  %v1226_v2 = vadd.f32 %v3530_v20, %v1002_v37  ;;  %v2209_v37 = vpop.permute.xlu0 %2208 }
 0x317   : > { %v2595_v17 = vpack.c.bf16 %v5923_v42, %v5913_v7  ;;  %v2200_v32 = vpop.permute.xlu1 %2199  ;;  %v6070_v7 = vld [vmem:[%s6338_s4] ss:$0 sm:$0xff] }
 0x318   : > { %vm2244_vm7 = vcmp.eq.s32.totalorder %v2200_v32, %v4825_v60 }
 0x319   : > { %v3684_v30 = vsel %vm2244_vm7, 1.0, %v4049_v13 }
 0x31a   : > { %v2340_v24 = vadd.f32 %v3684_v30, %v2116_v21 }
 0x31c   : > { %v2359_v39 = vpack.c.bf16 %v2340_v24, %v2339_v59  ;;  %v1322_v18 = vpop.permute.xlu1 %1321  ;;  %v3626_v59 = vsel %vm1802_vm5, 1.0, %v4049_v13 }
 0x31d   : > { %vm1354_vm4 = vcmp.eq.s32.totalorder %v1322_v18, %v4825_v60  ;;  %v6635_v18 = vld [vmem:[#allocation68_spill] sm:$0xff] }
 0x31e   : > { %3833 = vmatprep.mubr.msk.bf16.mxu1 %vm2379_vm13, %v2359_v39  ;;  %v3562_v52 = vsel %vm1354_vm4, 1.0, %v4049_v13  ;;  %vm904_vm7 = vcmp.eq.s32.totalorder %v6635_v18, %v4825_v60  ;;  %vm2024_vm4 = vcmp.eq.s32.totalorder %v5915_v28, %v4825_v60 }
 0x31f   : > { %v1450_v62 = vadd.f32 %v3562_v52, %v1226_v2  ;;  %v3496_v63 = vsel %vm904_vm7, 1.0, %v4049_v13  ;;  %v3656_v49 = vsel %vm2024_vm4, 1.0, %v4049_v13 }
 0x321   : > { %v2206_v50 = vpop.permute.xlu1 %2205 }
 0x322   : > { %vm2246_vm14 = vcmp.eq.s32.totalorder %v2206_v50, %v4825_v60  ;;  %v3464_v50 = vsel %vm680_vm8, 1.0, %v4049_v13 }
 0x323   : > { %v3686_v27 = vsel %vm2246_vm14, 1.0, %v4049_v13  ;;  %v1000_v40 = vadd.f32 %v3496_v63, %v3464_v50 }
 0x324   : > { %v2342_v15 = vadd.f32 %v3686_v27, %v2118_v61  ;;  %v3465_v61 = vsel %vm681_vm9, 1.0, %v4049_v13  ;;  %v3497_v27 = vsel %vm905_vm10, 1.0, %v4049_v13 }
 0x326   : > { %v2360_v1 = vpack.c.bf16 %v2342_v15, %v2341_v45  ;;  %v1537_v54 = vpop.permute.xlu1 %1536  ;;  %v3528_v45 = vsel %vm1128_vm11, 1.0, %v4049_v13  ;;  %v6641_v15 = vld [vmem:[#allocation84_spill] sm:$0xff] }
 0x327   : > { %vm1575_vm3 = vcmp.eq.s32.totalorder %v1537_v54, %v4825_v60  ;;  %vm1129_vm14 = vcmp.eq.s32.totalorder %v6641_v15, %v4825_v60  ;;  %v1001_v54 = vadd.f32 %v3497_v27, %v3465_v61 }
 0x328   : > { %v3591_v48 = vsel %vm1575_vm3, 1.0, %v4049_v13  ;;  %3834 = vmatmul.mubr.msk.bf16.gmra.mrb[8].mxu1 %vm2379_vm13, %v2360_v1  ;;  %v3560_v1 = vsel %vm1352_vm12, 1.0, %v4049_v13  ;;  %vm3323_vm12 = vcmask 7168  }
 0x329   : > { %v1671_v19 = vadd.f32 %v3591_v48, %v1447_v44  ;;  %v1224_v44 = vadd.f32 %v3528_v45, %v1000_v40  ;;  %v3529_v48 = vsel %vm1129_vm14, 1.0, %v4049_v13 }
 0x32a   : > { %v1543_v38 = vpop.permute.xlu1 %1542  ;;  %v1225_v52 = vadd.f32 %v3529_v48, %v1001_v54 }
 0x32b   : > { %v1895_v53 = vadd.f32 %v3623_v12, %v1671_v19  ;;  %v3592_v19 = vsel %vm1576_vm15, 1.0, %v4049_v13  ;;  %v1448_v26 = vadd.f32 %v3560_v1, %v1224_v44  ;;  %v6643_v12 = vld [vmem:[#allocation94_spill] sm:$0xff]  ;;  %vm1577_vm3 = vcmp.eq.s32.totalorder %v1543_v38, %v4825_v60 }
 0x32c   : > { %vm1353_vm1 = vcmp.eq.s32.totalorder %v6643_v12, %v4825_v60 }
 0x32d   : > { %v1672_v2 = vadd.f32 %v3592_v19, %v1448_v26 }
 0x32e   : > { %v1546_v32 = vpop.permute.xlu1 %1545 }
 0x32f   : > { %vm1578_vm6 = vcmp.eq.s32.totalorder %v1546_v32, %v4825_v60 }
 0x330   : > { %v3594_v21 = vsel %vm1578_vm6, 1.0, %v4049_v13  ;;  %vm2247_vm6 = vcmp.eq.s32.totalorder %v2209_v37, %v4825_v60 }
 0x331   : > { %v1674_v30 = vadd.f32 %v3594_v21, %v1450_v62  ;;  %v3561_v62 = vsel %vm1353_vm1, 1.0, %v4049_v13  ;;  %v3687_v23 = vsel %vm2247_vm6, 1.0, %v4049_v13 }
 0x332   : > { %v1449_v18 = vadd.f32 %v3561_v62, %v1225_v52 }
 0x333   : > { %v1764_v24 = vpop.permute.xlu1 %1763  ;;  %v1898_v14 = vadd.f32 %v3626_v59, %v1674_v30  ;;  %v3593_v59 = vsel %vm1577_vm3, 1.0, %v4049_v13 }
 0x334   : > { %vm1800_vm0 = vcmp.eq.s32.totalorder %v1764_v24, %v4825_v60  ;;  %v2218_v24 = vpop.permute.xlu0 %2217  ;;  %v1673_v51 = vadd.f32 %v3593_v59, %v1449_v18 }
 0x335   : > { %v3624_v20 = vsel %vm1800_vm0, 1.0, %v4049_v13  ;;  %vm2250_vm9 = vcmp.eq.s32.totalorder %v2218_v24, %v4825_v60 }
 0x336   : > { %v1896_v30 = vadd.f32 %v3624_v20, %v1672_v2  ;;  %v3690_v45 = vsel %vm2250_vm9, 1.0, %v4049_v13 }
 0x337   : > { %v1767_v39 = vpop.permute.xlu1 %1766 }
 0x338   : > { %vm1801_vm5 = vcmp.eq.s32.totalorder %v1767_v39, %v4825_v60  ;;  %v2120_v63 = vadd.f32 %v3656_v49, %v1896_v30 }
 0x339   : > { %v3625_v28 = vsel %vm1801_vm5, 1.0, %v4049_v13 }
 0x33c   : > { %v1985_v9 = vpop.permute.xlu1 %1984 }
 0x33d   : > { %vm2023_vm2 = vcmp.eq.s32.totalorder %v1985_v9, %v4825_v60  ;;  %v1897_v9 = vadd.f32 %v3625_v28, %v1673_v51 }
 0x33e   : > { %v3655_v21 = vsel %vm2023_vm2, 1.0, %v4049_v13 }
 0x33f   : > { %v2119_v38 = vadd.f32 %v3655_v21, %v1895_v53 }
 0x340   : > { %v1991_v3 = vpop.permute.xlu1 %1990 }
 0x341   : > { %vm2025_vm8 = vcmp.eq.s32.totalorder %v1991_v3, %v4825_v60  ;;  %v2343_v50 = vadd.f32 %v3687_v23, %v2119_v38 }
 0x342   : > { %v3657_v34 = vsel %vm2025_vm8, 1.0, %v4049_v13 }
 0x343   : > { %v2121_v15 = vadd.f32 %v3657_v34, %v1897_v9 }
 0x344   : > { %v1994_v32 = vpop.permute.xlu1 %1993 }
 0x345   : > { %vm2026_vm7 = vcmp.eq.s32.totalorder %v1994_v32, %v4825_v60 }
 0x346   : > { %v3658_v10 = vsel %vm2026_vm7, 1.0, %v4049_v13 }
 0x347   : > { %v2122_v61 = vadd.f32 %v3658_v10, %v1898_v14 }
 0x349   : > { %v2212_v39 = vpop.permute.xlu1 %2211  ;;  %v2346_v54 = vadd.f32 %v3690_v45, %v2122_v61 }
 0x34a   : > { %vm2248_vm10 = vcmp.eq.s32.totalorder %v2212_v39, %v4825_v60 }
 0x34b   : > { %v3688_v53 = vsel %vm2248_vm10, 1.0, %v4049_v13 }
 0x34c   : > { %v2344_v27 = vadd.f32 %v3688_v53, %v2120_v63 }
 0x34d   : > { %v2215_v40 = vpop.permute.xlu1 %2214 }
 0x34e   : > { %v2361_v22 = vpack.c.bf16 %v2344_v27, %v2343_v50  ;;  %vm2249_vm11 = vcmp.eq.s32.totalorder %v2215_v40, %v4825_v60 }
 0x34f   : > { %v3689_v1 = vsel %vm2249_vm11, 1.0, %v4049_v13 }
 0x350   : > { %v2345_v44 = vadd.f32 %v3689_v1, %v2121_v15  ;;  %3837 = vmatprep.mubr.msk.bf16.mxu1 %vm2379_vm13, %v2361_v22 }
 0x352   : > { %v2362_v3 = vpack.c.bf16 %v2346_v54, %v2345_v44 }
 0x354   : > { %3838 = vmatmul.mubr.msk.bf16.gmra.mrb[12].mxu1 %vm2379_vm13, %v2362_v3 }
 0x355   : > { %3845 = vmatprep.mubr.msk.bf16.mxu1 %vm2379_vm13, %v2589_v5  ;;  %v4031_v5 = vld [vmem:[%s6339_s5] sm:$0xff]  }
 0x356   : > { %3877 = vmatprep.subr.bf16.mxu0 %v4031_v5 }
 0x357   : > { %3878 = vmatpush3.bf16.msra.mxu0 %v4031_v5 }
 0x358   : > { %3879 = vmatprep.subr.bf16.mxu0 %v4032_v6 }
 0x359   : > { %v3827_v14 = vpop.f32.mrb[0].mxu1 }
 0x35a   : > { %v2526_v48 = vpop.f32.mrb[1].mxu1 }
 0x35b   : > { %v3828_v19 = vpop.f32.mrb[2].mxu1  ;;  %3880 = vmatpush3.bf16.msra.mxu0 %v4032_v6 }
 0x35c   : > { %v2598_v26 = vpack.c.bf16 %v3828_v19, %v3827_v14  ;;  %v2529_v12 = vpop.f32.mrb[3].mxu1  ;;  %3846 = vmatmul.mubr.msk.bf16.vlgmr.msra.gmra.mrb[16].mxu1 %vm2379_vm13, %v2590_v29 }
 0x35d   : > { %v2597_v60 = vpack.c.bf16 %v2529_v12, %v2526_v48  ;;  %3849 = vmatprep.mubr.msk.bf16.mxu1 %vm2379_vm13, %v2591_v56 }
 0x364   : > { %3850 = vmatmul.mubr.msk.bf16.gmra.mrb[20].mxu1 %vm2379_vm13, %v2592_v36 }
 0x365   : > { %3853 = vmatprep.mubr.msk.bf16.mxu1 %vm2379_vm13, %v2593_v58 }
 0x36c   : > { %3854 = vmatmul.mubr.msk.bf16.gmra.mrb[24].mxu1 %vm2379_vm13, %v2594_v25 }
 0x36d   : > { %3857 = vmatprep.mubr.msk.bf16.mxu1 %vm2379_vm13, %v2595_v17 }
 0x374   : > { %3858 = vmatmul.mubr.msk.bf16.gmra.mrb[28].mxu1 %vm2379_vm13, %v2596_v35 }
 0x375   : > { %3861 = vmatprep.mubr.msk.bf16.mxu1 %vm2379_vm13, %v2597_v60 }
 0x37c   : > { %3862 = vmatmul.mubr.msk.bf16.gmra.mrb[32].mxu1 %vm2379_vm13, %v2598_v26 }
 0x3aa   : > { %v3831_v13 = vpop.f32.mrb[4].mxu1 }
 0x3ab   : > { %v2542_v33 = vpop.f32.mrb[5].mxu1 }
 0x3ac   : > { %v3832_v57 = vpop.f32.mrb[6].mxu1 }
 0x3ad   : > { %v2600_v43 = vpack.c.bf16 %v3832_v57, %v3831_v13  ;;  %v2545_v29 = vpop.f32.mrb[7].mxu1 }
 0x3ae   : > { %v2599_v31 = vpack.c.bf16 %v2545_v29, %v2542_v33 }
 0x3b0   : > { %3865 = vmatprep.mubr.msk.bf16.mxu1 %vm2379_vm13, %v2599_v31 }
 0x3b1   : > { %3866 = vmatmul.mubr.msk.bf16.gmra.mrb[36].mxu1 %vm2379_vm13, %v2600_v43 }
 0x3fb   : > { %v3835_v11 = vpop.f32.mrb[8].mxu1 }
 0x3fc   : > { %v2558_v46 = vpop.f32.mrb[9].mxu1 }
 0x3fd   : > { %v3836_v36 = vpop.f32.mrb[10].mxu1 }
 0x3fe   : > { %v2602_v16 = vpack.c.bf16 %v3836_v36, %v3835_v11  ;;  %v2561_v56 = vpop.f32.mrb[11].mxu1 }
 0x3ff   : > { %v2601_v4 = vpack.c.bf16 %v2561_v56, %v2558_v46 }
 0x401   : > { %3869 = vmatprep.mubr.msk.bf16.mxu1 %vm2379_vm13, %v2601_v4 }
 0x402   : > { %3870 = vmatmul.mubr.msk.bf16.gmra.mrb[40].mxu1 %vm2379_vm13, %v2602_v16 }
 0x427   : > { %v3839_v55 = vpop.f32.mrb[12].mxu1 }
 0x428   : > { %v2574_v8 = vpop.f32.mrb[13].mxu1 }
 0x429   : > { %v3840_v25 = vpop.f32.mrb[14].mxu1 }
 0x42a   : > { %v2604_v41 = vpack.c.bf16 %v3840_v25, %v3839_v55  ;;  %v2577_v58 = vpop.f32.mrb[15].mxu1 }
 0x42b   : > { %v2603_v47 = vpack.c.bf16 %v2577_v58, %v2574_v8 }
 0x42d   : > { %3873 = vmatprep.mubr.msk.bf16.mxu1 %vm2379_vm13, %v2603_v47 }
 0x42e   : > { %3874 = vmatmul.mubr.msk.bf16.gmra.mrb[44].mxu1 %vm2379_vm13, %v2604_v41 }
 0x42f   : > { %v3847_v0 = vpop.f32.mrb[16].mxu1 }
 0x430   : > { %v2719_v35 = vadd.f32 %v3847_v0, %v6070_v7  ;;  %v2710_v42 = vpop.f32.mrb[17].mxu1 }
 0x431   : > { %v2711_v17 = vadd.f32 %v6070_v7, %v2710_v42  ;;  %v3848_v20 = vpop.f32.mrb[18].mxu1 }
 0x432   : > { %v2722_v37 = vadd.f32 %v3848_v20, %v6070_v7  ;;  %v2713_v52 = vpop.f32.mrb[19].mxu1  ;;  %v2839_v32 = vmax.f32 %v2719_v35, 0.0 }
 0x433   : > { %v2714_v2 = vadd.f32 %v6070_v7, %v2713_v52  ;;  %v2837_v21 = vmax.f32 %v2711_v17, 0.0 }
 0x434   : > { %v2840_v62 = vmax.f32 %v2722_v37, 0.0 }
 0x435   : > { %v2838_v30 = vmax.f32 %v2714_v2, 0.0 }
 0x436   : > { %v2870_v59 = vpack.c.bf16 %v2840_v62, %v2839_v32 }
 0x437   : > { %v2869_v24 = vpack.c.bf16 %v2838_v30, %v2837_v21  ;;  %v3851_v18 = vpop.f32.mrb[20].mxu1 }
 0x438   : > { %v2735_v38 = vadd.f32 %v3851_v18, %v6070_v7  ;;  %v2726_v49 = vpop.f32.mrb[21].mxu1 }
 0x439   : > { %v2727_v28 = vadd.f32 %v6070_v7, %v2726_v49  ;;  %v3852_v23 = vpop.f32.mrb[22].mxu1  ;;  %3881 = vmatprep.mubr.msk.bf16.mxu0 %vm2379_vm13, %v2869_v24 }
 0x43a   : > { %v2738_v10 = vadd.f32 %v3852_v23, %v6070_v7  ;;  %v2729_v39 = vpop.f32.mrb[23].mxu1  ;;  %3882 = vmatmul.mubr.msk.bf16.vlgmr.msra.gmra.mrb[16].mxu0 %vm2379_vm13, %v2870_v59  ;;  %v2843_v63 = vmax.f32 %v2735_v38, 0.0 }
 0x43b   : > { %v2730_v51 = vadd.f32 %v6070_v7, %v2729_v39  ;;  %v2841_v53 = vmax.f32 %v2727_v28, 0.0 }
 0x43c   : > { %v2844_v34 = vmax.f32 %v2738_v10, 0.0 }
 0x43d   : > { %v2842_v9 = vmax.f32 %v2730_v51, 0.0 }
 0x43e   : > { %v2872_v50 = vpack.c.bf16 %v2844_v34, %v2843_v63 }
 0x43f   : > { %v2871_v61 = vpack.c.bf16 %v2842_v9, %v2841_v53  ;;  %v3855_v27 = vpop.f32.mrb[24].mxu1 }
 0x440   : > { %v2751_v45 = vadd.f32 %v3855_v27, %v6070_v7  ;;  %v2742_v40 = vpop.f32.mrb[25].mxu1 }
 0x441   : > { %v2743_v15 = vadd.f32 %v6070_v7, %v2742_v40  ;;  %v3856_v22 = vpop.f32.mrb[26].mxu1  ;;  %3885 = vmatprep.mubr.msk.bf16.mxu0 %vm2379_vm13, %v2871_v61 }
 0x442   : > { %v2754_v1 = vadd.f32 %v3856_v22, %v6070_v7  ;;  %v2745_v54 = vpop.f32.mrb[27].mxu1  ;;  %3886 = vmatmul.mubr.msk.bf16.gmra.mrb[20].mxu0 %vm2379_vm13, %v2872_v50  ;;  %v2847_v3 = vmax.f32 %v2751_v45, 0.0 }
 0x443   : > { %v2746_v44 = vadd.f32 %v6070_v7, %v2745_v54  ;;  %v2845_v48 = vmax.f32 %v2743_v15, 0.0 }
 0x444   : > { %v2848_v14 = vmax.f32 %v2754_v1, 0.0 }
 0x445   : > { %v2846_v19 = vmax.f32 %v2746_v44, 0.0 }
 0x446   : > { %v2874_v26 = vpack.c.bf16 %v2848_v14, %v2847_v3 }
 0x447   : > { %v2873_v12 = vpack.c.bf16 %v2846_v19, %v2845_v48  ;;  %v3859_v60 = vpop.f32.mrb[28].mxu1 }
 0x448   : > { %v2767_v13 = vadd.f32 %v3859_v60, %v6070_v7  ;;  %v2758_v33 = vpop.f32.mrb[29].mxu1 }
 0x449   : > { %v2759_v57 = vadd.f32 %v6070_v7, %v2758_v33  ;;  %v3860_v43 = vpop.f32.mrb[30].mxu1  ;;  %3889 = vmatprep.mubr.msk.bf16.mxu0 %vm2379_vm13, %v2873_v12 }
 0x44a   : > { %v2770_v29 = vadd.f32 %v3860_v43, %v6070_v7  ;;  %v2761_v31 = vpop.f32.mrb[31].mxu1  ;;  %3890 = vmatmul.mubr.msk.bf16.gmra.mrb[24].mxu0 %vm2379_vm13, %v2874_v26  ;;  %v2851_v6 = vmax.f32 %v2767_v13, 0.0 }
 0x44b   : > { %v2762_v5 = vadd.f32 %v6070_v7, %v2761_v31  ;;  %v2849_v46 = vmax.f32 %v2759_v57, 0.0 }
 0x44c   : > { %v2852_v11 = vmax.f32 %v2770_v29, 0.0 }
 0x44d   : > { %v2850_v36 = vmax.f32 %v2762_v5, 0.0  ;;  %v6123_v5 = vld [vmem:[%s6340_s6] ss:$0 sm:$0xff] }
 0x44e   : > { %v2876_v16 = vpack.c.bf16 %v2852_v11, %v2851_v6 }
 0x44f   : > { %v2875_v56 = vpack.c.bf16 %v2850_v36, %v2849_v46  ;;  %v3863_v4 = vpop.f32.mrb[32].mxu1 }
 0x450   : > { %v2783_v55 = vadd.f32 %v3863_v4, %v6070_v7  ;;  %v2774_v8 = vpop.f32.mrb[33].mxu1 }
 0x451   : > { %v2775_v25 = vadd.f32 %v6070_v7, %v2774_v8  ;;  %v3864_v41 = vpop.f32.mrb[34].mxu1  ;;  %3893 = vmatprep.mubr.msk.bf16.mxu0 %vm2379_vm13, %v2875_v56 }
 0x452   : > { %v2786_v58 = vadd.f32 %v3864_v41, %v6070_v7  ;;  %v2777_v47 = vpop.f32.mrb[35].mxu1  ;;  %3894 = vmatmul.mubr.msk.bf16.gmra.mrb[28].mxu0 %vm2379_vm13, %v2876_v16  ;;  %v2855_v35 = vmax.f32 %v2783_v55, 0.0 }
 0x453   : > { %v2778_v0 = vadd.f32 %v6070_v7, %v2777_v47  ;;  %v2853_v17 = vmax.f32 %v2775_v25, 0.0 }
 0x454   : > { %v2856_v42 = vmax.f32 %v2786_v58, 0.0 }
 0x455   : > { %v2854_v20 = vmax.f32 %v2778_v0, 0.0 }
 0x456   : > { %v2878_v37 = vpack.c.bf16 %v2856_v42, %v2855_v35 }
 0x457   : > { %v2877_v52 = vpack.c.bf16 %v2854_v20, %v2853_v17 }
 0x459   : > { %3897 = vmatprep.mubr.msk.bf16.mxu0 %vm2379_vm13, %v2877_v52 }
 0x45a   : > { %3898 = vmatmul.mubr.msk.bf16.gmra.mrb[32].mxu0 %vm2379_vm13, %v2878_v37 }
 0x484   : > { %v3867_v2 = vpop.f32.mrb[36].mxu1 }
 0x485   : > { %v2799_v32 = vadd.f32 %v3867_v2, %v6070_v7  ;;  %v2790_v62 = vpop.f32.mrb[37].mxu1 }
 0x486   : > { %v2791_v21 = vadd.f32 %v6070_v7, %v2790_v62  ;;  %v3868_v30 = vpop.f32.mrb[38].mxu1 }
 0x487   : > { %v2802_v59 = vadd.f32 %v3868_v30, %v6070_v7  ;;  %v2793_v24 = vpop.f32.mrb[39].mxu1  ;;  %v2859_v38 = vmax.f32 %v2799_v32, 0.0 }
 0x488   : > { %v2794_v18 = vadd.f32 %v6070_v7, %v2793_v24  ;;  %v2857_v28 = vmax.f32 %v2791_v21, 0.0 }
 0x489   : > { %v2860_v49 = vmax.f32 %v2802_v59, 0.0 }
 0x48a   : > { %v2858_v23 = vmax.f32 %v2794_v18, 0.0 }
 0x48b   : > { %v2880_v10 = vpack.c.bf16 %v2860_v49, %v2859_v38 }
 0x48c   : > { %v2879_v39 = vpack.c.bf16 %v2858_v23, %v2857_v28 }
 0x48e   : > { %3901 = vmatprep.mubr.msk.bf16.mxu0 %vm2379_vm13, %v2879_v39 }
 0x48f   : > { %3902 = vmatmul.mubr.msk.bf16.gmra.mrb[36].mxu0 %vm2379_vm13, %v2880_v10 }
 0x4d5   : > { %v3871_v51 = vpop.f32.mrb[40].mxu1 }
 0x4d6   : > { %v2815_v63 = vadd.f32 %v3871_v51, %v6070_v7  ;;  %v2806_v34 = vpop.f32.mrb[41].mxu1 }
 0x4d7   : > { %v2807_v53 = vadd.f32 %v6070_v7, %v2806_v34  ;;  %v3872_v9 = vpop.f32.mrb[42].mxu1 }
 0x4d8   : > { %v2818_v50 = vadd.f32 %v3872_v9, %v6070_v7  ;;  %v2809_v61 = vpop.f32.mrb[43].mxu1  ;;  %v2863_v45 = vmax.f32 %v2815_v63, 0.0 }
 0x4d9   : > { %v2810_v27 = vadd.f32 %v6070_v7, %v2809_v61  ;;  %v2861_v15 = vmax.f32 %v2807_v53, 0.0 }
 0x4da   : > { %v2864_v40 = vmax.f32 %v2818_v50, 0.0 }
 0x4db   : > { %v2862_v22 = vmax.f32 %v2810_v27, 0.0 }
 0x4dc   : > { %v2882_v1 = vpack.c.bf16 %v2864_v40, %v2863_v45 }
 0x4dd   : > { %v2881_v54 = vpack.c.bf16 %v2862_v22, %v2861_v15 }
 0x4df   : > { %3905 = vmatprep.mubr.msk.bf16.mxu0 %vm2379_vm13, %v2881_v54 }
 0x4e0   : > { %3906 = vmatmul.mubr.msk.bf16.gmra.mrb[40].mxu0 %vm2379_vm13, %v2882_v1 }
 0x501   : > { %v3875_v44 = vpop.f32.mrb[44].mxu1 }
 0x502   : > { %v2831_v3 = vadd.f32 %v3875_v44, %v6070_v7  ;;  %v2822_v14 = vpop.f32.mrb[45].mxu1 }
 0x503   : > { %v2823_v48 = vadd.f32 %v6070_v7, %v2822_v14  ;;  %v3876_v19 = vpop.f32.mrb[46].mxu1 }
 0x504   : > { %v2834_v26 = vadd.f32 %v3876_v19, %v6070_v7  ;;  %v2825_v12 = vpop.f32.mrb[47].mxu1  ;;  %v2867_v13 = vmax.f32 %v2831_v3, 0.0 }
 0x505   : > { %v2826_v60 = vadd.f32 %v6070_v7, %v2825_v12  ;;  %v2865_v57 = vmax.f32 %v2823_v48, 0.0  ;;  %v6130_v7 = vld [vmem:[%s6341_s7] ss:$0 sm:$0xff] }
 0x506   : > { %v2868_v33 = vmax.f32 %v2834_v26, 0.0 }
 0x507   : > { %v2866_v43 = vmax.f32 %v2826_v60, 0.0 }
 0x508   : > { %v2884_v29 = vpack.c.bf16 %v2868_v33, %v2867_v13 }
 0x509   : > { %v2883_v31 = vpack.c.bf16 %v2866_v43, %v2865_v57 }
 0x50b   : > { %3909 = vmatprep.mubr.msk.bf16.mxu0 %vm2379_vm13, %v2883_v31 }
 0x50c   : > { %3910 = vmatmul.mubr.msk.bf16.gmra.mrb[44].mxu0 %vm2379_vm13, %v2884_v29 }
 0x50d   : > { %v3883_v6 = vpop.f32.mrb[16].mxu0 }
 0x50e   : > { %v2999_v11 = vadd.f32 %v3883_v6, %v6123_v5  ;;  %v2990_v46 = vpop.f32.mrb[17].mxu0 }
 0x50f   : > { %v2991_v36 = vadd.f32 %v6123_v5, %v2990_v46  ;;  %v3884_v16 = vpop.f32.mrb[18].mxu0 }
 0x510   : > { %v3119_v56 = vmax.f32 %v2999_v11, 0.0  ;;  %v3002_v4 = vadd.f32 %v3884_v16, %v6123_v5  ;;  %v2993_v55 = vpop.f32.mrb[19].mxu0 }
 0x511   : > { %v3117_v8 = vmax.f32 %v2991_v36, 0.0  ;;  %v2994_v25 = vadd.f32 %v6123_v5, %v2993_v55 }
 0x512   : > { %v3158_v41 = vmul.f32 %v6130_v7, %v3119_v56  ;;  %v3120_v58 = vmax.f32 %v3002_v4, 0.0 }
 0x513   : > { %v3156_v47 = vmul.f32 %v6130_v7, %v3117_v8  ;;  %v3118_v0 = vmax.f32 %v2994_v25, 0.0 }
 0x514   : > { %v3194_v35 = vsel %vm2379_vm13, %v3158_v41, 0.0  ;;  %v3159_v42 = vmul.f32 %v6130_v7, %v3120_v58 }
 0x515   : > { %v3157_v17 = vmul.f32 %v6130_v7, %v3118_v0  ;;  %3195 = vadd.xlane.f32.xlu0 %v3194_v35  ;;  %v3887_v20 = vpop.f32.mrb[20].mxu0  ;;  %v3188_v37 = vsel %vm2379_vm13, %v3156_v47, 0.0 }
 0x516   : > { %v3015_v52 = vadd.f32 %v3887_v20, %v6123_v5  ;;  %v3006_v2 = vpop.f32.mrb[21].mxu0  ;;  %3189 = vadd.xlane.f32.xlu1 %v3188_v37  ;;  %v3197_v49 = vsel %vm2379_vm13, %v3159_v42, 0.0 }
 0x517   : > { %v3007_v32 = vadd.f32 %v6123_v5, %v3006_v2  ;;  %v3888_v62 = vpop.f32.mrb[22].mxu0  ;;  %v3191_v21 = vsel %vm2379_vm13, %v3157_v17, 0.0 }
 0x518   : > { %v3123_v30 = vmax.f32 %v3015_v52, 0.0  ;;  %v3018_v59 = vadd.f32 %v3888_v62, %v6123_v5  ;;  %v3009_v24 = vpop.f32.mrb[23].mxu0 }
 0x519   : > { %v3121_v18 = vmax.f32 %v3007_v32, 0.0  ;;  %v3010_v38 = vadd.f32 %v6123_v5, %v3009_v24  ;;  %3192 = vadd.xlane.f32.xlu0 %v3191_v21 }
 0x51a   : > { %v3162_v28 = vmul.f32 %v6130_v7, %v3123_v30  ;;  %v3124_v23 = vmax.f32 %v3018_v59, 0.0  ;;  %3198 = vadd.xlane.f32.xlu1 %v3197_v49 }
 0x51b   : > { %v3122_v10 = vmax.f32 %v3010_v38, 0.0  ;;  %v3160_v39 = vmul.f32 %v6130_v7, %v3121_v18 }
 0x51c   : > { %v3163_v51 = vmul.f32 %v6130_v7, %v3124_v23  ;;  %v3206_v63 = vsel %vm2379_vm13, %v3162_v28, 0.0 }
 0x51d   : > { %v3891_v34 = vpop.f32.mrb[24].mxu0  ;;  %3207 = vadd.xlane.f32.xlu0 %v3206_v63  ;;  %v3161_v53 = vmul.f32 %v6130_v7, %v3122_v10  ;;  %v3200_v1 = vsel %vm2379_vm13, %v3160_v39, 0.0 }
 0x51e   : > { %v3031_v9 = vadd.f32 %v3891_v34, %v6123_v5  ;;  %v3022_v50 = vpop.f32.mrb[25].mxu0  ;;  %v3209_v61 = vsel %vm2379_vm13, %v3163_v51, 0.0 }
 0x51f   : > { %v3023_v27 = vadd.f32 %v6123_v5, %v3022_v50  ;;  %v3892_v45 = vpop.f32.mrb[26].mxu0  ;;  %3210 = vadd.xlane.f32.xlu1 %v3209_v61  ;;  %v3203_v48 = vsel %vm2379_vm13, %v3161_v53, 0.0 }
 0x520   : > { %v3127_v40 = vmax.f32 %v3031_v9, 0.0  ;;  %v3034_v15 = vadd.f32 %v3892_v45, %v6123_v5  ;;  %v3025_v22 = vpop.f32.mrb[27].mxu0 }
 0x521   : > { %v3125_v54 = vmax.f32 %v3023_v27, 0.0  ;;  %v3026_v44 = vadd.f32 %v6123_v5, %v3025_v22  ;;  %3201 = vadd.xlane.f32.xlu0 %v3200_v1 }
 0x522   : > { %v3166_v3 = vmul.f32 %v6130_v7, %v3127_v40  ;;  %v3128_v14 = vmax.f32 %v3034_v15, 0.0 }
 0x523   : > { %v3126_v19 = vmax.f32 %v3026_v44, 0.0  ;;  %3204 = vadd.xlane.f32.xlu1 %v3203_v48  ;;  %v3164_v26 = vmul.f32 %v6130_v7, %v3125_v54 }
 0x524   : > { %v3167_v12 = vmul.f32 %v6130_v7, %v3128_v14  ;;  %v3218_v60 = vsel %vm2379_vm13, %v3166_v3, 0.0 }
 0x525   : > { %v3895_v13 = vpop.f32.mrb[28].mxu0  ;;  %3219 = vadd.xlane.f32.xlu0 %v3218_v60  ;;  %v3165_v33 = vmul.f32 %v6130_v7, %v3126_v19  ;;  %v3212_v16 = vsel %vm2379_vm13, %v3164_v26, 0.0 }
 0x526   : > { %v3047_v57 = vadd.f32 %v3895_v13, %v6123_v5  ;;  %v3038_v43 = vpop.f32.mrb[29].mxu0  ;;  %v3221_v29 = vsel %vm2379_vm13, %v3167_v12, 0.0 }
 0x527   : > { %v3039_v31 = vadd.f32 %v6123_v5, %v3038_v43  ;;  %v3896_v6 = vpop.f32.mrb[30].mxu0  ;;  %3222 = vadd.xlane.f32.xlu1 %v3221_v29  ;;  %v3215_v25 = vsel %vm2379_vm13, %v3165_v33, 0.0 }
 0x528   : > { %v3131_v11 = vmax.f32 %v3047_v57, 0.0  ;;  %v3050_v46 = vadd.f32 %v3896_v6, %v6123_v5  ;;  %v3041_v36 = vpop.f32.mrb[31].mxu0  ;;  %v6203_v57 = vld [vmem:[#allocation2] ss:$0 sm:$0xff] }
 0x529   : > { %v3129_v56 = vmax.f32 %v3039_v31, 0.0  ;;  %v3042_v4 = vadd.f32 %v6123_v5, %v3041_v36  ;;  %3213 = vadd.xlane.f32.xlu0 %v3212_v16 }
 0x52a   : > { %v3170_v55 = vmul.f32 %v6130_v7, %v3131_v11  ;;  %v3132_v8 = vmax.f32 %v3050_v46, 0.0 }
 0x52b   : > { %v3130_v41 = vmax.f32 %v3042_v4, 0.0  ;;  %3216 = vadd.xlane.f32.xlu1 %v3215_v25  ;;  %v3168_v58 = vmul.f32 %v6130_v7, %v3129_v56 }
 0x52c   : > { %v3171_v47 = vmul.f32 %v6130_v7, %v3132_v8  ;;  %v3230_v0 = vsel %vm2379_vm13, %v3170_v55, 0.0 }
 0x52d   : > { %v3899_v35 = vpop.f32.mrb[32].mxu0  ;;  %3231 = vadd.xlane.f32.xlu0 %v3230_v0  ;;  %v3169_v42 = vmul.f32 %v6130_v7, %v3130_v41  ;;  %v3224_v30 = vsel %vm2379_vm13, %v3168_v58, 0.0 }
 0x52e   : > { %v3063_v17 = vadd.f32 %v3899_v35, %v6123_v5  ;;  %v3054_v20 = vpop.f32.mrb[33].mxu0  ;;  %v3233_v37 = vsel %vm2379_vm13, %v3171_v47, 0.0 }
 0x52f   : > { %v3055_v52 = vadd.f32 %v6123_v5, %v3054_v20  ;;  %v3900_v2 = vpop.f32.mrb[34].mxu0  ;;  %3234 = vadd.xlane.f32.xlu1 %v3233_v37  ;;  %v3227_v49 = vsel %vm2379_vm13, %v3169_v42, 0.0 }
 0x530   : > { %v3135_v32 = vmax.f32 %v3063_v17, 0.0  ;;  %v3066_v62 = vadd.f32 %v3900_v2, %v6123_v5  ;;  %v3057_v21 = vpop.f32.mrb[35].mxu0 }
 0x531   : > { %v3133_v59 = vmax.f32 %v3055_v52, 0.0  ;;  %v3058_v24 = vadd.f32 %v6123_v5, %v3057_v21  ;;  %3225 = vadd.xlane.f32.xlu0 %v3224_v30 }
 0x532   : > { %v3174_v18 = vmul.f32 %v6130_v7, %v3135_v32  ;;  %v3136_v38 = vmax.f32 %v3066_v62, 0.0 }
 0x533   : > { %v3134_v28 = vmax.f32 %v3058_v24, 0.0  ;;  %3228 = vadd.xlane.f32.xlu1 %v3227_v49  ;;  %v3172_v23 = vmul.f32 %v6130_v7, %v3133_v59 }
 0x534   : > { %v3175_v10 = vmul.f32 %v6130_v7, %v3136_v38  ;;  %v3242_v39 = vsel %vm2379_vm13, %v3174_v18, 0.0 }
 0x535   : > { %3243 = vadd.xlane.f32.xlu0 %v3242_v39  ;;  %v3173_v51 = vmul.f32 %v6130_v7, %v3134_v28  ;;  %v3236_v34 = vsel %vm2379_vm13, %v3172_v23, 0.0 }
 0x536   : > { %v3245_v63 = vsel %vm2379_vm13, %v3175_v10, 0.0 }
 0x537   : > { %3246 = vadd.xlane.f32.xlu1 %v3245_v63  ;;  %v3239_v53 = vsel %vm2379_vm13, %v3173_v51, 0.0 }
 0x539   : > { %3237 = vadd.xlane.f32.xlu0 %v3236_v34 }
 0x53b   : > { %3240 = vadd.xlane.f32.xlu1 %v3239_v53 }
 0x562   : > { %v3903_v9 = vpop.f32.mrb[36].mxu0 }
 0x563   : > { %v3079_v50 = vadd.f32 %v3903_v9, %v6123_v5  ;;  %v3070_v61 = vpop.f32.mrb[37].mxu0 }
 0x564   : > { %v3071_v27 = vadd.f32 %v6123_v5, %v3070_v61  ;;  %v3904_v45 = vpop.f32.mrb[38].mxu0 }
 0x565   : > { %v3139_v40 = vmax.f32 %v3079_v50, 0.0  ;;  %v3082_v15 = vadd.f32 %v3904_v45, %v6123_v5  ;;  %v3073_v22 = vpop.f32.mrb[39].mxu0 }
 0x566   : > { %v3137_v1 = vmax.f32 %v3071_v27, 0.0  ;;  %v3074_v54 = vadd.f32 %v6123_v5, %v3073_v22 }
 0x567   : > { %v3178_v44 = vmul.f32 %v6130_v7, %v3139_v40  ;;  %v3140_v3 = vmax.f32 %v3082_v15, 0.0 }
 0x568   : > { %v3138_v14 = vmax.f32 %v3074_v54, 0.0  ;;  %v3176_v48 = vmul.f32 %v6130_v7, %v3137_v1 }
 0x569   : > { %v3179_v19 = vmul.f32 %v6130_v7, %v3140_v3  ;;  %v3254_v26 = vsel %vm2379_vm13, %v3178_v44, 0.0 }
 0x56a   : > { %3255 = vadd.xlane.f32.xlu0 %v3254_v26  ;;  %v3177_v12 = vmul.f32 %v6130_v7, %v3138_v14  ;;  %v3248_v13 = vsel %vm2379_vm13, %v3176_v48, 0.0 }
 0x56b   : > { %v3257_v60 = vsel %vm2379_vm13, %v3179_v19, 0.0 }
 0x56c   : > { %3258 = vadd.xlane.f32.xlu1 %v3257_v60  ;;  %v3251_v33 = vsel %vm2379_vm13, %v3177_v12, 0.0 }
 0x56e   : > { %3249 = vadd.xlane.f32.xlu0 %v3248_v13 }
 0x570   : > { %3252 = vadd.xlane.f32.xlu1 %v3251_v33 }
 0x5a2   : > { %v3196_v43 = vpop.xlane.xlu0 %3195 }
 0x5a3   : > { %v3293_v29 = vadd.f32 %v6203_v57, %v3196_v43  ;;  %v3190_v31 = vpop.xlane.xlu1 %3189 }
 0x5a4   : > { %v3291_v6 = vadd.f32 %v6203_v57, %v3190_v31 }
 0x5a5   : > { %3326 = vst.msk [vmem:[%s6209_s20 + $0x10] sm:$0xff] %vm3323_vm12, %v3293_v29 }
 0x5a6   : > { %3324 = vst.msk [vmem:[%s6209_s20] sm:$0xff] %vm3323_vm12, %v3291_v6  ;;  %v3193_v11 = vpop.xlane.xlu0 %3192 }
 0x5a7   : > { %v3292_v46 = vadd.f32 %v6203_v57, %v3193_v11  ;;  %v3199_v36 = vpop.xlane.xlu1 %3198 }
 0x5a8   : > { %v3294_v16 = vadd.f32 %v6203_v57, %v3199_v36 }
 0x5a9   : > { %3325 = vst.msk [vmem:[%s6209_s20 + $0x8] sm:$0xff] %vm3323_vm12, %v3292_v46 }
 0x5aa   : > { %3327 = vst.msk [vmem:[%s6209_s20 + $0x18] sm:$0xff] %vm3323_vm12, %v3294_v16  ;;  %v3208_v56 = vpop.xlane.xlu0 %3207 }
 0x5ab   : > { %v3297_v4 = vadd.f32 %v6203_v57, %v3208_v56 }
 0x5ac   : > { %v3211_v55 = vpop.xlane.xlu1 %3210 }
 0x5ad   : > { %3330 = vst.msk [vmem:[%s6209_s20 + $0x30] sm:$0xff] %vm3323_vm12, %v3297_v4  ;;  %v3298_v8 = vadd.f32 %v6203_v57, %v3211_v55 }
 0x5ae   : > { %v3202_v25 = vpop.xlane.xlu0 %3201 }
 0x5af   : > { %3331 = vst.msk [vmem:[%s6209_s20 + $0x38] sm:$0xff] %vm3323_vm12, %v3298_v8  ;;  %v3295_v41 = vadd.f32 %v6203_v57, %v3202_v25 }
 0x5b0   : > { %v3205_v58 = vpop.xlane.xlu1 %3204 }
 0x5b1   : > { %3328 = vst.msk [vmem:[%s6209_s20 + $0x20] sm:$0xff] %vm3323_vm12, %v3295_v41  ;;  %v3296_v47 = vadd.f32 %v6203_v57, %v3205_v58 }
 0x5b2   : > { %v3220_v0 = vpop.xlane.xlu0 %3219 }
 0x5b3   : > { %3329 = vst.msk [vmem:[%s6209_s20 + $0x28] sm:$0xff] %vm3323_vm12, %v3296_v47  ;;  %v3301_v35 = vadd.f32 %v6203_v57, %v3220_v0  ;;  %v3907_v42 = vpop.f32.mrb[40].mxu0 }
 0x5b4   : > { %v3095_v17 = vadd.f32 %v3907_v42, %v6123_v5  ;;  %v3086_v20 = vpop.f32.mrb[41].mxu0  ;;  %v3223_v37 = vpop.xlane.xlu1 %3222 }
 0x5b5   : > { %3334 = vst.msk [vmem:[%s6209_s20 + $0x50] sm:$0xff] %vm3323_vm12, %v3301_v35  ;;  %v3087_v52 = vadd.f32 %v6123_v5, %v3086_v20  ;;  %v3302_v2 = vadd.f32 %v6203_v57, %v3223_v37  ;;  %v3908_v32 = vpop.f32.mrb[42].mxu0 }
 0x5b6   : > { %v3143_v62 = vmax.f32 %v3095_v17, 0.0  ;;  %v3098_v21 = vadd.f32 %v3908_v32, %v6123_v5  ;;  %v3089_v30 = vpop.f32.mrb[43].mxu0  ;;  %v3214_v59 = vpop.xlane.xlu0 %3213 }
 0x5b7   : > { %v3141_v24 = vmax.f32 %v3087_v52, 0.0  ;;  %3335 = vst.msk [vmem:[%s6209_s20 + $0x58] sm:$0xff] %vm3323_vm12, %v3302_v2  ;;  %v3090_v18 = vadd.f32 %v6123_v5, %v3089_v30  ;;  %v3299_v38 = vadd.f32 %v6203_v57, %v3214_v59 }
 0x5b8   : > { %v3182_v49 = vmul.f32 %v6130_v7, %v3143_v62  ;;  %v3144_v28 = vmax.f32 %v3098_v21, 0.0  ;;  %v3217_v23 = vpop.xlane.xlu1 %3216 }
 0x5b9   : > { %v3142_v10 = vmax.f32 %v3090_v18, 0.0  ;;  %3332 = vst.msk [vmem:[%s6209_s20 + $0x40] sm:$0xff] %vm3323_vm12, %v3299_v38  ;;  %v3300_v39 = vadd.f32 %v6203_v57, %v3217_v23  ;;  %v3180_v51 = vmul.f32 %v6130_v7, %v3141_v24 }
 0x5ba   : > { %v3183_v63 = vmul.f32 %v6130_v7, %v3144_v28  ;;  %v3232_v34 = vpop.xlane.xlu0 %3231  ;;  %v3266_v53 = vsel %vm2379_vm13, %v3182_v49, 0.0 }
 0x5bb   : > { %3333 = vst.msk [vmem:[%s6209_s20 + $0x48] sm:$0xff] %vm3323_vm12, %v3300_v39  ;;  %v3305_v9 = vadd.f32 %v6203_v57, %v3232_v34  ;;  %3267 = vadd.xlane.f32.xlu0 %v3266_v53  ;;  %v3181_v50 = vmul.f32 %v6130_v7, %v3142_v10  ;;  %v3260_v15 = vsel %vm2379_vm13, %v3180_v51, 0.0 }
 0x5bc   : > { %v3235_v61 = vpop.xlane.xlu1 %3234  ;;  %v3269_v27 = vsel %vm2379_vm13, %v3183_v63, 0.0 }
 0x5bd   : > { %3338 = vst.msk [vmem:[%s6209_s20 + $0x70] sm:$0xff] %vm3323_vm12, %v3305_v9  ;;  %v3306_v45 = vadd.f32 %v6203_v57, %v3235_v61  ;;  %3270 = vadd.xlane.f32.xlu1 %v3269_v27  ;;  %v3263_v54 = vsel %vm2379_vm13, %v3181_v50, 0.0 }
 0x5be   : > { %v3226_v40 = vpop.xlane.xlu0 %3225 }
 0x5bf   : > { %3339 = vst.msk [vmem:[%s6209_s20 + $0x78] sm:$0xff] %vm3323_vm12, %v3306_v45  ;;  %v3303_v22 = vadd.f32 %v6203_v57, %v3226_v40  ;;  %3261 = vadd.xlane.f32.xlu0 %v3260_v15 }
 0x5c0   : > { %v3229_v1 = vpop.xlane.xlu1 %3228 }
 0x5c1   : > { %3336 = vst.msk [vmem:[%s6209_s20 + $0x60] sm:$0xff] %vm3323_vm12, %v3303_v22  ;;  %v3304_v44 = vadd.f32 %v6203_v57, %v3229_v1  ;;  %3264 = vadd.xlane.f32.xlu1 %v3263_v54 }
 0x5c2   : > { %v3244_v3 = vpop.xlane.xlu0 %3243 }
 0x5c3   : > { %3337 = vst.msk [vmem:[%s6209_s20 + $0x68] sm:$0xff] %vm3323_vm12, %v3304_v44  ;;  %v3309_v14 = vadd.f32 %v6203_v57, %v3244_v3 }
 0x5c4   : > { %v3247_v48 = vpop.xlane.xlu1 %3246 }
 0x5c5   : > { %3342 = vst.msk [vmem:[%s6209_s20 + $0x90] sm:$0xff] %vm3323_vm12, %v3309_v14  ;;  %v3310_v19 = vadd.f32 %v6203_v57, %v3247_v48 }
 0x5c6   : > { %v3238_v26 = vpop.xlane.xlu0 %3237 }
 0x5c7   : > { %3343 = vst.msk [vmem:[%s6209_s20 + $0x98] sm:$0xff] %vm3323_vm12, %v3310_v19  ;;  %v3307_v12 = vadd.f32 %v6203_v57, %v3238_v26 }
 0x5c8   : > { %v3241_v60 = vpop.xlane.xlu1 %3240 }
 0x5c9   : > { %3340 = vst.msk [vmem:[%s6209_s20 + $0x80] sm:$0xff] %vm3323_vm12, %v3307_v12  ;;  %v3308_v13 = vadd.f32 %v6203_v57, %v3241_v60 }
 0x5cb   : > { %3341 = vst.msk [vmem:[%s6209_s20 + $0x88] sm:$0xff] %vm3323_vm12, %v3308_v13 }
 0x5df   : > { %v3911_v33 = vpop.f32.mrb[44].mxu0 }
 0x5e0   : > { %v3111_v43 = vadd.f32 %v3911_v33, %v6123_v5  ;;  %v3102_v29 = vpop.f32.mrb[45].mxu0 }
 0x5e1   : > { %v3103_v31 = vadd.f32 %v6123_v5, %v3102_v29  ;;  %v3912_v6 = vpop.f32.mrb[46].mxu0 }
 0x5e2   : > { %v3114_v11 = vadd.f32 %v3912_v6, %v6123_v5  ;;  %v3105_v46 = vpop.f32.mrb[47].mxu0  ;;  %v3147_v36 = vmax.f32 %v3111_v43, 0.0 }
 0x5e3   : > { %v3145_v16 = vmax.f32 %v3103_v31, 0.0  ;;  %v3106_v56 = vadd.f32 %v6123_v5, %v3105_v46 }
 0x5e4   : > { %v3148_v55 = vmax.f32 %v3114_v11, 0.0  ;;  %v3186_v25 = vmul.f32 %v6130_v7, %v3147_v36 }
 0x5e5   : > { %v3184_v4 = vmul.f32 %v6130_v7, %v3145_v16  ;;  %v3146_v8 = vmax.f32 %v3106_v56, 0.0 }
 0x5e6   : > { %v3187_v47 = vmul.f32 %v6130_v7, %v3148_v55  ;;  %v3278_v5 = vsel %vm2379_vm13, %v3186_v25, 0.0 }
 0x5e7   : > { %v3185_v41 = vmul.f32 %v6130_v7, %v3146_v8  ;;  %v3272_v58 = vsel %vm2379_vm13, %v3184_v4, 0.0 }
 0x5e8   : > { %3273 = vadd.xlane.f32.xlu0 %v3272_v58  ;;  %v3281_v35 = vsel %vm2379_vm13, %v3187_v47, 0.0 }
 0x5e9   : > { %v3275_v0 = vsel %vm2379_vm13, %v3185_v41, 0.0 }
 0x5ea   : > { %3276 = vadd.xlane.f32.xlu1 %v3275_v0 }
 0x5ec   : > { %3279 = vadd.xlane.f32.xlu0 %v3278_v5 }
 0x5ee   : > { %3282 = vadd.xlane.f32.xlu1 %v3281_v35 }
 0x5f7   : > { %v3256_v42 = vpop.xlane.xlu0 %3255 }
 0x5f8   : > { %v3313_v17 = vadd.f32 %v6203_v57, %v3256_v42 }
 0x5f9   : > { %v3259_v20 = vpop.xlane.xlu1 %3258 }
 0x5fa   : > { %3346 = vst.msk [vmem:[%s6209_s20 + $0xb0] sm:$0xff] %vm3323_vm12, %v3313_v17  ;;  %v3314_v7 = vadd.f32 %v6203_v57, %v3259_v20 }
 0x5fb   : > { %v3250_v37 = vpop.xlane.xlu0 %3249 }
 0x5fc   : > { %3347 = vst.msk [vmem:[%s6209_s20 + $0xb8] sm:$0xff] %vm3323_vm12, %v3314_v7  ;;  %v3311_v52 = vadd.f32 %v6203_v57, %v3250_v37 }
 0x5fd   : > { %v3253_v2 = vpop.xlane.xlu1 %3252 }
 0x5fe   : > { %3344 = vst.msk [vmem:[%s6209_s20 + $0xa0] sm:$0xff] %vm3323_vm12, %v3311_v52  ;;  %v3312_v32 = vadd.f32 %v6203_v57, %v3253_v2 }
 0x600   : > { %3345 = vst.msk [vmem:[%s6209_s20 + $0xa8] sm:$0xff] %vm3323_vm12, %v3312_v32 }
 0x648   : > { %v3268_v62 = vpop.xlane.xlu0 %3267 }
 0x649   : > { %v3317_v21 = vadd.f32 %v6203_v57, %v3268_v62 }
 0x64a   : > { %v3271_v30 = vpop.xlane.xlu1 %3270 }
 0x64b   : > { %3350 = vst.msk [vmem:[%s6209_s20 + $0xd0] sm:$0xff] %vm3323_vm12, %v3317_v21  ;;  %v3318_v59 = vadd.f32 %v6203_v57, %v3271_v30 }
 0x64c   : > { %v3262_v24 = vpop.xlane.xlu0 %3261 }
 0x64d   : > { %3351 = vst.msk [vmem:[%s6209_s20 + $0xd8] sm:$0xff] %vm3323_vm12, %v3318_v59  ;;  %v3315_v18 = vadd.f32 %v6203_v57, %v3262_v24 }
 0x64e   : > { %v3265_v38 = vpop.xlane.xlu1 %3264 }
 0x64f   : > { %3348 = vst.msk [vmem:[%s6209_s20 + $0xc0] sm:$0xff] %vm3323_vm12, %v3315_v18  ;;  %v3316_v49 = vadd.f32 %v6203_v57, %v3265_v38 }
 0x651   : > { %3349 = vst.msk [vmem:[%s6209_s20 + $0xc8] sm:$0xff] %vm3323_vm12, %v3316_v49 }
 0x675   : > { %v3274_v28 = vpop.xlane.xlu0 %3273 }
 0x676   : > { %v3319_v23 = vadd.f32 %v6203_v57, %v3274_v28 }
 0x677   : > { %v3277_v10 = vpop.xlane.xlu1 %3276 }
 0x678   : > { %3352 = vst.msk [vmem:[%s6209_s20 + $0xe0] sm:$0xff] %vm3323_vm12, %v3319_v23  ;;  %v3320_v39 = vadd.f32 %v6203_v57, %v3277_v10 }
 0x679   : > { %v3280_v51 = vpop.xlane.xlu0 %3279 }
 0x67a   : > { %3353 = vst.msk [vmem:[%s6209_s20 + $0xe8] sm:$0xff] %vm3323_vm12, %v3320_v39  ;;  %v3321_v63 = vadd.f32 %v6203_v57, %v3280_v51 }
 0x67b   : > { %v3283_v34 = vpop.xlane.xlu1 %3282 }
 0x67c   : > { %3354 = vst.msk [vmem:[%s6209_s20 + $0xf0] sm:$0xff] %vm3323_vm12, %v3321_v63  ;;  %v3322_v53 = vadd.f32 %v6203_v57, %v3283_v34 }
 0x67e   : > { %3355 = vst.msk [vmem:[%s6209_s20 + $0xf8] sm:$0xff] %vm3323_vm12, %v3322_v53 }
 0x67f PF: > { %s21_s11 = sadd.s32 1, %s4039_s11  }
 0x680   : > { %p18_p4 = scmp.ge.s32.totalorder %s21_s11, 4  }
 0x682   :  { %20 = sbr.rel (!%p18_p4) target bundleno = 3 (0x3), region = 89 }

</bundles_post_ra>
